<compile_context>
chip_gen: v7x
topology: tpu7x:2x2x1
jax: 0.10.0
libtpu: 0.0.40
codegen_flags: <defaults>
</compile_context>

<pallas_src>
import jax
import jax.numpy as jnp
from jax.experimental import pallas as pl
from jax.experimental.pallas import tpu as pltpu

HIDDEN_SIZE = 128
INPUT_SIZE = 5
NUM_LAYERS = 2   # hard-wired as a fused two-layer recurrence in the kernel
OUTPUT_SIZE = 1
FC_PAD = 128     # lane-dense width for the in-kernel FC output


def lstm_kernel(xw0_ref,    # (T*B, 4H) f32 : x @ W_ih0^T + b_ih0 + b_hh0, row = t*B + b
                whh0_ref,   # (H, 4H)   bf16: W_hh0^T
                wih1_ref,   # (H, 4H)   bf16: W_ih1^T
                whh1_ref,   # (H, 4H)   bf16: W_hh1^T
                b1_ref,     # (1, 4H)   f32 : b_ih1 + b_hh1
                wfc_ref,    # (H, 128)  f32 : W_fc^T zero-padded to 128 lanes
                bfc_ref,    # (1, 128)  f32 : b_fc zero-padded to 128 lanes
                out_ref):   # (B, 128)  f32 : FC output in column 0
    H = HIDDEN_SIZE
    B = out_ref.shape[0]
    T = xw0_ref.shape[0] // B

    # Hoisted bias broadcast (JAX does not CSE broadcast_in_dim inside loops).
    b1 = jnp.broadcast_to(b1_ref[...], (B, 4 * H))

    def gates(g, c):
        # PyTorch gate order: i, f, g, o.  One EUP push for the contiguous
        # [i|f] slab; tanh(c_new) issues as soon as c_new exists; o trails.
        i_f = jax.nn.sigmoid(g[:, : 2 * H])
        i = i_f[:, :H]
        f = i_f[:, H:]
        gg = jnp.tanh(g[:, 2 * H: 3 * H])
        c_new = f * c + i * gg
        tanh_c = jnp.tanh(c_new)
        o = jax.nn.sigmoid(g[:, 3 * H:])
        return o * tanh_c, c_new

    h0b = jnp.zeros((B, H), jnp.bfloat16)   # bf16 carry: direct MXU feed
    c0 = jnp.zeros((B, H), jnp.float32)
    h1 = jnp.zeros((B, H), jnp.float32)     # f32 carry: off-chain matmul use only
    c1 = jnp.zeros((B, H), jnp.float32)

    for t in range(T):  # fully static unroll (tiny T)
        # Layer-1 recurrent partial: depends only on h1[t-1] -> issue early,
        # off the serial critical path.
        g1_rec = b1 + jnp.dot(h1.astype(jnp.bfloat16), whh1_ref[...],
                              preferred_element_type=jnp.float32)
        # Layer 0, step t: the only MXU op on the serial chain for this layer.
        g0 = xw0_ref[t * B:(t + 1) * B, :] + jnp.dot(
            h0b, whh0_ref[...], preferred_element_type=jnp.float32)
        h0, c0 = gates(g0, c0)
        h0b = h0.astype(jnp.bfloat16)       # single cast, reused at t and t+1
        # Layer 1, step t: only the h0[t]-dependent half sits on the chain.
        g1 = g1_rec + jnp.dot(h0b, wih1_ref[...],
                              preferred_element_type=jnp.float32)
        h1, c1 = gates(g1, c1)

    # Final FC folded in: lane-dense (B, 128) store, f32 all the way.
    out_ref[...] = (jnp.dot(h1, wfc_ref[...],
                            preferred_element_type=jnp.float32)
                    + bfc_ref[...])


def prepare_params(params):
    """One-time weight packing: keep this off the per-call dispatch path."""
    H = HIDDEN_SIZE
    return {
        # layer-0 input projection stays in the wrapper (single fused einsum)
        "w_ih0": params["w_ih0"],                                   # (4H, I)
        "b0": params["b_ih0"] + params["b_hh0"],                    # (4H,)
        # recurrent weights, pre-transposed, bf16 MXU feed
        "whh0T": params["w_hh0"].T.astype(jnp.bfloat16),            # (H, 4H)
        "wih1T": params["w_ih1"].T.astype(jnp.bfloat16),            # (H, 4H)
        "whh1T": params["w_hh1"].T.astype(jnp.bfloat16),            # (H, 4H)
        "b1": (params["b_ih1"] + params["b_hh1"]).reshape(1, 4 * H),
        # FC, zero-padded to a lane-dense 128-wide output
        "wfc": jnp.pad(params["w_fc"].T.astype(jnp.float32),
                       ((0, 0), (0, FC_PAD - OUTPUT_SIZE))),        # (H, 128)
        "bfc": jnp.pad(params["b_fc"].reshape(1, -1).astype(jnp.float32),
                       ((0, 0), (0, FC_PAD - OUTPUT_SIZE))),        # (1, 128)
    }


def lstm_forward(x, packed):
    """x: (B, T, INPUT_SIZE) float32  ->  (B, OUTPUT_SIZE) float32."""
    B, T, _ = x.shape
    H = HIDDEN_SIZE
    x = x.astype(jnp.float32)

    # Hoisted layer-0 input projection (+ combined bias), packed as (T*B, 4H)
    # so the second-minor dim is fully sublane-dense (no 4x padding at B=2).
    xw0 = (jnp.einsum("bti,gi->tbg", x, packed["w_ih0"])
           + packed["b0"]).reshape(T * B, 4 * H)

    vmem = pl.BlockSpec(memory_space=pltpu.MemorySpace.VMEM)
    out = pl.pallas_call(
        lstm_kernel,
        out_shape=jax.ShapeDtypeStruct((B, FC_PAD), jnp.float32),
        in_specs=[vmem] * 7,
        out_specs=vmem,
    )(xw0, packed["whh0T"], packed["wih1T"], packed["whh1T"],
      packed["b1"], packed["wfc"], packed["bfc"])

    return out[:, :OUTPUT_SIZE]


def init_params(key):
    """Deterministic init matching nn.LSTM / nn.Linear shapes.
    Uniform(-1/sqrt(H), 1/sqrt(H)) like PyTorch's default."""
    H, I = HIDDEN_SIZE, INPUT_SIZE
    bound = 1.0 / jnp.sqrt(jnp.float32(H))
    keys = jax.random.split(key, 10)

    def u(k, shape):
        return jax.random.uniform(k, shape, jnp.float32, -bound, bound)

    return {
        # layer 0
        "w_ih0": u(keys[0], (4 * H, I)),
        "w_hh0": u(keys[1], (4 * H, H)),
        "b_ih0": u(keys[2], (4 * H,)),
        "b_hh0": u(keys[3], (4 * H,)),
        # layer 1
        "w_ih1": u(keys[4], (4 * H, H)),
        "w_hh1": u(keys[5], (4 * H, H)),
        "b_ih1": u(keys[6], (4 * H,)),
        "b_hh1": u(keys[7], (4 * H,)),
        # fc
        "w_fc": u(keys[8], (OUTPUT_SIZE, H)),
        "b_fc": u(keys[9], (OUTPUT_SIZE,)),
    }


def lstm_reference(x, params):
    """Pure-JAX f32 reference mirroring torch.nn.LSTM semantics."""
    H = HIDDEN_SIZE
    B = x.shape[0]

    def cell(x_t, h, c, w_ih, w_hh, b_ih, b_hh):
        g = x_t @ w_ih.T + b_ih + h @ w_hh.T + b_hh
        i = jax.nn.sigmoid(g[:, 0 * H:1 * H])
        f = jax.nn.sigmoid(g[:, 1 * H:2 * H])
        gg = jnp.tanh(g[:, 2 * H:3 * H])
        o = jax.nn.sigmoid(g[:, 3 * H:4 * H])
        c = f * c + i * gg
        h = o * jnp.tanh(c)
        return h, c

    seq = jnp.transpose(x, (1, 0, 2))  # (T, B, I)
    h0 = c0 = jnp.zeros((B, H), jnp.float32)
    outs0 = []
    for t in range(seq.shape[0]):
        h0, c0 = cell(seq[t], h0, c0, params["w_ih0"], params["w_hh0"],
                      params["b_ih0"], params["b_hh0"])
        outs0.append(h0)
    h1 = c1 = jnp.zeros((B, H), jnp.float32)
    for t in range(seq.shape[0]):
        h1, c1 = cell(outs0[t], h1, c1, params["w_ih1"], params["w_hh1"],
                      params["b_ih1"], params["b_hh1"])
    return h1 @ params["w_fc"].T + params["b_fc"]


if __name__ == "__main__":
    key = jax.random.PRNGKey(0)
    k_param, k_x = jax.random.split(key)

    B, T = 2, 8
    x = jax.random.normal(k_x, (B, T, INPUT_SIZE), jnp.float32)
    params = init_params(k_param)

    packed = prepare_params(params)          # one-time weight packing
    out = jax.jit(lstm_forward)(x, packed)
    out = jax.block_until_ready(out)

    ref = lstm_reference(x, params)
    assert out.shape == (B, OUTPUT_SIZE)
    # bf16 hidden-state feed to the MXU (gates / cell state / FC stay f32), so
    # compare against the f32 reference with a loosened tolerance.  Expected
    # drift grows slowly with T; at T=8 it is ~1e-3.
    assert jnp.allclose(out, ref, atol=3e-2, rtol=3e-2), (out, ref)

    print("KERNEL_OK")
</pallas_src>

<mosaic_0001>
module attributes {stable_mosaic.version = 11 : i64} {
  func.func @lstm_kernel(%arg0: memref<16x512xf32, #tpu.memory_space<vmem>>, %arg1: memref<128x512xbf16, #tpu.memory_space<vmem>>, %arg2: memref<128x512xbf16, #tpu.memory_space<vmem>>, %arg3: memref<128x512xbf16, #tpu.memory_space<vmem>>, %arg4: memref<1x512xf32, #tpu.memory_space<vmem>>, %arg5: memref<128x128xf32, #tpu.memory_space<vmem>>, %arg6: memref<1x128xf32, #tpu.memory_space<vmem>>, %arg7: memref<2x128xf32, #tpu.memory_space<vmem>>) attributes {dimension_semantics = [], scalar_prefetch = 0 : i64, scratch_operands = 0 : i64, tpu.core_type = #tpu.core_type<tc>} {
    %c0 = arith.constant 0 : index
    %c0_0 = arith.constant 0 : index
    %0 = vector.load %arg4[%c0, %c0_0] : memref<1x512xf32, #tpu.memory_space<vmem>>, vector<1x512xf32>
    %1 = vector.shape_cast %0 : vector<1x512xf32> to vector<1x512xf32>
    %2 = vector.broadcast %1 : vector<1x512xf32> to vector<2x512xf32>
    %cst = arith.constant 0.000000e+00 : bf16
    %3 = vector.broadcast %cst : bf16 to vector<2x128xbf16>
    %cst_1 = arith.constant 0.000000e+00 : f32
    %4 = vector.broadcast %cst_1 : f32 to vector<2x128xf32>
    %cst_2 = arith.constant 0.000000e+00 : f32
    %5 = vector.broadcast %cst_2 : f32 to vector<2x128xf32>
    %cst_3 = arith.constant 0.000000e+00 : f32
    %6 = vector.broadcast %cst_3 : f32 to vector<2x128xf32>
    %7 = arith.truncf %5 : vector<2x128xf32> to vector<2x128xbf16>
    %c0_4 = arith.constant 0 : index
    %c0_5 = arith.constant 0 : index
    %8 = vector.load %arg3[%c0_4, %c0_5] : memref<128x512xbf16, #tpu.memory_space<vmem>>, vector<128x512xbf16>
    %cst_6 = arith.constant dense<0.000000e+00> : vector<2x512xf32>
    %9 = tpu.matmul %7, %8, %cst_6 {dimension_numbers = #tpu.dot_dimension_numbers<[1], [0], [0], [1], [0, 0, 1, 1], [], []>} : vector<2x128xbf16>, vector<128x512xbf16>, vector<2x512xf32> -> vector<2x512xf32>
    %10 = arith.addf %2, %9 : vector<2x512xf32>
    %c0_7 = arith.constant 0 : index
    %c0_8 = arith.constant 0 : index
    %11 = vector.load %arg0[%c0_7, %c0_8] : memref<16x512xf32, #tpu.memory_space<vmem>>, vector<2x512xf32>
    %c0_9 = arith.constant 0 : index
    %c0_10 = arith.constant 0 : index
    %12 = vector.load %arg1[%c0_9, %c0_10] : memref<128x512xbf16, #tpu.memory_space<vmem>>, vector<128x512xbf16>
    %cst_11 = arith.constant dense<0.000000e+00> : vector<2x512xf32>
    %13 = tpu.matmul %3, %12, %cst_11 {dimension_numbers = #tpu.dot_dimension_numbers<[1], [0], [0], [1], [0, 0, 1, 1], [], []>} : vector<2x128xbf16>, vector<128x512xbf16>, vector<2x512xf32> -> vector<2x512xf32>
    %14 = arith.addf %11, %13 : vector<2x512xf32>
    %15 = vector.extract_strided_slice %14 {offsets = [0, 0], sizes = [2, 256], strides = [1, 1]} : vector<2x512xf32> to vector<2x256xf32>
    %16 = arith.negf %15 : vector<2x256xf32>
    %17 = math.exp %16 : vector<2x256xf32>
    %cst_12 = arith.constant 1.000000e+00 : f32
    %18 = vector.broadcast %cst_12 : f32 to vector<2x256xf32>
    %19 = arith.addf %18, %17 : vector<2x256xf32>
    %20 = arith.divf %18, %19 : vector<2x256xf32>
    %21 = vector.extract_strided_slice %20 {offsets = [0, 0], sizes = [2, 128], strides = [1, 1]} : vector<2x256xf32> to vector<2x128xf32>
    %22 = vector.extract_strided_slice %20 {offsets = [0, 128], sizes = [2, 128], strides = [1, 1]} : vector<2x256xf32> to vector<2x128xf32>
    %23 = vector.extract_strided_slice %14 {offsets = [0, 256], sizes = [2, 128], strides = [1, 1]} : vector<2x512xf32> to vector<2x128xf32>
    %24 = math.tanh %23 : vector<2x128xf32>
    %25 = arith.mulf %22, %4 : vector<2x128xf32>
    %26 = arith.mulf %21, %24 : vector<2x128xf32>
    %27 = arith.addf %25, %26 : vector<2x128xf32>
    %28 = math.tanh %27 : vector<2x128xf32>
    %29 = vector.extract_strided_slice %14 {offsets = [0, 384], sizes = [2, 128], strides = [1, 1]} : vector<2x512xf32> to vector<2x128xf32>
    %30 = arith.negf %29 : vector<2x128xf32>
    %31 = math.exp %30 : vector<2x128xf32>
    %cst_13 = arith.constant 1.000000e+00 : f32
    %32 = vector.broadcast %cst_13 : f32 to vector<2x128xf32>
    %33 = arith.addf %32, %31 : vector<2x128xf32>
    %34 = arith.divf %32, %33 : vector<2x128xf32>
    %35 = arith.mulf %34, %28 : vector<2x128xf32>
    %36 = arith.truncf %35 : vector<2x128xf32> to vector<2x128xbf16>
    %c0_14 = arith.constant 0 : index
    %c0_15 = arith.constant 0 : index
    %37 = vector.load %arg2[%c0_14, %c0_15] : memref<128x512xbf16, #tpu.memory_space<vmem>>, vector<128x512xbf16>
    %cst_16 = arith.constant dense<0.000000e+00> : vector<2x512xf32>
    %38 = tpu.matmul %36, %37, %cst_16 {dimension_numbers = #tpu.dot_dimension_numbers<[1], [0], [0], [1], [0, 0, 1, 1], [], []>} : vector<2x128xbf16>, vector<128x512xbf16>, vector<2x512xf32> -> vector<2x512xf32>
    %39 = arith.addf %10, %38 : vector<2x512xf32>
    %40 = vector.extract_strided_slice %39 {offsets = [0, 0], sizes = [2, 256], strides = [1, 1]} : vector<2x512xf32> to vector<2x256xf32>
    %41 = arith.negf %40 : vector<2x256xf32>
    %42 = math.exp %41 : vector<2x256xf32>
    %cst_17 = arith.constant 1.000000e+00 : f32
    %43 = vector.broadcast %cst_17 : f32 to vector<2x256xf32>
    %44 = arith.addf %43, %42 : vector<2x256xf32>
    %45 = arith.divf %43, %44 : vector<2x256xf32>
    %46 = vector.extract_strided_slice %45 {offsets = [0, 0], sizes = [2, 128], strides = [1, 1]} : vector<2x256xf32> to vector<2x128xf32>
    %47 = vector.extract_strided_slice %45 {offsets = [0, 128], sizes = [2, 128], strides = [1, 1]} : vector<2x256xf32> to vector<2x128xf32>
    %48 = vector.extract_strided_slice %39 {offsets = [0, 256], sizes = [2, 128], strides = [1, 1]} : vector<2x512xf32> to vector<2x128xf32>
    %49 = math.tanh %48 : vector<2x128xf32>
    %50 = arith.mulf %47, %6 : vector<2x128xf32>
    %51 = arith.mulf %46, %49 : vector<2x128xf32>
    %52 = arith.addf %50, %51 : vector<2x128xf32>
    %53 = math.tanh %52 : vector<2x128xf32>
    %54 = vector.extract_strided_slice %39 {offsets = [0, 384], sizes = [2, 128], strides = [1, 1]} : vector<2x512xf32> to vector<2x128xf32>
    %55 = arith.negf %54 : vector<2x128xf32>
    %56 = math.exp %55 : vector<2x128xf32>
    %cst_18 = arith.constant 1.000000e+00 : f32
    %57 = vector.broadcast %cst_18 : f32 to vector<2x128xf32>
    %58 = arith.addf %57, %56 : vector<2x128xf32>
    %59 = arith.divf %57, %58 : vector<2x128xf32>
    %60 = arith.mulf %59, %53 : vector<2x128xf32>
    %61 = arith.truncf %60 : vector<2x128xf32> to vector<2x128xbf16>
    %c0_19 = arith.constant 0 : index
    %c0_20 = arith.constant 0 : index
    %62 = vector.load %arg3[%c0_19, %c0_20] : memref<128x512xbf16, #tpu.memory_space<vmem>>, vector<128x512xbf16>
    %cst_21 = arith.constant dense<0.000000e+00> : vector<2x512xf32>
    %63 = tpu.matmul %61, %62, %cst_21 {dimension_numbers = #tpu.dot_dimension_numbers<[1], [0], [0], [1], [0, 0, 1, 1], [], []>} : vector<2x128xbf16>, vector<128x512xbf16>, vector<2x512xf32> -> vector<2x512xf32>
    %64 = arith.addf %2, %63 : vector<2x512xf32>
    %c2 = arith.constant 2 : index
    %c0_22 = arith.constant 0 : index
    %65 = vector.load %arg0[%c2, %c0_22] : memref<16x512xf32, #tpu.memory_space<vmem>>, vector<2x512xf32>
    %c0_23 = arith.constant 0 : index
    %c0_24 = arith.constant 0 : index
    %66 = vector.load %arg1[%c0_23, %c0_24] : memref<128x512xbf16, #tpu.memory_space<vmem>>, vector<128x512xbf16>
    %cst_25 = arith.constant dense<0.000000e+00> : vector<2x512xf32>
    %67 = tpu.matmul %36, %66, %cst_25 {dimension_numbers = #tpu.dot_dimension_numbers<[1], [0], [0], [1], [0, 0, 1, 1], [], []>} : vector<2x128xbf16>, vector<128x512xbf16>, vector<2x512xf32> -> vector<2x512xf32>
    %68 = arith.addf %65, %67 : vector<2x512xf32>
    %69 = vector.extract_strided_slice %68 {offsets = [0, 0], sizes = [2, 256], strides = [1, 1]} : vector<2x512xf32> to vector<2x256xf32>
    %70 = arith.negf %69 : vector<2x256xf32>
    %71 = math.exp %70 : vector<2x256xf32>
    %cst_26 = arith.constant 1.000000e+00 : f32
    %72 = vector.broadcast %cst_26 : f32 to vector<2x256xf32>
    %73 = arith.addf %72, %71 : vector<2x256xf32>
    %74 = arith.divf %72, %73 : vector<2x256xf32>
    %75 = vector.extract_strided_slice %74 {offsets = [0, 0], sizes = [2, 128], strides = [1, 1]} : vector<2x256xf32> to vector<2x128xf32>
    %76 = vector.extract_strided_slice %74 {offsets = [0, 128], sizes = [2, 128], strides = [1, 1]} : vector<2x256xf32> to vector<2x128xf32>
    %77 = vector.extract_strided_slice %68 {offsets = [0, 256], sizes = [2, 128], strides = [1, 1]} : vector<2x512xf32> to vector<2x128xf32>
    %78 = math.tanh %77 : vector<2x128xf32>
    %79 = arith.mulf %76, %27 : vector<2x128xf32>
    %80 = arith.mulf %75, %78 : vector<2x128xf32>
    %81 = arith.addf %79, %80 : vector<2x128xf32>
    %82 = math.tanh %81 : vector<2x128xf32>
    %83 = vector.extract_strided_slice %68 {offsets = [0, 384], sizes = [2, 128], strides = [1, 1]} : vector<2x512xf32> to vector<2x128xf32>
    %84 = arith.negf %83 : vector<2x128xf32>
    %85 = math.exp %84 : vector<2x128xf32>
    %cst_27 = arith.constant 1.000000e+00 : f32
    %86 = vector.broadcast %cst_27 : f32 to vector<2x128xf32>
    %87 = arith.addf %86, %85 : vector<2x128xf32>
    %88 = arith.divf %86, %87 : vector<2x128xf32>
    %89 = arith.mulf %88, %82 : vector<2x128xf32>
    %90 = arith.truncf %89 : vector<2x128xf32> to vector<2x128xbf16>
    %c0_28 = arith.constant 0 : index
    %c0_29 = arith.constant 0 : index
    %91 = vector.load %arg2[%c0_28, %c0_29] : memref<128x512xbf16, #tpu.memory_space<vmem>>, vector<128x512xbf16>
    %cst_30 = arith.constant dense<0.000000e+00> : vector<2x512xf32>
    %92 = tpu.matmul %90, %91, %cst_30 {dimension_numbers = #tpu.dot_dimension_numbers<[1], [0], [0], [1], [0, 0, 1, 1], [], []>} : vector<2x128xbf16>, vector<128x512xbf16>, vector<2x512xf32> -> vector<2x512xf32>
    %93 = arith.addf %64, %92 : vector<2x512xf32>
    %94 = vector.extract_strided_slice %93 {offsets = [0, 0], sizes = [2, 256], strides = [1, 1]} : vector<2x512xf32> to vector<2x256xf32>
    %95 = arith.negf %94 : vector<2x256xf32>
    %96 = math.exp %95 : vector<2x256xf32>
    %cst_31 = arith.constant 1.000000e+00 : f32
    %97 = vector.broadcast %cst_31 : f32 to vector<2x256xf32>
    %98 = arith.addf %97, %96 : vector<2x256xf32>
    %99 = arith.divf %97, %98 : vector<2x256xf32>
    %100 = vector.extract_strided_slice %99 {offsets = [0, 0], sizes = [2, 128], strides = [1, 1]} : vector<2x256xf32> to vector<2x128xf32>
    %101 = vector.extract_strided_slice %99 {offsets = [0, 128], sizes = [2, 128], strides = [1, 1]} : vector<2x256xf32> to vector<2x128xf32>
    %102 = vector.extract_strided_slice %93 {offsets = [0, 256], sizes = [2, 128], strides = [1, 1]} : vector<2x512xf32> to vector<2x128xf32>
    %103 = math.tanh %102 : vector<2x128xf32>
    %104 = arith.mulf %101, %52 : vector<2x128xf32>
    %105 = arith.mulf %100, %103 : vector<2x128xf32>
    %106 = arith.addf %104, %105 : vector<2x128xf32>
    %107 = math.tanh %106 : vector<2x128xf32>
    %108 = vector.extract_strided_slice %93 {offsets = [0, 384], sizes = [2, 128], strides = [1, 1]} : vector<2x512xf32> to vector<2x128xf32>
    %109 = arith.negf %108 : vector<2x128xf32>
    %110 = math.exp %109 : vector<2x128xf32>
    %cst_32 = arith.constant 1.000000e+00 : f32
    %111 = vector.broadcast %cst_32 : f32 to vector<2x128xf32>
    %112 = arith.addf %111, %110 : vector<2x128xf32>
    %113 = arith.divf %111, %112 : vector<2x128xf32>
    %114 = arith.mulf %113, %107 : vector<2x128xf32>
    %115 = arith.truncf %114 : vector<2x128xf32> to vector<2x128xbf16>
    %c0_33 = arith.constant 0 : index
    %c0_34 = arith.constant 0 : index
    %116 = vector.load %arg3[%c0_33, %c0_34] : memref<128x512xbf16, #tpu.memory_space<vmem>>, vector<128x512xbf16>
    %cst_35 = arith.constant dense<0.000000e+00> : vector<2x512xf32>
    %117 = tpu.matmul %115, %116, %cst_35 {dimension_numbers = #tpu.dot_dimension_numbers<[1], [0], [0], [1], [0, 0, 1, 1], [], []>} : vector<2x128xbf16>, vector<128x512xbf16>, vector<2x512xf32> -> vector<2x512xf32>
    %118 = arith.addf %2, %117 : vector<2x512xf32>
    %c4 = arith.constant 4 : index
    %c0_36 = arith.constant 0 : index
    %119 = vector.load %arg0[%c4, %c0_36] : memref<16x512xf32, #tpu.memory_space<vmem>>, vector<2x512xf32>
    %c0_37 = arith.constant 0 : index
    %c0_38 = arith.constant 0 : index
    %120 = vector.load %arg1[%c0_37, %c0_38] : memref<128x512xbf16, #tpu.memory_space<vmem>>, vector<128x512xbf16>
    %cst_39 = arith.constant dense<0.000000e+00> : vector<2x512xf32>
    %121 = tpu.matmul %90, %120, %cst_39 {dimension_numbers = #tpu.dot_dimension_numbers<[1], [0], [0], [1], [0, 0, 1, 1], [], []>} : vector<2x128xbf16>, vector<128x512xbf16>, vector<2x512xf32> -> vector<2x512xf32>
    %122 = arith.addf %119, %121 : vector<2x512xf32>
    %123 = vector.extract_strided_slice %122 {offsets = [0, 0], sizes = [2, 256], strides = [1, 1]} : vector<2x512xf32> to vector<2x256xf32>
    %124 = arith.negf %123 : vector<2x256xf32>
    %125 = math.exp %124 : vector<2x256xf32>
    %cst_40 = arith.constant 1.000000e+00 : f32
    %126 = vector.broadcast %cst_40 : f32 to vector<2x256xf32>
    %127 = arith.addf %126, %125 : vector<2x256xf32>
    %128 = arith.divf %126, %127 : vector<2x256xf32>
    %129 = vector.extract_strided_slice %128 {offsets = [0, 0], sizes = [2, 128], strides = [1, 1]} : vector<2x256xf32> to vector<2x128xf32>
    %130 = vector.extract_strided_slice %128 {offsets = [0, 128], sizes = [2, 128], strides = [1, 1]} : vector<2x256xf32> to vector<2x128xf32>
    %131 = vector.extract_strided_slice %122 {offsets = [0, 256], sizes = [2, 128], strides = [1, 1]} : vector<2x512xf32> to vector<2x128xf32>
    %132 = math.tanh %131 : vector<2x128xf32>
    %133 = arith.mulf %130, %81 : vector<2x128xf32>
    %134 = arith.mulf %129, %132 : vector<2x128xf32>
    %135 = arith.addf %133, %134 : vector<2x128xf32>
    %136 = math.tanh %135 : vector<2x128xf32>
    %137 = vector.extract_strided_slice %122 {offsets = [0, 384], sizes = [2, 128], strides = [1, 1]} : vector<2x512xf32> to vector<2x128xf32>
    %138 = arith.negf %137 : vector<2x128xf32>
    %139 = math.exp %138 : vector<2x128xf32>
    %cst_41 = arith.constant 1.000000e+00 : f32
    %140 = vector.broadcast %cst_41 : f32 to vector<2x128xf32>
    %141 = arith.addf %140, %139 : vector<2x128xf32>
    %142 = arith.divf %140, %141 : vector<2x128xf32>
    %143 = arith.mulf %142, %136 : vector<2x128xf32>
    %144 = arith.truncf %143 : vector<2x128xf32> to vector<2x128xbf16>
    %c0_42 = arith.constant 0 : index
    %c0_43 = arith.constant 0 : index
    %145 = vector.load %arg2[%c0_42, %c0_43] : memref<128x512xbf16, #tpu.memory_space<vmem>>, vector<128x512xbf16>
    %cst_44 = arith.constant dense<0.000000e+00> : vector<2x512xf32>
    %146 = tpu.matmul %144, %145, %cst_44 {dimension_numbers = #tpu.dot_dimension_numbers<[1], [0], [0], [1], [0, 0, 1, 1], [], []>} : vector<2x128xbf16>, vector<128x512xbf16>, vector<2x512xf32> -> vector<2x512xf32>
    %147 = arith.addf %118, %146 : vector<2x512xf32>
    %148 = vector.extract_strided_slice %147 {offsets = [0, 0], sizes = [2, 256], strides = [1, 1]} : vector<2x512xf32> to vector<2x256xf32>
    %149 = arith.negf %148 : vector<2x256xf32>
    %150 = math.exp %149 : vector<2x256xf32>
    %cst_45 = arith.constant 1.000000e+00 : f32
    %151 = vector.broadcast %cst_45 : f32 to vector<2x256xf32>
    %152 = arith.addf %151, %150 : vector<2x256xf32>
    %153 = arith.divf %151, %152 : vector<2x256xf32>
    %154 = vector.extract_strided_slice %153 {offsets = [0, 0], sizes = [2, 128], strides = [1, 1]} : vector<2x256xf32> to vector<2x128xf32>
    %155 = vector.extract_strided_slice %153 {offsets = [0, 128], sizes = [2, 128], strides = [1, 1]} : vector<2x256xf32> to vector<2x128xf32>
    %156 = vector.extract_strided_slice %147 {offsets = [0, 256], sizes = [2, 128], strides = [1, 1]} : vector<2x512xf32> to vector<2x128xf32>
    %157 = math.tanh %156 : vector<2x128xf32>
    %158 = arith.mulf %155, %106 : vector<2x128xf32>
    %159 = arith.mulf %154, %157 : vector<2x128xf32>
    %160 = arith.addf %158, %159 : vector<2x128xf32>
    %161 = math.tanh %160 : vector<2x128xf32>
    %162 = vector.extract_strided_slice %147 {offsets = [0, 384], sizes = [2, 128], strides = [1, 1]} : vector<2x512xf32> to vector<2x128xf32>
    %163 = arith.negf %162 : vector<2x128xf32>
    %164 = math.exp %163 : vector<2x128xf32>
    %cst_46 = arith.constant 1.000000e+00 : f32
    %165 = vector.broadcast %cst_46 : f32 to vector<2x128xf32>
    %166 = arith.addf %165, %164 : vector<2x128xf32>
    %167 = arith.divf %165, %166 : vector<2x128xf32>
    %168 = arith.mulf %167, %161 : vector<2x128xf32>
    %169 = arith.truncf %168 : vector<2x128xf32> to vector<2x128xbf16>
    %c0_47 = arith.constant 0 : index
    %c0_48 = arith.constant 0 : index
    %170 = vector.load %arg3[%c0_47, %c0_48] : memref<128x512xbf16, #tpu.memory_space<vmem>>, vector<128x512xbf16>
    %cst_49 = arith.constant dense<0.000000e+00> : vector<2x512xf32>
    %171 = tpu.matmul %169, %170, %cst_49 {dimension_numbers = #tpu.dot_dimension_numbers<[1], [0], [0], [1], [0, 0, 1, 1], [], []>} : vector<2x128xbf16>, vector<128x512xbf16>, vector<2x512xf32> -> vector<2x512xf32>
    %172 = arith.addf %2, %171 : vector<2x512xf32>
    %c6 = arith.constant 6 : index
    %c0_50 = arith.constant 0 : index
    %173 = vector.load %arg0[%c6, %c0_50] : memref<16x512xf32, #tpu.memory_space<vmem>>, vector<2x512xf32>
    %c0_51 = arith.constant 0 : index
    %c0_52 = arith.constant 0 : index
    %174 = vector.load %arg1[%c0_51, %c0_52] : memref<128x512xbf16, #tpu.memory_space<vmem>>, vector<128x512xbf16>
    %cst_53 = arith.constant dense<0.000000e+00> : vector<2x512xf32>
    %175 = tpu.matmul %144, %174, %cst_53 {dimension_numbers = #tpu.dot_dimension_numbers<[1], [0], [0], [1], [0, 0, 1, 1], [], []>} : vector<2x128xbf16>, vector<128x512xbf16>, vector<2x512xf32> -> vector<2x512xf32>
    %176 = arith.addf %173, %175 : vector<2x512xf32>
    %177 = vector.extract_strided_slice %176 {offsets = [0, 0], sizes = [2, 256], strides = [1, 1]} : vector<2x512xf32> to vector<2x256xf32>
    %178 = arith.negf %177 : vector<2x256xf32>
    %179 = math.exp %178 : vector<2x256xf32>
    %cst_54 = arith.constant 1.000000e+00 : f32
    %180 = vector.broadcast %cst_54 : f32 to vector<2x256xf32>
    %181 = arith.addf %180, %179 : vector<2x256xf32>
    %182 = arith.divf %180, %181 : vector<2x256xf32>
    %183 = vector.extract_strided_slice %182 {offsets = [0, 0], sizes = [2, 128], strides = [1, 1]} : vector<2x256xf32> to vector<2x128xf32>
    %184 = vector.extract_strided_slice %182 {offsets = [0, 128], sizes = [2, 128], strides = [1, 1]} : vector<2x256xf32> to vector<2x128xf32>
    %185 = vector.extract_strided_slice %176 {offsets = [0, 256], sizes = [2, 128], strides = [1, 1]} : vector<2x512xf32> to vector<2x128xf32>
    %186 = math.tanh %185 : vector<2x128xf32>
    %187 = arith.mulf %184, %135 : vector<2x128xf32>
    %188 = arith.mulf %183, %186 : vector<2x128xf32>
    %189 = arith.addf %187, %188 : vector<2x128xf32>
    %190 = math.tanh %189 : vector<2x128xf32>
    %191 = vector.extract_strided_slice %176 {offsets = [0, 384], sizes = [2, 128], strides = [1, 1]} : vector<2x512xf32> to vector<2x128xf32>
    %192 = arith.negf %191 : vector<2x128xf32>
    %193 = math.exp %192 : vector<2x128xf32>
    %cst_55 = arith.constant 1.000000e+00 : f32
    %194 = vector.broadcast %cst_55 : f32 to vector<2x128xf32>
    %195 = arith.addf %194, %193 : vector<2x128xf32>
    %196 = arith.divf %194, %195 : vector<2x128xf32>
    %197 = arith.mulf %196, %190 : vector<2x128xf32>
    %198 = arith.truncf %197 : vector<2x128xf32> to vector<2x128xbf16>
    %c0_56 = arith.constant 0 : index
    %c0_57 = arith.constant 0 : index
    %199 = vector.load %arg2[%c0_56, %c0_57] : memref<128x512xbf16, #tpu.memory_space<vmem>>, vector<128x512xbf16>
    %cst_58 = arith.constant dense<0.000000e+00> : vector<2x512xf32>
    %200 = tpu.matmul %198, %199, %cst_58 {dimension_numbers = #tpu.dot_dimension_numbers<[1], [0], [0], [1], [0, 0, 1, 1], [], []>} : vector<2x128xbf16>, vector<128x512xbf16>, vector<2x512xf32> -> vector<2x512xf32>
    %201 = arith.addf %172, %200 : vector<2x512xf32>
    %202 = vector.extract_strided_slice %201 {offsets = [0, 0], sizes = [2, 256], strides = [1, 1]} : vector<2x512xf32> to vector<2x256xf32>
    %203 = arith.negf %202 : vector<2x256xf32>
    %204 = math.exp %203 : vector<2x256xf32>
    %cst_59 = arith.constant 1.000000e+00 : f32
    %205 = vector.broadcast %cst_59 : f32 to vector<2x256xf32>
    %206 = arith.addf %205, %204 : vector<2x256xf32>
    %207 = arith.divf %205, %206 : vector<2x256xf32>
    %208 = vector.extract_strided_slice %207 {offsets = [0, 0], sizes = [2, 128], strides = [1, 1]} : vector<2x256xf32> to vector<2x128xf32>
    %209 = vector.extract_strided_slice %207 {offsets = [0, 128], sizes = [2, 128], strides = [1, 1]} : vector<2x256xf32> to vector<2x128xf32>
    %210 = vector.extract_strided_slice %201 {offsets = [0, 256], sizes = [2, 128], strides = [1, 1]} : vector<2x512xf32> to vector<2x128xf32>
    %211 = math.tanh %210 : vector<2x128xf32>
    %212 = arith.mulf %209, %160 : vector<2x128xf32>
    %213 = arith.mulf %208, %211 : vector<2x128xf32>
    %214 = arith.addf %212, %213 : vector<2x128xf32>
    %215 = math.tanh %214 : vector<2x128xf32>
    %216 = vector.extract_strided_slice %201 {offsets = [0, 384], sizes = [2, 128], strides = [1, 1]} : vector<2x512xf32> to vector<2x128xf32>
    %217 = arith.negf %216 : vector<2x128xf32>
    %218 = math.exp %217 : vector<2x128xf32>
    %cst_60 = arith.constant 1.000000e+00 : f32
    %219 = vector.broadcast %cst_60 : f32 to vector<2x128xf32>
    %220 = arith.addf %219, %218 : vector<2x128xf32>
    %221 = arith.divf %219, %220 : vector<2x128xf32>
    %222 = arith.mulf %221, %215 : vector<2x128xf32>
    %223 = arith.truncf %222 : vector<2x128xf32> to vector<2x128xbf16>
    %c0_61 = arith.constant 0 : index
    %c0_62 = arith.constant 0 : index
    %224 = vector.load %arg3[%c0_61, %c0_62] : memref<128x512xbf16, #tpu.memory_space<vmem>>, vector<128x512xbf16>
    %cst_63 = arith.constant dense<0.000000e+00> : vector<2x512xf32>
    %225 = tpu.matmul %223, %224, %cst_63 {dimension_numbers = #tpu.dot_dimension_numbers<[1], [0], [0], [1], [0, 0, 1, 1], [], []>} : vector<2x128xbf16>, vector<128x512xbf16>, vector<2x512xf32> -> vector<2x512xf32>
    %226 = arith.addf %2, %225 : vector<2x512xf32>
    %c8 = arith.constant 8 : index
    %c0_64 = arith.constant 0 : index
    %227 = vector.load %arg0[%c8, %c0_64] : memref<16x512xf32, #tpu.memory_space<vmem>>, vector<2x512xf32>
    %c0_65 = arith.constant 0 : index
    %c0_66 = arith.constant 0 : index
    %228 = vector.load %arg1[%c0_65, %c0_66] : memref<128x512xbf16, #tpu.memory_space<vmem>>, vector<128x512xbf16>
    %cst_67 = arith.constant dense<0.000000e+00> : vector<2x512xf32>
    %229 = tpu.matmul %198, %228, %cst_67 {dimension_numbers = #tpu.dot_dimension_numbers<[1], [0], [0], [1], [0, 0, 1, 1], [], []>} : vector<2x128xbf16>, vector<128x512xbf16>, vector<2x512xf32> -> vector<2x512xf32>
    %230 = arith.addf %227, %229 : vector<2x512xf32>
    %231 = vector.extract_strided_slice %230 {offsets = [0, 0], sizes = [2, 256], strides = [1, 1]} : vector<2x512xf32> to vector<2x256xf32>
    %232 = arith.negf %231 : vector<2x256xf32>
    %233 = math.exp %232 : vector<2x256xf32>
    %cst_68 = arith.constant 1.000000e+00 : f32
    %234 = vector.broadcast %cst_68 : f32 to vector<2x256xf32>
    %235 = arith.addf %234, %233 : vector<2x256xf32>
    %236 = arith.divf %234, %235 : vector<2x256xf32>
    %237 = vector.extract_strided_slice %236 {offsets = [0, 0], sizes = [2, 128], strides = [1, 1]} : vector<2x256xf32> to vector<2x128xf32>
    %238 = vector.extract_strided_slice %236 {offsets = [0, 128], sizes = [2, 128], strides = [1, 1]} : vector<2x256xf32> to vector<2x128xf32>
    %239 = vector.extract_strided_slice %230 {offsets = [0, 256], sizes = [2, 128], strides = [1, 1]} : vector<2x512xf32> to vector<2x128xf32>
    %240 = math.tanh %239 : vector<2x128xf32>
    %241 = arith.mulf %238, %189 : vector<2x128xf32>
    %242 = arith.mulf %237, %240 : vector<2x128xf32>
    %243 = arith.addf %241, %242 : vector<2x128xf32>
    %244 = math.tanh %243 : vector<2x128xf32>
    %245 = vector.extract_strided_slice %230 {offsets = [0, 384], sizes = [2, 128], strides = [1, 1]} : vector<2x512xf32> to vector<2x128xf32>
    %246 = arith.negf %245 : vector<2x128xf32>
    %247 = math.exp %246 : vector<2x128xf32>
    %cst_69 = arith.constant 1.000000e+00 : f32
    %248 = vector.broadcast %cst_69 : f32 to vector<2x128xf32>
    %249 = arith.addf %248, %247 : vector<2x128xf32>
    %250 = arith.divf %248, %249 : vector<2x128xf32>
    %251 = arith.mulf %250, %244 : vector<2x128xf32>
    %252 = arith.truncf %251 : vector<2x128xf32> to vector<2x128xbf16>
    %c0_70 = arith.constant 0 : index
    %c0_71 = arith.constant 0 : index
    %253 = vector.load %arg2[%c0_70, %c0_71] : memref<128x512xbf16, #tpu.memory_space<vmem>>, vector<128x512xbf16>
    %cst_72 = arith.constant dense<0.000000e+00> : vector<2x512xf32>
    %254 = tpu.matmul %252, %253, %cst_72 {dimension_numbers = #tpu.dot_dimension_numbers<[1], [0], [0], [1], [0, 0, 1, 1], [], []>} : vector<2x128xbf16>, vector<128x512xbf16>, vector<2x512xf32> -> vector<2x512xf32>
    %255 = arith.addf %226, %254 : vector<2x512xf32>
    %256 = vector.extract_strided_slice %255 {offsets = [0, 0], sizes = [2, 256], strides = [1, 1]} : vector<2x512xf32> to vector<2x256xf32>
    %257 = arith.negf %256 : vector<2x256xf32>
    %258 = math.exp %257 : vector<2x256xf32>
    %cst_73 = arith.constant 1.000000e+00 : f32
    %259 = vector.broadcast %cst_73 : f32 to vector<2x256xf32>
    %260 = arith.addf %259, %258 : vector<2x256xf32>
    %261 = arith.divf %259, %260 : vector<2x256xf32>
    %262 = vector.extract_strided_slice %261 {offsets = [0, 0], sizes = [2, 128], strides = [1, 1]} : vector<2x256xf32> to vector<2x128xf32>
    %263 = vector.extract_strided_slice %261 {offsets = [0, 128], sizes = [2, 128], strides = [1, 1]} : vector<2x256xf32> to vector<2x128xf32>
    %264 = vector.extract_strided_slice %255 {offsets = [0, 256], sizes = [2, 128], strides = [1, 1]} : vector<2x512xf32> to vector<2x128xf32>
    %265 = math.tanh %264 : vector<2x128xf32>
    %266 = arith.mulf %263, %214 : vector<2x128xf32>
    %267 = arith.mulf %262, %265 : vector<2x128xf32>
    %268 = arith.addf %266, %267 : vector<2x128xf32>
    %269 = math.tanh %268 : vector<2x128xf32>
    %270 = vector.extract_strided_slice %255 {offsets = [0, 384], sizes = [2, 128], strides = [1, 1]} : vector<2x512xf32> to vector<2x128xf32>
    %271 = arith.negf %270 : vector<2x128xf32>
    %272 = math.exp %271 : vector<2x128xf32>
    %cst_74 = arith.constant 1.000000e+00 : f32
    %273 = vector.broadcast %cst_74 : f32 to vector<2x128xf32>
    %274 = arith.addf %273, %272 : vector<2x128xf32>
    %275 = arith.divf %273, %274 : vector<2x128xf32>
    %276 = arith.mulf %275, %269 : vector<2x128xf32>
    %277 = arith.truncf %276 : vector<2x128xf32> to vector<2x128xbf16>
    %c0_75 = arith.constant 0 : index
    %c0_76 = arith.constant 0 : index
    %278 = vector.load %arg3[%c0_75, %c0_76] : memref<128x512xbf16, #tpu.memory_space<vmem>>, vector<128x512xbf16>
    %cst_77 = arith.constant dense<0.000000e+00> : vector<2x512xf32>
    %279 = tpu.matmul %277, %278, %cst_77 {dimension_numbers = #tpu.dot_dimension_numbers<[1], [0], [0], [1], [0, 0, 1, 1], [], []>} : vector<2x128xbf16>, vector<128x512xbf16>, vector<2x512xf32> -> vector<2x512xf32>
    %280 = arith.addf %2, %279 : vector<2x512xf32>
    %c10 = arith.constant 10 : index
    %c0_78 = arith.constant 0 : index
    %281 = vector.load %arg0[%c10, %c0_78] : memref<16x512xf32, #tpu.memory_space<vmem>>, vector<2x512xf32>
    %c0_79 = arith.constant 0 : index
    %c0_80 = arith.constant 0 : index
    %282 = vector.load %arg1[%c0_79, %c0_80] : memref<128x512xbf16, #tpu.memory_space<vmem>>, vector<128x512xbf16>
    %cst_81 = arith.constant dense<0.000000e+00> : vector<2x512xf32>
    %283 = tpu.matmul %252, %282, %cst_81 {dimension_numbers = #tpu.dot_dimension_numbers<[1], [0], [0], [1], [0, 0, 1, 1], [], []>} : vector<2x128xbf16>, vector<128x512xbf16>, vector<2x512xf32> -> vector<2x512xf32>
    %284 = arith.addf %281, %283 : vector<2x512xf32>
    %285 = vector.extract_strided_slice %284 {offsets = [0, 0], sizes = [2, 256], strides = [1, 1]} : vector<2x512xf32> to vector<2x256xf32>
    %286 = arith.negf %285 : vector<2x256xf32>
    %287 = math.exp %286 : vector<2x256xf32>
    %cst_82 = arith.constant 1.000000e+00 : f32
    %288 = vector.broadcast %cst_82 : f32 to vector<2x256xf32>
    %289 = arith.addf %288, %287 : vector<2x256xf32>
    %290 = arith.divf %288, %289 : vector<2x256xf32>
    %291 = vector.extract_strided_slice %290 {offsets = [0, 0], sizes = [2, 128], strides = [1, 1]} : vector<2x256xf32> to vector<2x128xf32>
    %292 = vector.extract_strided_slice %290 {offsets = [0, 128], sizes = [2, 128], strides = [1, 1]} : vector<2x256xf32> to vector<2x128xf32>
    %293 = vector.extract_strided_slice %284 {offsets = [0, 256], sizes = [2, 128], strides = [1, 1]} : vector<2x512xf32> to vector<2x128xf32>
    %294 = math.tanh %293 : vector<2x128xf32>
    %295 = arith.mulf %292, %243 : vector<2x128xf32>
    %296 = arith.mulf %291, %294 : vector<2x128xf32>
    %297 = arith.addf %295, %296 : vector<2x128xf32>
    %298 = math.tanh %297 : vector<2x128xf32>
    %299 = vector.extract_strided_slice %284 {offsets = [0, 384], sizes = [2, 128], strides = [1, 1]} : vector<2x512xf32> to vector<2x128xf32>
    %300 = arith.negf %299 : vector<2x128xf32>
    %301 = math.exp %300 : vector<2x128xf32>
    %cst_83 = arith.constant 1.000000e+00 : f32
    %302 = vector.broadcast %cst_83 : f32 to vector<2x128xf32>
    %303 = arith.addf %302, %301 : vector<2x128xf32>
    %304 = arith.divf %302, %303 : vector<2x128xf32>
    %305 = arith.mulf %304, %298 : vector<2x128xf32>
    %306 = arith.truncf %305 : vector<2x128xf32> to vector<2x128xbf16>
    %c0_84 = arith.constant 0 : index
    %c0_85 = arith.constant 0 : index
    %307 = vector.load %arg2[%c0_84, %c0_85] : memref<128x512xbf16, #tpu.memory_space<vmem>>, vector<128x512xbf16>
    %cst_86 = arith.constant dense<0.000000e+00> : vector<2x512xf32>
    %308 = tpu.matmul %306, %307, %cst_86 {dimension_numbers = #tpu.dot_dimension_numbers<[1], [0], [0], [1], [0, 0, 1, 1], [], []>} : vector<2x128xbf16>, vector<128x512xbf16>, vector<2x512xf32> -> vector<2x512xf32>
    %309 = arith.addf %280, %308 : vector<2x512xf32>
    %310 = vector.extract_strided_slice %309 {offsets = [0, 0], sizes = [2, 256], strides = [1, 1]} : vector<2x512xf32> to vector<2x256xf32>
    %311 = arith.negf %310 : vector<2x256xf32>
    %312 = math.exp %311 : vector<2x256xf32>
    %cst_87 = arith.constant 1.000000e+00 : f32
    %313 = vector.broadcast %cst_87 : f32 to vector<2x256xf32>
    %314 = arith.addf %313, %312 : vector<2x256xf32>
    %315 = arith.divf %313, %314 : vector<2x256xf32>
    %316 = vector.extract_strided_slice %315 {offsets = [0, 0], sizes = [2, 128], strides = [1, 1]} : vector<2x256xf32> to vector<2x128xf32>
    %317 = vector.extract_strided_slice %315 {offsets = [0, 128], sizes = [2, 128], strides = [1, 1]} : vector<2x256xf32> to vector<2x128xf32>
    %318 = vector.extract_strided_slice %309 {offsets = [0, 256], sizes = [2, 128], strides = [1, 1]} : vector<2x512xf32> to vector<2x128xf32>
    %319 = math.tanh %318 : vector<2x128xf32>
    %320 = arith.mulf %317, %268 : vector<2x128xf32>
    %321 = arith.mulf %316, %319 : vector<2x128xf32>
    %322 = arith.addf %320, %321 : vector<2x128xf32>
    %323 = math.tanh %322 : vector<2x128xf32>
    %324 = vector.extract_strided_slice %309 {offsets = [0, 384], sizes = [2, 128], strides = [1, 1]} : vector<2x512xf32> to vector<2x128xf32>
    %325 = arith.negf %324 : vector<2x128xf32>
    %326 = math.exp %325 : vector<2x128xf32>
    %cst_88 = arith.constant 1.000000e+00 : f32
    %327 = vector.broadcast %cst_88 : f32 to vector<2x128xf32>
    %328 = arith.addf %327, %326 : vector<2x128xf32>
    %329 = arith.divf %327, %328 : vector<2x128xf32>
    %330 = arith.mulf %329, %323 : vector<2x128xf32>
    %331 = arith.truncf %330 : vector<2x128xf32> to vector<2x128xbf16>
    %c0_89 = arith.constant 0 : index
    %c0_90 = arith.constant 0 : index
    %332 = vector.load %arg3[%c0_89, %c0_90] : memref<128x512xbf16, #tpu.memory_space<vmem>>, vector<128x512xbf16>
    %cst_91 = arith.constant dense<0.000000e+00> : vector<2x512xf32>
    %333 = tpu.matmul %331, %332, %cst_91 {dimension_numbers = #tpu.dot_dimension_numbers<[1], [0], [0], [1], [0, 0, 1, 1], [], []>} : vector<2x128xbf16>, vector<128x512xbf16>, vector<2x512xf32> -> vector<2x512xf32>
    %334 = arith.addf %2, %333 : vector<2x512xf32>
    %c12 = arith.constant 12 : index
    %c0_92 = arith.constant 0 : index
    %335 = vector.load %arg0[%c12, %c0_92] : memref<16x512xf32, #tpu.memory_space<vmem>>, vector<2x512xf32>
    %c0_93 = arith.constant 0 : index
    %c0_94 = arith.constant 0 : index
    %336 = vector.load %arg1[%c0_93, %c0_94] : memref<128x512xbf16, #tpu.memory_space<vmem>>, vector<128x512xbf16>
    %cst_95 = arith.constant dense<0.000000e+00> : vector<2x512xf32>
    %337 = tpu.matmul %306, %336, %cst_95 {dimension_numbers = #tpu.dot_dimension_numbers<[1], [0], [0], [1], [0, 0, 1, 1], [], []>} : vector<2x128xbf16>, vector<128x512xbf16>, vector<2x512xf32> -> vector<2x512xf32>
    %338 = arith.addf %335, %337 : vector<2x512xf32>
    %339 = vector.extract_strided_slice %338 {offsets = [0, 0], sizes = [2, 256], strides = [1, 1]} : vector<2x512xf32> to vector<2x256xf32>
    %340 = arith.negf %339 : vector<2x256xf32>
    %341 = math.exp %340 : vector<2x256xf32>
    %cst_96 = arith.constant 1.000000e+00 : f32
    %342 = vector.broadcast %cst_96 : f32 to vector<2x256xf32>
    %343 = arith.addf %342, %341 : vector<2x256xf32>
    %344 = arith.divf %342, %343 : vector<2x256xf32>
    %345 = vector.extract_strided_slice %344 {offsets = [0, 0], sizes = [2, 128], strides = [1, 1]} : vector<2x256xf32> to vector<2x128xf32>
    %346 = vector.extract_strided_slice %344 {offsets = [0, 128], sizes = [2, 128], strides = [1, 1]} : vector<2x256xf32> to vector<2x128xf32>
    %347 = vector.extract_strided_slice %338 {offsets = [0, 256], sizes = [2, 128], strides = [1, 1]} : vector<2x512xf32> to vector<2x128xf32>
    %348 = math.tanh %347 : vector<2x128xf32>
    %349 = arith.mulf %346, %297 : vector<2x128xf32>
    %350 = arith.mulf %345, %348 : vector<2x128xf32>
    %351 = arith.addf %349, %350 : vector<2x128xf32>
    %352 = math.tanh %351 : vector<2x128xf32>
    %353 = vector.extract_strided_slice %338 {offsets = [0, 384], sizes = [2, 128], strides = [1, 1]} : vector<2x512xf32> to vector<2x128xf32>
    %354 = arith.negf %353 : vector<2x128xf32>
    %355 = math.exp %354 : vector<2x128xf32>
    %cst_97 = arith.constant 1.000000e+00 : f32
    %356 = vector.broadcast %cst_97 : f32 to vector<2x128xf32>
    %357 = arith.addf %356, %355 : vector<2x128xf32>
    %358 = arith.divf %356, %357 : vector<2x128xf32>
    %359 = arith.mulf %358, %352 : vector<2x128xf32>
    %360 = arith.truncf %359 : vector<2x128xf32> to vector<2x128xbf16>
    %c0_98 = arith.constant 0 : index
    %c0_99 = arith.constant 0 : index
    %361 = vector.load %arg2[%c0_98, %c0_99] : memref<128x512xbf16, #tpu.memory_space<vmem>>, vector<128x512xbf16>
    %cst_100 = arith.constant dense<0.000000e+00> : vector<2x512xf32>
    %362 = tpu.matmul %360, %361, %cst_100 {dimension_numbers = #tpu.dot_dimension_numbers<[1], [0], [0], [1], [0, 0, 1, 1], [], []>} : vector<2x128xbf16>, vector<128x512xbf16>, vector<2x512xf32> -> vector<2x512xf32>
    %363 = arith.addf %334, %362 : vector<2x512xf32>
    %364 = vector.extract_strided_slice %363 {offsets = [0, 0], sizes = [2, 256], strides = [1, 1]} : vector<2x512xf32> to vector<2x256xf32>
    %365 = arith.negf %364 : vector<2x256xf32>
    %366 = math.exp %365 : vector<2x256xf32>
    %cst_101 = arith.constant 1.000000e+00 : f32
    %367 = vector.broadcast %cst_101 : f32 to vector<2x256xf32>
    %368 = arith.addf %367, %366 : vector<2x256xf32>
    %369 = arith.divf %367, %368 : vector<2x256xf32>
    %370 = vector.extract_strided_slice %369 {offsets = [0, 0], sizes = [2, 128], strides = [1, 1]} : vector<2x256xf32> to vector<2x128xf32>
    %371 = vector.extract_strided_slice %369 {offsets = [0, 128], sizes = [2, 128], strides = [1, 1]} : vector<2x256xf32> to vector<2x128xf32>
    %372 = vector.extract_strided_slice %363 {offsets = [0, 256], sizes = [2, 128], strides = [1, 1]} : vector<2x512xf32> to vector<2x128xf32>
    %373 = math.tanh %372 : vector<2x128xf32>
    %374 = arith.mulf %371, %322 : vector<2x128xf32>
    %375 = arith.mulf %370, %373 : vector<2x128xf32>
    %376 = arith.addf %374, %375 : vector<2x128xf32>
    %377 = math.tanh %376 : vector<2x128xf32>
    %378 = vector.extract_strided_slice %363 {offsets = [0, 384], sizes = [2, 128], strides = [1, 1]} : vector<2x512xf32> to vector<2x128xf32>
    %379 = arith.negf %378 : vector<2x128xf32>
    %380 = math.exp %379 : vector<2x128xf32>
    %cst_102 = arith.constant 1.000000e+00 : f32
    %381 = vector.broadcast %cst_102 : f32 to vector<2x128xf32>
    %382 = arith.addf %381, %380 : vector<2x128xf32>
    %383 = arith.divf %381, %382 : vector<2x128xf32>
    %384 = arith.mulf %383, %377 : vector<2x128xf32>
    %385 = arith.truncf %384 : vector<2x128xf32> to vector<2x128xbf16>
    %c0_103 = arith.constant 0 : index
    %c0_104 = arith.constant 0 : index
    %386 = vector.load %arg3[%c0_103, %c0_104] : memref<128x512xbf16, #tpu.memory_space<vmem>>, vector<128x512xbf16>
    %cst_105 = arith.constant dense<0.000000e+00> : vector<2x512xf32>
    %387 = tpu.matmul %385, %386, %cst_105 {dimension_numbers = #tpu.dot_dimension_numbers<[1], [0], [0], [1], [0, 0, 1, 1], [], []>} : vector<2x128xbf16>, vector<128x512xbf16>, vector<2x512xf32> -> vector<2x512xf32>
    %388 = arith.addf %2, %387 : vector<2x512xf32>
    %c14 = arith.constant 14 : index
    %c0_106 = arith.constant 0 : index
    %389 = vector.load %arg0[%c14, %c0_106] : memref<16x512xf32, #tpu.memory_space<vmem>>, vector<2x512xf32>
    %c0_107 = arith.constant 0 : index
    %c0_108 = arith.constant 0 : index
    %390 = vector.load %arg1[%c0_107, %c0_108] : memref<128x512xbf16, #tpu.memory_space<vmem>>, vector<128x512xbf16>
    %cst_109 = arith.constant dense<0.000000e+00> : vector<2x512xf32>
    %391 = tpu.matmul %360, %390, %cst_109 {dimension_numbers = #tpu.dot_dimension_numbers<[1], [0], [0], [1], [0, 0, 1, 1], [], []>} : vector<2x128xbf16>, vector<128x512xbf16>, vector<2x512xf32> -> vector<2x512xf32>
    %392 = arith.addf %389, %391 : vector<2x512xf32>
    %393 = vector.extract_strided_slice %392 {offsets = [0, 0], sizes = [2, 256], strides = [1, 1]} : vector<2x512xf32> to vector<2x256xf32>
    %394 = arith.negf %393 : vector<2x256xf32>
    %395 = math.exp %394 : vector<2x256xf32>
    %cst_110 = arith.constant 1.000000e+00 : f32
    %396 = vector.broadcast %cst_110 : f32 to vector<2x256xf32>
    %397 = arith.addf %396, %395 : vector<2x256xf32>
    %398 = arith.divf %396, %397 : vector<2x256xf32>
    %399 = vector.extract_strided_slice %398 {offsets = [0, 0], sizes = [2, 128], strides = [1, 1]} : vector<2x256xf32> to vector<2x128xf32>
    %400 = vector.extract_strided_slice %398 {offsets = [0, 128], sizes = [2, 128], strides = [1, 1]} : vector<2x256xf32> to vector<2x128xf32>
    %401 = vector.extract_strided_slice %392 {offsets = [0, 256], sizes = [2, 128], strides = [1, 1]} : vector<2x512xf32> to vector<2x128xf32>
    %402 = math.tanh %401 : vector<2x128xf32>
    %403 = arith.mulf %400, %351 : vector<2x128xf32>
    %404 = arith.mulf %399, %402 : vector<2x128xf32>
    %405 = arith.addf %403, %404 : vector<2x128xf32>
    %406 = math.tanh %405 : vector<2x128xf32>
    %407 = vector.extract_strided_slice %392 {offsets = [0, 384], sizes = [2, 128], strides = [1, 1]} : vector<2x512xf32> to vector<2x128xf32>
    %408 = arith.negf %407 : vector<2x128xf32>
    %409 = math.exp %408 : vector<2x128xf32>
    %cst_111 = arith.constant 1.000000e+00 : f32
    %410 = vector.broadcast %cst_111 : f32 to vector<2x128xf32>
    %411 = arith.addf %410, %409 : vector<2x128xf32>
    %412 = arith.divf %410, %411 : vector<2x128xf32>
    %413 = arith.mulf %412, %406 : vector<2x128xf32>
    %414 = arith.truncf %413 : vector<2x128xf32> to vector<2x128xbf16>
    %c0_112 = arith.constant 0 : index
    %c0_113 = arith.constant 0 : index
    %415 = vector.load %arg2[%c0_112, %c0_113] : memref<128x512xbf16, #tpu.memory_space<vmem>>, vector<128x512xbf16>
    %cst_114 = arith.constant dense<0.000000e+00> : vector<2x512xf32>
    %416 = tpu.matmul %414, %415, %cst_114 {dimension_numbers = #tpu.dot_dimension_numbers<[1], [0], [0], [1], [0, 0, 1, 1], [], []>} : vector<2x128xbf16>, vector<128x512xbf16>, vector<2x512xf32> -> vector<2x512xf32>
    %417 = arith.addf %388, %416 : vector<2x512xf32>
    %418 = vector.extract_strided_slice %417 {offsets = [0, 0], sizes = [2, 256], strides = [1, 1]} : vector<2x512xf32> to vector<2x256xf32>
    %419 = arith.negf %418 : vector<2x256xf32>
    %420 = math.exp %419 : vector<2x256xf32>
    %cst_115 = arith.constant 1.000000e+00 : f32
    %421 = vector.broadcast %cst_115 : f32 to vector<2x256xf32>
    %422 = arith.addf %421, %420 : vector<2x256xf32>
    %423 = arith.divf %421, %422 : vector<2x256xf32>
    %424 = vector.extract_strided_slice %423 {offsets = [0, 0], sizes = [2, 128], strides = [1, 1]} : vector<2x256xf32> to vector<2x128xf32>
    %425 = vector.extract_strided_slice %423 {offsets = [0, 128], sizes = [2, 128], strides = [1, 1]} : vector<2x256xf32> to vector<2x128xf32>
    %426 = vector.extract_strided_slice %417 {offsets = [0, 256], sizes = [2, 128], strides = [1, 1]} : vector<2x512xf32> to vector<2x128xf32>
    %427 = math.tanh %426 : vector<2x128xf32>
    %428 = arith.mulf %425, %376 : vector<2x128xf32>
    %429 = arith.mulf %424, %427 : vector<2x128xf32>
    %430 = arith.addf %428, %429 : vector<2x128xf32>
    %431 = math.tanh %430 : vector<2x128xf32>
    %432 = vector.extract_strided_slice %417 {offsets = [0, 384], sizes = [2, 128], strides = [1, 1]} : vector<2x512xf32> to vector<2x128xf32>
    %433 = arith.negf %432 : vector<2x128xf32>
    %434 = math.exp %433 : vector<2x128xf32>
    %cst_116 = arith.constant 1.000000e+00 : f32
    %435 = vector.broadcast %cst_116 : f32 to vector<2x128xf32>
    %436 = arith.addf %435, %434 : vector<2x128xf32>
    %437 = arith.divf %435, %436 : vector<2x128xf32>
    %438 = arith.mulf %437, %431 : vector<2x128xf32>
    %c0_117 = arith.constant 0 : index
    %c0_118 = arith.constant 0 : index
    %439 = vector.load %arg5[%c0_117, %c0_118] : memref<128x128xf32, #tpu.memory_space<vmem>>, vector<128x128xf32>
    %cst_119 = arith.constant dense<0.000000e+00> : vector<2x128xf32>
    %440 = tpu.matmul %438, %439, %cst_119 {dimension_numbers = #tpu.dot_dimension_numbers<[1], [0], [0], [1], [0, 0, 1, 1], [], []>} : vector<2x128xf32>, vector<128x128xf32>, vector<2x128xf32> -> vector<2x128xf32>
    %c0_120 = arith.constant 0 : index
    %c0_121 = arith.constant 0 : index
    %441 = vector.load %arg6[%c0_120, %c0_121] : memref<1x128xf32, #tpu.memory_space<vmem>>, vector<1x128xf32>
    %442 = vector.broadcast %441 : vector<1x128xf32> to vector<2x128xf32>
    %443 = arith.addf %440, %442 : vector<2x128xf32>
    %c0_122 = arith.constant 0 : index
    %c0_123 = arith.constant 0 : index
    %444 = vector.load %arg7[%c0_122, %c0_123] : memref<2x128xf32, #tpu.memory_space<vmem>>, vector<2x128xf32>
    tpu.vector_store %arg7[%c0_122, %c0_123], %443 {strides = array<i32>} : memref<2x128xf32, #tpu.memory_space<vmem>>, vector<2x128xf32>,
    return
  }
}

</mosaic_0001>

<bundles_post_ra>
// kernel: lstm_forward.1
= control target key start
LH: loop header
LB: loop body
LE: loop exit
PB: predicated region body
PF: predicated region fallthrough
CT: control target
= control target key end

     0   :  { %12 = vsyncpa [#allocation3], 0  ;;  %s6371_s0 = inlined_call_operand.vmem [shape: f32[16,512], index: 0, kind: input, shape index: {}]   ;;  %s6372_s1 = inlined_call_operand.vmem [shape: bf16[128,512], index: 1, kind: input, shape index: {}]   ;;  %s6373_s2 = inlined_call_operand.hbm [shape: bf16[128,512], index: 2, kind: input, shape index: {}]   ;;  %s6374_s3 = inlined_call_operand.hbm [shape: bf16[128,512], index: 3, kind: input, shape index: {}]   ;;  %s6375_s4 = inlined_call_operand.vmem [shape: f32[1,512], index: 4, kind: input, shape index: {}]   ;;  %s6376_s5 = inlined_call_operand.vmem [shape: f32[128,128], index: 5, kind: input, shape index: {}]   ;;  %s6377_s6 = inlined_call_operand.vmem [shape: f32[1,128], index: 6, kind: input, shape index: {}]   ;;  %s6378_s7 = inlined_call_operand.vmem [shape: f32[2,128], index: 7, kind: output, shape index: {}]  }
   0x1   :  { %13 = vsyncpa [#allocation5], 0  ;;  %s4324_s24 = smov [#allocation2]   ;;  %s4276_s28 = scalar_lea.hbm %s6373_s2, 4096 }
   0x2   :  { %s23_s25 = sshll.u32 %s4324_s24, 4  ;;  %p4277_p0 = scmp.ne.s32.totalorder %s6373_s2, %s4276_s28  ;;  %s24_s25 = int_to_ptr.vmem [resolvable:$true] %s23_s25 }
   0x3   :  { %p4280_p1 = scmp.lt.u32.totalorder %s4276_s28, %s6373_s2 }
   0x5   :  { %p4282_p2 = pnand %p4280_p1, %p4277_p0 }
   0x7   :  { %4285 = shalt.err (!%p4282_p2)
}
   0x8   :  { %s4286_s10 = scalar_lea.vmem %s24_s25, 4096  ;;  %p4291_p4 = scmp.lt.s32.totalorder %s24_s25, %s24_s25 }
   0x9   :  { %p4287_p3 = scmp.ne.s32.totalorder %s24_s25, %s4286_s10  ;;  %p4292_p5 = scmp.lt.s32.totalorder %s4286_s10, %s4286_s10 }
   0xb   :  { %p4293_p6 = por %p4292_p5, %p4291_p4 }
   0xd   :  { %p4294_p7 = pnand %p4293_p6, %p4287_p3 }
   0xf   :  { %4297 = shalt.err (!%p4294_p7)
}
  0x10   :  { %s4325_s11 = smov 256   ;;  %s4326_s12 = smov 16  }
  0x11   :  { %29 = dma.hbm_to_vmem [thread:$0]  %s6373_s2, 4096, %s24_s25, [#allocation3], %s4325_s11, %s4325_s11, %s4326_s12  }
  0x12   :  { %s4327_s15 = smov [#allocation4]   ;;  %s4298_s19 = scalar_lea.hbm %s6374_s3, 4096 }
  0x13   :  { %s35_s16 = sshll.u32 %s4327_s15, 4  ;;  %p4299_p8 = scmp.ne.s32.totalorder %s6374_s3, %s4298_s19  ;;  %s36_s16 = int_to_ptr.vmem [resolvable:$true] %s35_s16 }
  0x14   :  { %p4302_p9 = scmp.lt.u32.totalorder %s4298_s19, %s6374_s3 }
  0x16   :  { %p4304_p10 = pnand %p4302_p9, %p4299_p8 }
  0x18   :  { %4307 = shalt.err (!%p4304_p10)
}
  0x19   :  { %s4308_s24 = scalar_lea.vmem %s36_s16, 4096  ;;  %p4313_p12 = scmp.lt.s32.totalorder %s36_s16, %s36_s16 }
  0x1a   :  { %p4309_p11 = scmp.ne.s32.totalorder %s36_s16, %s4308_s24  ;;  %p4314_p13 = scmp.lt.s32.totalorder %s4308_s24, %s4308_s24 }
  0x1c   :  { %p4315_p0 = por %p4314_p13, %p4313_p12 }
  0x1e   :  { %p4316_p1 = pnand %p4315_p0, %p4309_p11 }
  0x20   :  { %4319 = shalt.err (!%p4316_p1)
}
  0x21   :  { %41 = dma.hbm_to_vmem [thread:$0]  %s6374_s3, 4096, %s36_s16, [#allocation5], %s4325_s11, %s4325_s11, %s4326_s12  }
  0x22   :  { %4320 = dma.done.wait [#allocation3], 4096  }
  0x23   :  { %4321 = vsyncadd [#allocation3], 4294963200 }
  0x24   :  { %4322 = dma.done.wait [#allocation5], 4096  }
  0x25   :  { %4323 = vsyncadd [#allocation5], 4294963200  ;;  %v6379_v0 = vmov 0   ;;  %v4398_v1 = vld [vmem:[#allocation4 + $0x4] ss:$16 sps:$4 sm:$0xff]   ;;  %vm4330_vm0 = vmmov 0  }
  0x26   :  { %301 = vmatprep.mubr.bf16.mxu0 %v6379_v0  ;;  %342 = vmatprep.mubr.bf16.mxu1 %v6379_v0  ;;  %6651 = vst [vmem:[#allocation8_spill] sm:$0xff] %v4398_v1  ;;  %v4400_v2 = vld [vmem:[#allocation4] ss:$16 sps:$4 sm:$0xff]   ;;  %v4403_v3 = vld [vmem:[#allocation4 + $0x24] ss:$16 sps:$4 sm:$0xff]  }
  0x27   :  { %269 = vmatprep.subr.bf16.mxu0 %v4398_v1  ;;  %v4406_v4 = vld [vmem:[#allocation4 + $0x20] ss:$16 sps:$4 sm:$0xff]   ;;  %v4409_v5 = vld [vmem:[#allocation4 + $0x44] ss:$16 sps:$4 sm:$0xff]   ;;  %v4411_v6 = vld [vmem:[#allocation4 + $0xc] ss:$16 sps:$4 sm:$0xff]  }
  0x28   :  { %270 = vmatpush1.bf16.msra.mxu0 %v4400_v2  ;;  %6652 = vst [vmem:[#allocation9_spill] sm:$0xff] %v4411_v6  ;;  %v4413_v7 = vld [vmem:[#allocation4 + $0x8] ss:$16 sps:$4 sm:$0xff]   ;;  %v4416_v8 = vld [vmem:[#allocation4 + $0x40] ss:$16 sps:$4 sm:$0xff]   ;;  %310 = vmatprep.subr.bf16.mxu1 %v4411_v6 }
  0x29   :  { %271 = vmatprep.subr.bf16.mxu0 %v4403_v3  ;;  %v4420_v9 = vld [vmem:[#allocation4 + $0x64] ss:$16 sps:$4 sm:$0xff]   ;;  %311 = vmatpush1.bf16.msra.mxu1 %v4413_v7  ;;  %v4423_v10 = vld [vmem:[#allocation4 + $0x2c] ss:$16 sps:$4 sm:$0xff]   ;;  %v4425_v11 = vld [vmem:[#allocation4 + $0x28] ss:$16 sps:$4 sm:$0xff]  }
  0x2a   :  { %312 = vmatprep.subr.bf16.mxu1 %v4423_v10  ;;  %v4429_v12 = vld [vmem:[#allocation4 + $0x60] ss:$16 sps:$4 sm:$0xff]   ;;  %v4431_v13 = vld [vmem:[#allocation4 + $0x84] ss:$16 sps:$4 sm:$0xff]   ;;  %v4433_v14 = vld [vmem:[#allocation4 + $0x4c] ss:$16 sps:$4 sm:$0xff]  }
  0x2b   :  { %v4437_v15 = vld [vmem:[#allocation4 + $0x48] ss:$16 sps:$4 sm:$0xff]   ;;  %v4440_v16 = vld [vmem:[#allocation4 + $0x6c] ss:$16 sps:$4 sm:$0xff]   ;;  %v4443_v17 = vld [vmem:[#allocation4 + $0x80] ss:$16 sps:$4 sm:$0xff]  }
  0x2c   :  { %272 = vmatpush1.bf16.msra.mxu0 %v4406_v4  ;;  %v4446_v18 = vld [vmem:[#allocation4 + $0xa4] ss:$16 sps:$4 sm:$0xff]   ;;  %v4449_v19 = vld [vmem:[#allocation4 + $0x68] ss:$16 sps:$4 sm:$0xff]   ;;  %v4452_v20 = vld [vmem:[#allocation4 + $0x8c] ss:$16 sps:$4 sm:$0xff]  }
  0x2d   :  { %273 = vmatprep.subr.bf16.mxu0 %v4409_v5  ;;  %313 = vmatpush1.bf16.msra.mxu1 %v4425_v11  ;;  %v4455_v21 = vld [vmem:[#allocation4 + $0xa0] ss:$16 sps:$4 sm:$0xff]   ;;  %v4457_v22 = vld [vmem:[#allocation4 + $0xc4] ss:$16 sps:$4 sm:$0xff]   ;;  %v4461_v23 = vld [vmem:[#allocation4 + $0x88] ss:$16 sps:$4 sm:$0xff]  }
  0x2e   :  { %314 = vmatprep.subr.bf16.mxu1 %v4433_v14  ;;  %v4464_v24 = vld [vmem:[#allocation4 + $0xac] ss:$16 sps:$4 sm:$0xff]   ;;  %v4467_v25 = vld [vmem:[#allocation4 + $0xc0] ss:$16 sps:$4 sm:$0xff]   ;;  %v4470_v26 = vld [vmem:[#allocation4 + $0xe4] ss:$16 sps:$4 sm:$0xff]  }
  0x2f   :  { %v4473_v27 = vld [vmem:[#allocation4 + $0xa8] ss:$16 sps:$4 sm:$0xff]   ;;  %v4476_v28 = vld [vmem:[#allocation4 + $0xcc] ss:$16 sps:$4 sm:$0xff]   ;;  %v4479_v29 = vld [vmem:[#allocation4 + $0xe0] ss:$16 sps:$4 sm:$0xff]  }
  0x30   :  { %274 = vmatpush1.bf16.msra.mxu0 %v4416_v8  ;;  %v4484_v30 = vld [vmem:[%s6372_s1 + $0x4] ss:$16 sps:$4 sm:$0xff]   ;;  %v4488_v31 = vld [vmem:[#allocation4 + $0xc8] ss:$16 sps:$4 sm:$0xff]   ;;  %v4491_v32 = vld [vmem:[#allocation4 + $0xec] ss:$16 sps:$4 sm:$0xff]  }
  0x31   :  { %275 = vmatprep.subr.bf16.mxu0 %v4420_v9  ;;  %315 = vmatpush1.bf16.msra.mxu1 %v4437_v15  ;;  %v4497_v33 = vld [vmem:[%s6372_s1] ss:$16 sps:$4 sm:$0xff]   ;;  %v4503_v34 = vld [vmem:[%s6372_s1 + $0x24] ss:$16 sps:$4 sm:$0xff]   ;;  %v4506_v35 = vld [vmem:[#allocation4 + $0xe8] ss:$16 sps:$4 sm:$0xff]  }
  0x32   :  { %316 = vmatprep.subr.bf16.mxu1 %v4440_v16  ;;  %v4512_v36 = vld [vmem:[%s6372_s1 + $0xc] ss:$16 sps:$4 sm:$0xff]   ;;  %v4519_v37 = vld [vmem:[%s6372_s1 + $0x20] ss:$16 sps:$4 sm:$0xff]   ;;  %v4524_v38 = vld [vmem:[%s6372_s1 + $0x44] ss:$16 sps:$4 sm:$0xff]  }
  0x33   :  { %v4532_v39 = vld [vmem:[%s6372_s1 + $0x8] ss:$16 sps:$4 sm:$0xff]   ;;  %v4538_v40 = vld [vmem:[%s6372_s1 + $0x2c] ss:$16 sps:$4 sm:$0xff]   ;;  %v4544_v41 = vld [vmem:[%s6372_s1 + $0x40] ss:$16 sps:$4 sm:$0xff]  }
  0x34   :  { %276 = vmatpush1.bf16.msra.mxu0 %v4429_v12  ;;  %v4549_v42 = vld [vmem:[%s6372_s1 + $0x64] ss:$16 sps:$4 sm:$0xff]   ;;  %v4557_v43 = vld [vmem:[%s6372_s1 + $0x28] ss:$16 sps:$4 sm:$0xff]   ;;  %v4563_v44 = vld [vmem:[%s6372_s1 + $0x4c] ss:$16 sps:$4 sm:$0xff]  }
  0x35   :  { %277 = vmatprep.subr.bf16.mxu0 %v4431_v13  ;;  %317 = vmatpush1.bf16.msra.mxu1 %v4449_v19  ;;  %v4569_v45 = vld [vmem:[%s6372_s1 + $0x60] ss:$16 sps:$4 sm:$0xff]   ;;  %v4574_v46 = vld [vmem:[%s6372_s1 + $0x84] ss:$16 sps:$4 sm:$0xff]   ;;  %v4579_v47 = vld [vmem:[%s6372_s1 + $0x48] ss:$16 sps:$4 sm:$0xff]  }
  0x36   :  { %318 = vmatprep.subr.bf16.mxu1 %v4452_v20  ;;  %6653 = vst [vmem:[#allocation10_spill] sm:$0xff] %v4574_v46  ;;  %v4585_v48 = vld [vmem:[%s6372_s1 + $0x6c] ss:$16 sps:$4 sm:$0xff]   ;;  %v4592_v49 = vld [vmem:[%s6372_s1 + $0x80] ss:$16 sps:$4 sm:$0xff]  }
  0x37   :  { %6654 = vst [vmem:[#allocation11_spill] sm:$0xff] %v4592_v49  ;;  %v4598_v50 = vld [vmem:[%s6372_s1 + $0xa4] ss:$16 sps:$4 sm:$0xff]   ;;  %v4603_v51 = vld [vmem:[%s6372_s1 + $0x68] ss:$16 sps:$4 sm:$0xff]  }
  0x38   :  { %278 = vmatpush1.bf16.msra.mxu0 %v4443_v17  ;;  %6655 = vst [vmem:[#allocation12_spill] sm:$0xff] %v4598_v50  ;;  %v4609_v52 = vld [vmem:[%s6372_s1 + $0x8c] ss:$16 sps:$4 sm:$0xff]   ;;  %v4616_v53 = vld [vmem:[%s6372_s1 + $0xa0] ss:$16 sps:$4 sm:$0xff]  }
  0x39   :  { %279 = vmatprep.subr.bf16.mxu0 %v4446_v18  ;;  %319 = vmatpush1.bf16.msra.mxu1 %v4461_v23  ;;  %6656 = vst [vmem:[#allocation13_spill] sm:$0xff] %v4609_v52  ;;  %6657 = vst [vmem:[#allocation14_spill] sm:$0xff] %v4616_v53  ;;  %v4622_v54 = vld [vmem:[%s6372_s1 + $0xc4] ss:$16 sps:$4 sm:$0xff]   ;;  %v4627_v55 = vld [vmem:[%s6372_s1 + $0x88] ss:$16 sps:$4 sm:$0xff]  }
  0x3a   :  { %320 = vmatprep.subr.bf16.mxu1 %v4464_v24  ;;  %6658 = vst [vmem:[#allocation15_spill] sm:$0xff] %v4622_v54  ;;  %6659 = vst [vmem:[#allocation16_spill] sm:$0xff] %v4627_v55  ;;  %v4636_v56 = vld [vmem:[%s6372_s1 + $0xac] ss:$16 sps:$4 sm:$0xff]   ;;  %v4642_v57 = vld [vmem:[%s6372_s1 + $0xc0] ss:$16 sps:$4 sm:$0xff]  }
  0x3b   :  { %6660 = vst [vmem:[#allocation17_spill] sm:$0xff] %v4636_v56  ;;  %6661 = vst [vmem:[#allocation18_spill] sm:$0xff] %v4642_v57  ;;  %v4648_v58 = vld [vmem:[%s6372_s1 + $0xe4] ss:$16 sps:$4 sm:$0xff]   ;;  %v4654_v59 = vld [vmem:[%s6372_s1 + $0xa8] ss:$16 sps:$4 sm:$0xff]  }
  0x3c   :  { %280 = vmatpush1.bf16.msra.mxu0 %v4455_v21  ;;  %6662 = vst [vmem:[#allocation19_spill] sm:$0xff] %v4648_v58  ;;  %6663 = vst [vmem:[#allocation20_spill] sm:$0xff] %v4654_v59  ;;  %v4660_v60 = vld [vmem:[%s6372_s1 + $0xcc] ss:$16 sps:$4 sm:$0xff]   ;;  %v4666_v61 = vld [vmem:[%s6372_s1 + $0xe0] ss:$16 sps:$4 sm:$0xff]  }
  0x3d   :  { %281 = vmatprep.subr.bf16.mxu0 %v4457_v22  ;;  %321 = vmatpush1.bf16.msra.mxu1 %v4473_v27  ;;  %6664 = vst [vmem:[#allocation21_spill] sm:$0xff] %v4660_v60  ;;  %6665 = vst [vmem:[#allocation22_spill] sm:$0xff] %v4666_v61  ;;  %v4673_v62 = vld [vmem:[%s6372_s1 + $0xc8] ss:$16 sps:$4 sm:$0xff]   ;;  %v4679_v63 = vld [vmem:[%s6372_s1 + $0xec] ss:$16 sps:$4 sm:$0xff]  }
  0x3e   :  { %322 = vmatprep.subr.bf16.mxu1 %v4476_v28  ;;  %6666 = vst [vmem:[#allocation23_spill] sm:$0xff] %v4673_v62  ;;  %6667 = vst [vmem:[#allocation24_spill] sm:$0xff] %v4679_v63 }
  0x40   :  { %282 = vmatpush1.bf16.msra.mxu0 %v4467_v25 }
  0x41   :  { %283 = vmatprep.subr.bf16.mxu0 %v4470_v26  ;;  %323 = vmatpush1.bf16.msra.mxu1 %v4488_v31 }
  0x42   :  { %324 = vmatprep.subr.bf16.mxu1 %v4491_v32 }
  0x44   :  { %284 = vmatpush1.bf16.msra.mxu0 %v4479_v29 }
  0x45   :  { %551 = vmatprep.subr.bf16.mxu0 %v4484_v30  ;;  %325 = vmatpush1.bf16.msra.mxu1 %v4506_v35 }
  0x46   :  { %592 = vmatprep.subr.bf16.mxu1 %v4512_v36 }
  0x47   :  { %302 = vmatmul.mubr.bf16.vlgmr.msra.gmra.mrb[0].mxu0 %v6379_v0 }
  0x48   :  { %552 = vmatpush1.bf16.msra.mxu0 %v4497_v33  ;;  %583 = vmatprep.mubr.bf16.mxu0 %v6379_v0 }
  0x49   :  { %553 = vmatprep.subr.bf16.mxu0 %v4503_v34  ;;  %343 = vmatmul.mubr.bf16.vlgmr.msra.gmra.mrb[0].mxu1 %v6379_v0 }
  0x4a   :  { %593 = vmatpush1.bf16.msra.mxu1 %v4532_v39  ;;  %624 = vmatprep.mubr.bf16.mxu1 %v6379_v0  ;;  %v4686_v0 = vld [vmem:[%s6372_s1 + $0xe8] ss:$16 sps:$4 sm:$0xff]  }
  0x4b   :  { %594 = vmatprep.subr.bf16.mxu1 %v4538_v40  ;;  %6668 = vst [vmem:[#allocation25_spill] sm:$0xff] %v4686_v0 }
  0x4c   :  { %554 = vmatpush1.bf16.msra.mxu0 %v4519_v37 }
  0x4d   :  { %555 = vmatprep.subr.bf16.mxu0 %v4524_v38 }
  0x4e   :  { %595 = vmatpush1.bf16.msra.mxu1 %v4557_v43 }
  0x4f   :  { %596 = vmatprep.subr.bf16.mxu1 %v4563_v44 }
  0x50   :  { %556 = vmatpush1.bf16.msra.mxu0 %v4544_v41 }
  0x51   :  { %557 = vmatprep.subr.bf16.mxu0 %v4549_v42 }
  0x52   :  { %597 = vmatpush1.bf16.msra.mxu1 %v4579_v47 }
  0x53   :  { %598 = vmatprep.subr.bf16.mxu1 %v4585_v48 }
  0x54   :  { %558 = vmatpush1.bf16.msra.mxu0 %v4569_v45 }
  0x55   :  { %559 = vmatprep.subr.bf16.mxu0 %v4574_v46 }
  0x56   :  { %599 = vmatpush1.bf16.msra.mxu1 %v4603_v51 }
  0x57   :  { %600 = vmatprep.subr.bf16.mxu1 %v4609_v52 }
  0x58   :  { %560 = vmatpush1.bf16.msra.mxu0 %v4592_v49 }
  0x59   :  { %561 = vmatprep.subr.bf16.mxu0 %v4598_v50 }
  0x5a   :  { %601 = vmatpush1.bf16.msra.mxu1 %v4627_v55 }
  0x5b   :  { %602 = vmatprep.subr.bf16.mxu1 %v4636_v56  ;;  %v4778_v56 = vld [vmem:[#allocation2 + $0xec] ss:$16 sps:$4 sm:$0xff]  }
  0x5c   :  { %562 = vmatpush1.bf16.msra.mxu0 %v4616_v53  ;;  %v4762_v53 = vld [vmem:[#allocation2 + $0xc4] ss:$16 sps:$4 sm:$0xff]   ;;  %6699 = vst [vmem:[#allocation55_spill] sm:$0xff] %v4778_v56 }
  0x5d   :  { %563 = vmatprep.subr.bf16.mxu0 %v4622_v54  ;;  %v4710_v54 = vld [vmem:[#allocation2 + $0x20] ss:$16 sps:$4 sm:$0xff]   ;;  %6694 = vst [vmem:[#allocation50_spill] sm:$0xff] %v4762_v53 }
  0x5e   :  { %603 = vmatpush1.bf16.msra.mxu1 %v4654_v59  ;;  %6676 = vst [vmem:[#allocation32_spill] sm:$0xff] %v4710_v54  ;;  %v4712_v59 = vld [vmem:[#allocation2 + $0x28] ss:$16 sps:$4 sm:$0xff]  }
  0x5f   :  { %604 = vmatprep.subr.bf16.mxu1 %v4660_v60  ;;  %v4700_v60 = vld [vmem:[#allocation2 + $0x8] ss:$16 sps:$4 sm:$0xff]   ;;  %6677 = vst [vmem:[#allocation33_spill] sm:$0xff] %v4712_v59 }
  0x60   :  { %564 = vmatpush1.bf16.msra.mxu0 %v4642_v57  ;;  %v4698_v57 = vld [vmem:[#allocation2] ss:$16 sps:$4 sm:$0xff]   ;;  %6673 = vst [vmem:[#allocation29_spill] sm:$0xff] %v4700_v60 }
  0x61   :  { %565 = vmatprep.subr.bf16.mxu0 %v4648_v58  ;;  %v6669_v58 = vmov 0   ;;  %6672 = vst [vmem:[#allocation28_spill] sm:$0xff] %v4698_v57 }
  0x62   :  { %605 = vmatpush1.bf16.msra.mxu1 %v4673_v62  ;;  %v4696_v62 = vld [vmem:[#allocation2 + $0xc] ss:$16 sps:$4 sm:$0xff]  }
  0x63   :  { %606 = vmatprep.subr.bf16.mxu1 %v4679_v63  ;;  %6671 = vst [vmem:[#allocation27_spill] sm:$0xff] %v4696_v62  ;;  %v4708_v63 = vld [vmem:[#allocation2 + $0x2c] ss:$16 sps:$4 sm:$0xff]  }
  0x64   :  { %566 = vmatpush1.bf16.msra.mxu0 %v4666_v61  ;;  %v4694_v61 = vld [vmem:[#allocation2 + $0x4] ss:$16 sps:$4 sm:$0xff]   ;;  %6675 = vst [vmem:[#allocation31_spill] sm:$0xff] %v4708_v63 }
  0x65   :  { %6670 = vst [vmem:[#allocation26_spill] sm:$0xff] %v4694_v61  ;;  %854 = vmatprep.subr.bf16.mxu0 %v4694_v61  ;;  %v4724_v61 = vld [vmem:[#allocation2 + $0x48] ss:$16 sps:$4 sm:$0xff]  }
  0x66   :  { %607 = vmatpush1.bf16.msra.mxu1 %v4686_v0  ;;  %v4706_v0 = vld [vmem:[#allocation2 + $0x24] ss:$16 sps:$4 sm:$0xff]   ;;  %6681 = vst [vmem:[#allocation37_spill] sm:$0xff] %v4724_v61 }
  0x67   :  { %584 = vmatmul.mubr.bf16.vlgmr.msra.gmra.mrb[4].mxu0 %v6669_v58  ;;  %895 = vmatprep.subr.bf16.mxu1 %v4696_v62  ;;  %6674 = vst [vmem:[#allocation30_spill] sm:$0xff] %v4706_v0  ;;  %v4718_v62 = vld [vmem:[#allocation2 + $0x44] ss:$16 sps:$4 sm:$0xff]  }
  0x68   :  { %886 = vmatprep.mubr.bf16.mxu0 %v6669_v58  ;;  %855 = vmatpush1.bf16.msra.mxu0 %v4698_v57  ;;  %6678 = vst [vmem:[#allocation34_spill] sm:$0xff] %v4718_v62  ;;  %v4720_v57 = vld [vmem:[#allocation2 + $0x4c] ss:$16 sps:$4 sm:$0xff]  }
  0x69   :  { %625 = vmatmul.mubr.bf16.vlgmr.msra.gmra.mrb[4].mxu1 %v6669_v58  ;;  %856 = vmatprep.subr.bf16.mxu0 %v4706_v0  ;;  %6679 = vst [vmem:[#allocation35_spill] sm:$0xff] %v4720_v57  ;;  %v4736_v0 = vld [vmem:[#allocation2 + $0x68] ss:$16 sps:$4 sm:$0xff]  }
  0x6a   :  { %927 = vmatprep.mubr.bf16.mxu1 %v6669_v58  ;;  %896 = vmatpush1.bf16.msra.mxu1 %v4700_v60  ;;  %v4722_v60 = vld [vmem:[#allocation2 + $0x40] ss:$16 sps:$4 sm:$0xff]   ;;  %6685 = vst [vmem:[#allocation41_spill] sm:$0xff] %v4736_v0 }
  0x6b   :  { %897 = vmatprep.subr.bf16.mxu1 %v4708_v63  ;;  %6680 = vst [vmem:[#allocation36_spill] sm:$0xff] %v4722_v60  ;;  %v4730_v63 = vld [vmem:[#allocation2 + $0x64] ss:$16 sps:$4 sm:$0xff]  }
  0x6c   :  { %857 = vmatpush1.bf16.msra.mxu0 %v4710_v54  ;;  %6682 = vst [vmem:[#allocation38_spill] sm:$0xff] %v4730_v63  ;;  %v4732_v54 = vld [vmem:[#allocation2 + $0x6c] ss:$16 sps:$4 sm:$0xff]  }
  0x6d   :  { %858 = vmatprep.subr.bf16.mxu0 %v4718_v62  ;;  %6683 = vst [vmem:[#allocation39_spill] sm:$0xff] %v4732_v54  ;;  %v4748_v62 = vld [vmem:[#allocation2 + $0x88] ss:$16 sps:$4 sm:$0xff]  }
  0x6e   :  { %898 = vmatpush1.bf16.msra.mxu1 %v4712_v59  ;;  %v4734_v59 = vld [vmem:[#allocation2 + $0x60] ss:$16 sps:$4 sm:$0xff]   ;;  %6689 = vst [vmem:[#allocation45_spill] sm:$0xff] %v4748_v62 }
  0x6f   :  { %899 = vmatprep.subr.bf16.mxu1 %v4720_v57  ;;  %6684 = vst [vmem:[#allocation40_spill] sm:$0xff] %v4734_v59  ;;  %v4742_v57 = vld [vmem:[#allocation2 + $0x84] ss:$16 sps:$4 sm:$0xff]  }
  0x70   :  { %859 = vmatpush1.bf16.msra.mxu0 %v4722_v60  ;;  %6686 = vst [vmem:[#allocation42_spill] sm:$0xff] %v4742_v57  ;;  %v4744_v60 = vld [vmem:[#allocation2 + $0x8c] ss:$16 sps:$4 sm:$0xff]  }
  0x71   :  { %860 = vmatprep.subr.bf16.mxu0 %v4730_v63  ;;  %6687 = vst [vmem:[#allocation43_spill] sm:$0xff] %v4744_v60  ;;  %v4753_v63 = vld [vmem:[#allocation2 + $0xa4] ss:$16 sps:$4 sm:$0xff]  }
  0x72   :  { %900 = vmatpush1.bf16.msra.mxu1 %v4724_v61  ;;  %v4746_v61 = vld [vmem:[#allocation2 + $0x80] ss:$16 sps:$4 sm:$0xff]   ;;  %6690 = vst [vmem:[#allocation46_spill] sm:$0xff] %v4753_v63 }
  0x73   :  { %901 = vmatprep.subr.bf16.mxu1 %v4732_v54  ;;  %6688 = vst [vmem:[#allocation44_spill] sm:$0xff] %v4746_v61  ;;  %v4755_v54 = vld [vmem:[#allocation2 + $0xac] ss:$16 sps:$4 sm:$0xff]  }
  0x74   :  { %861 = vmatpush1.bf16.msra.mxu0 %v4734_v59  ;;  %6691 = vst [vmem:[#allocation47_spill] sm:$0xff] %v4755_v54  ;;  %v4757_v59 = vld [vmem:[#allocation2 + $0xa0] ss:$16 sps:$4 sm:$0xff]  }
  0x75   :  { %862 = vmatprep.subr.bf16.mxu0 %v4742_v57  ;;  %6692 = vst [vmem:[#allocation48_spill] sm:$0xff] %v4757_v59  ;;  %v4766_v57 = vld [vmem:[#allocation2 + $0xcc] ss:$16 sps:$4 sm:$0xff]  }
  0x76   :  { %902 = vmatpush1.bf16.msra.mxu1 %v4736_v0  ;;  %v4760_v0 = vld [vmem:[#allocation2 + $0xa8] ss:$16 sps:$4 sm:$0xff]   ;;  %6695 = vst [vmem:[#allocation51_spill] sm:$0xff] %v4766_v57 }
  0x77   :  { %903 = vmatprep.subr.bf16.mxu1 %v4744_v60  ;;  %6693 = vst [vmem:[#allocation49_spill] sm:$0xff] %v4760_v0  ;;  %v4773_v60 = vld [vmem:[#allocation2 + $0xc8] ss:$16 sps:$4 sm:$0xff]  }
  0x78   :  { %863 = vmatpush1.bf16.msra.mxu0 %v4746_v61  ;;  %v4769_v61 = vld [vmem:[#allocation2 + $0xc0] ss:$16 sps:$4 sm:$0xff]   ;;  %6697 = vst [vmem:[#allocation53_spill] sm:$0xff] %v4773_v60 }
  0x79   :  { %864 = vmatprep.subr.bf16.mxu0 %v4753_v63  ;;  %6696 = vst [vmem:[#allocation52_spill] sm:$0xff] %v4769_v61 }
  0x7a   :  { %904 = vmatpush1.bf16.msra.mxu1 %v4748_v62  ;;  %v4775_v62 = vld [vmem:[#allocation2 + $0xe4] ss:$16 sps:$4 sm:$0xff]  }
  0x7b   :  { %905 = vmatprep.subr.bf16.mxu1 %v4755_v54  ;;  %6698 = vst [vmem:[#allocation54_spill] sm:$0xff] %v4775_v62  ;;  %v4781_v54 = vld [vmem:[#allocation2 + $0xe0] ss:$16 sps:$4 sm:$0xff]  }
  0x7c   :  { %865 = vmatpush1.bf16.msra.mxu0 %v4757_v59  ;;  %6700 = vst [vmem:[#allocation56_spill] sm:$0xff] %v4781_v54  ;;  %v4785_v59 = vld [vmem:[#allocation2 + $0xe8] ss:$16 sps:$4 sm:$0xff]  }
  0x7d   :  { %866 = vmatprep.subr.bf16.mxu0 %v4762_v53  ;;  %6701 = vst [vmem:[#allocation57_spill] sm:$0xff] %v4785_v59 }
  0x7e   :  { %906 = vmatpush1.bf16.msra.mxu1 %v4760_v0 }
  0x7f   :  { %907 = vmatprep.subr.bf16.mxu1 %v4766_v57 }
  0x80   :  { %867 = vmatpush1.bf16.msra.mxu0 %v4769_v61  ;;  %v355_v61 = vld [vmem:[%s6371_s0] sm:$0x3] }
  0x81   :  { %868 = vmatprep.subr.bf16.mxu0 %v4775_v62  ;;  %v356_v62 = vld [vmem:[%s6371_s0 + $0x8] sm:$0x3] }
  0x82   :  { %908 = vmatpush1.bf16.msra.mxu1 %v4773_v60 }
  0x83   :  { %909 = vmatprep.subr.bf16.mxu1 %v4778_v56 }
  0x84   :  { %869 = vmatpush1.bf16.msra.mxu0 %v4781_v54 }
  0x85   :  { %965 = vmatprep.subr.bf16.mxu0 %v4398_v1 }
  0x86   :  { %910 = vmatpush1.bf16.msra.mxu1 %v4785_v59 }
  0x87   :  { %1006 = vmatprep.subr.bf16.mxu1 %v4411_v6  ;;  %v358_v6 = vld [vmem:[%s6371_s0 + $0x18] sm:$0x3] }
 0x13a   :  { %v585_v60 = vpop.f32.mrb[4].mxu0 }
 0x13b   :  { %v633_v57 = vadd.f32 %v585_v60, %v355_v61  ;;  %v587_v53 = vpop.f32.mrb[5].mxu0  ;;  %v357_v60 = vld [vmem:[%s6371_s0 + $0x10] sm:$0x3] }
 0x13c   :  { %v634_v56 = vadd.f32 %v587_v53, %v356_v62  ;;  %v589_v0 = vpop.f32.mrb[6].mxu0  ;;  %v626_v1 = vpop.f32.mrb[4].mxu1 }
 0x13d   :  { %v3423_v54 = vmul.f32 -1.442695, %v633_v57  ;;  %v590_v63 = vpop.f32.mrb[7].mxu0  ;;  %v628_v50 = vpop.f32.mrb[5].mxu1  ;;  %v635_v0 = vadd.f32 %v626_v1, %v357_v60 }
 0x13e   :  { %v3424_v59 = vmul.f32 -1.442695, %v634_v56  ;;  %v636_v55 = vadd.f32 %v628_v50, %v358_v6  ;;  %v630_v49 = vpop.f32.mrb[6].mxu1 }
 0x13f   :  { %3828 = vpow2.f32 %v3423_v54  ;;  %v631_v52 = vpop.f32.mrb[7].mxu1 }
 0x140   :  { %3830 = vpow2.f32 %v3424_v59  ;;  %v3425_v53 = vmul.f32 -1.442695, %v636_v55 }
 0x142   :  { %3832 = vpow2.f32 %v3425_v53 }
 0x143   :  { %3834 = vtanh.f32 %v635_v0 }
 0x149   :  { %v3829_v57 = vpop.eup %3828 }
 0x14a   :  { %v3831_v56 = vpop.eup %3830  ;;  %v643_v61 = vadd.f32 1.0, %v3829_v57 }
 0x14b   :  { %v644_v62 = vadd.f32 1.0, %v3831_v56 }
 0x14c   :  { %3836 = vrcp.f32 %v643_v61  ;;  %v3833_v54 = vpop.eup %3832 }
 0x14d   :  { %3838 = vrcp.f32 %v644_v62  ;;  %v3835_v59 = vpop.eup %3834  ;;  %v657_v6 = vadd.f32 1.0, %v3833_v54 }
 0x14f   :  { %3840 = vrcp.f32 %v657_v6 }
 0x156   :  { %v3837_v63 = vpop.eup %3836 }
 0x157   :  { %v3839_v49 = vpop.eup %3838  ;;  %v651_v50 = vmul.f32 %v3837_v63, %v3835_v59 }
 0x158   :  { %v650_v52 = vmul.f32 0.0, %v3839_v49 }
 0x159   :  { %v3841_v1 = vpop.eup %3840 }
 0x15a   :  { %v4804_v46 = vadd.f32 %v651_v50, %v650_v52 }
 0x15c   :  { %3842 = vtanh.f32 %v4804_v46 }
 0x166   :  { %v3843_v55 = vpop.eup %3842 }
 0x167   :  { %v660_v60 = vmul.f32 %v3843_v55, %v3841_v1 }
 0x169   :  { %v4807_v53 = vpack.c.bf16 %v660_v60, %v660_v60 }
 0x16b   :  { %887 = vmatmul.mubr.bf16.vlgmr.msra.gmra.mrb[0].mxu0 %v4807_v53  ;;  %928 = vmatmul.mubr.bf16.vlgmr.msra.gmra.mrb[0].mxu1 %v4807_v53 }
 0x16c   :  { %966 = vmatpush1.bf16.msra.mxu0 %v4400_v2  ;;  %1007 = vmatpush1.bf16.msra.mxu1 %v4413_v7  ;;  %v57_v2 = vlaneseq }
 0x16d   :  { %967 = vmatprep.subr.bf16.mxu0 %v4403_v3  ;;  %1008 = vmatprep.subr.bf16.mxu1 %v4423_v10 }
 0x16e   :  { %997 = vmatprep.mubr.bf16.mxu0 %v6669_v58  ;;  %1038 = vmatprep.mubr.bf16.mxu1 %v6669_v58  ;;  %v58_v3 = vshrl.u32 %v57_v2, 7 }
 0x170   :  { %968 = vmatpush1.bf16.msra.mxu0 %v4406_v4  ;;  %1009 = vmatpush1.bf16.msra.mxu1 %v4425_v11  ;;  %v59_v4 = vsub.s32 0, %v58_v3  ;;  %v63_v7 = vsub.s32 1, %v58_v3  ;;  %v67_v54 = vsub.s32 2, %v58_v3 }
 0x171   :  { %969 = vmatprep.subr.bf16.mxu0 %v4409_v5  ;;  %1010 = vmatprep.subr.bf16.mxu1 %v4433_v14  ;;  %v55_v5 = vld [vmem:[%s6375_s4] sm:$0xf] }
 0x172   :  { %v4857_v63 = vrot.slane %v55_v5, %v67_v54  ;;  %v6712_v54 = vld [vmem:[#allocation21_spill] sm:$0xff] }
 0x174   :  { %970 = vmatpush1.bf16.msra.mxu0 %v4416_v8  ;;  %1011 = vmatpush1.bf16.msra.mxu1 %v4437_v15  ;;  %v4848_v8 = vrot.slane %v55_v5, %v59_v4 }
 0x175   :  { %971 = vmatprep.subr.bf16.mxu0 %v4420_v9  ;;  %1012 = vmatprep.subr.bf16.mxu1 %v4440_v16  ;;  %v4850_v9 = vrot.slane %v55_v5, %v63_v7 }
 0x176   :  { %6702 = vst [vmem:[#allocation58_spill] sm:$0xff] %v4848_v8 }
 0x178   :  { %972 = vmatpush1.bf16.msra.mxu0 %v4429_v12  ;;  %1013 = vmatpush1.bf16.msra.mxu1 %v4449_v19  ;;  %v71_v12 = vsub.s32 3, %v58_v3 }
 0x179   :  { %973 = vmatprep.subr.bf16.mxu0 %v4431_v13  ;;  %1014 = vmatprep.subr.bf16.mxu1 %v4452_v20 }
 0x17a   :  { %v4854_v62 = vrot.slane %v55_v5, %v71_v12 }
 0x17c   :  { %974 = vmatpush1.bf16.msra.mxu0 %v4443_v17  ;;  %1015 = vmatpush1.bf16.msra.mxu1 %v4461_v23 }
 0x17d   :  { %975 = vmatprep.subr.bf16.mxu0 %v4446_v18  ;;  %1016 = vmatprep.subr.bf16.mxu1 %v4464_v24 }
 0x180   :  { %976 = vmatpush1.bf16.msra.mxu0 %v4455_v21  ;;  %1017 = vmatpush1.bf16.msra.mxu1 %v4473_v27 }
 0x181   :  { %977 = vmatprep.subr.bf16.mxu0 %v4457_v22  ;;  %1018 = vmatprep.subr.bf16.mxu1 %v4476_v28 }
 0x184   :  { %978 = vmatpush1.bf16.msra.mxu0 %v4467_v25  ;;  %1019 = vmatpush1.bf16.msra.mxu1 %v4488_v31 }
 0x185   :  { %979 = vmatprep.subr.bf16.mxu0 %v4470_v26  ;;  %1020 = vmatprep.subr.bf16.mxu1 %v4491_v32 }
 0x188   :  { %980 = vmatpush1.bf16.msra.mxu0 %v4479_v29  ;;  %1021 = vmatpush1.bf16.msra.mxu1 %v4506_v35 }
 0x189   :  { %1055 = vmatprep.subr.bf16.mxu0 %v4484_v30  ;;  %1096 = vmatprep.subr.bf16.mxu1 %v4512_v36 }
 0x23e   :  { %v888_v10 = vpop.f32.mrb[0].mxu0  ;;  %v929_v11 = vpop.f32.mrb[0].mxu1 }
 0x23f   :  { %v3580_v13 = vadd.f32 %v888_v10, %v4848_v8  ;;  %v890_v14 = vpop.f32.mrb[1].mxu0  ;;  %v931_v15 = vpop.f32.mrb[1].mxu1  ;;  %v3582_v49 = vadd.f32 %v929_v11, %v4857_v63 }
 0x240   :  { %v3581_v16 = vadd.f32 %v890_v14, %v4850_v9  ;;  %v892_v17 = vpop.f32.mrb[2].mxu0  ;;  %v933_v18 = vpop.f32.mrb[2].mxu1  ;;  %v3583_v59 = vadd.f32 %v931_v15, %v4854_v62 }
 0x241   :  { %v3458_v0 = vmul.f32 -1.442695, %v3580_v13  ;;  %v893_v57 = vpop.f32.mrb[3].mxu0  ;;  %v934_v56 = vpop.f32.mrb[3].mxu1  ;;  %v6706_v17 = vld [vmem:[#allocation16_spill] sm:$0xff] }
 0x242   :  { %v3459_v61 = vmul.f32 -1.442695, %v3581_v16  ;;  %v3460_v6 = vmul.f32 -1.442695, %v3583_v59  ;;  %v6705_v16 = vld [vmem:[#allocation11_spill] sm:$0xff]  ;;  %v6707_v18 = vld [vmem:[#allocation12_spill] sm:$0xff] }
 0x243   :  { %3844 = vpow2.f32 %v3458_v0  ;;  %v6708_v0 = vld [vmem:[#allocation17_spill] sm:$0xff]  ;;  %v6709_v57 = vld [vmem:[#allocation14_spill] sm:$0xff]  ;;  %v6710_v56 = vld [vmem:[#allocation20_spill] sm:$0xff] }
 0x244   :  { %3846 = vpow2.f32 %v3459_v61  ;;  %v6711_v61 = vld [vmem:[#allocation15_spill] sm:$0xff]  ;;  %v6713_v59 = vld [vmem:[#allocation18_spill] sm:$0xff] }
 0x245   :  { %3848 = vpow2.f32 %v3460_v6  ;;  %v6714_v6 = vld [vmem:[#allocation23_spill] sm:$0xff] }
 0x246   :  { %3850 = vtanh.f32 %v3582_v49  ;;  %v6715_v49 = vld [vmem:[#allocation19_spill] sm:$0xff] }
 0x24d   :  { %v3845_v50 = vpop.eup %3844 }
 0x24e   :  { %v3847_v52 = vpop.eup %3846  ;;  %v946_v1 = vadd.f32 1.0, %v3845_v50  ;;  %v6716_v50 = vld [vmem:[#allocation24_spill] sm:$0xff] }
 0x24f   :  { %v947_v55 = vadd.f32 1.0, %v3847_v52  ;;  %v3849_v60 = vpop.eup %3848  ;;  %v6717_v52 = vld [vmem:[#allocation22_spill] sm:$0xff] }
 0x250   :  { %3852 = vrcp.f32 %v946_v1  ;;  %v3851_v2 = vpop.eup %3850  ;;  %v960_v10 = vadd.f32 1.0, %v3849_v60  ;;  %v6718_v1 = vld [vmem:[#allocation25_spill] sm:$0xff]  ;;  %v6720_v60 = vld [vmem:[#allocation27_spill] sm:$0xff] }
 0x251   :  { %3854 = vrcp.f32 %v947_v55  ;;  %v6719_v55 = vld [vmem:[#allocation26_spill] sm:$0xff] }
 0x252   :  { %3856 = vrcp.f32 %v960_v10  ;;  %v6725_v10 = vld [vmem:[#allocation32_spill] sm:$0xff] }
 0x25a   :  { %v3853_v4 = vpop.eup %3852 }
 0x25b   :  { %v3855_v3 = vpop.eup %3854  ;;  %v954_v7 = vmul.f32 %v3853_v4, %v3851_v2  ;;  %v6721_v2 = vld [vmem:[#allocation28_spill] sm:$0xff]  ;;  %v6722_v4 = vld [vmem:[#allocation29_spill] sm:$0xff] }
 0x25c   :  { %v953_v12 = vmul.f32 0.0, %v3855_v3  ;;  %v3857_v11 = vpop.eup %3856  ;;  %v6723_v3 = vld [vmem:[#allocation30_spill] sm:$0xff] }
 0x25e   :  { %v4860_v5 = vadd.f32 %v954_v7, %v953_v12  ;;  %v6724_v7 = vld [vmem:[#allocation31_spill] sm:$0xff]  ;;  %v6726_v12 = vld [vmem:[#allocation33_spill] sm:$0xff] }
 0x260   :  { %3858 = vtanh.f32 %v4860_v5 }
 0x26a   :  { %v3859_v13 = vpop.eup %3858 }
 0x26b   :  { %v963_v14 = vmul.f32 %v3859_v13, %v3857_v11  ;;  %v6727_v11 = vld [vmem:[#allocation34_spill] sm:$0xff]  ;;  %v6728_v13 = vld [vmem:[#allocation35_spill] sm:$0xff] }
 0x26d   :  { %v964_v15 = vpack.c.bf16 %v963_v14, %v963_v14  ;;  %v6730_v14 = vld [vmem:[#allocation37_spill] sm:$0xff] }
 0x26f   :  { %998 = vmatmul.mubr.bf16.vlgmr.msra.gmra.mrb[8].mxu0 %v964_v15  ;;  %1039 = vmatmul.mubr.bf16.vlgmr.msra.gmra.mrb[8].mxu1 %v964_v15  ;;  %v6731_v15 = vld [vmem:[#allocation38_spill] sm:$0xff] }
 0x270   :  { %1056 = vmatpush1.bf16.msra.mxu0 %v4497_v33  ;;  %1097 = vmatpush1.bf16.msra.mxu1 %v4532_v39  ;;  %v6703_v33 = vld [vmem:[#allocation10_spill] sm:$0xff] }
 0x271   :  { %1057 = vmatprep.subr.bf16.mxu0 %v4503_v34  ;;  %1098 = vmatprep.subr.bf16.mxu1 %v4538_v40  ;;  %v6704_v34 = vld [vmem:[#allocation13_spill] sm:$0xff] }
 0x272   :  { %1087 = vmatprep.mubr.bf16.mxu0 %v6669_v58  ;;  %1128 = vmatprep.mubr.bf16.mxu1 %v6669_v58 }
 0x274   :  { %1058 = vmatpush1.bf16.msra.mxu0 %v4519_v37  ;;  %1099 = vmatpush1.bf16.msra.mxu1 %v4557_v43 }
 0x275   :  { %1059 = vmatprep.subr.bf16.mxu0 %v4524_v38  ;;  %1100 = vmatprep.subr.bf16.mxu1 %v4563_v44 }
 0x278   :  { %1060 = vmatpush1.bf16.msra.mxu0 %v4544_v41  ;;  %1101 = vmatpush1.bf16.msra.mxu1 %v4579_v47 }
 0x279   :  { %1061 = vmatprep.subr.bf16.mxu0 %v4549_v42  ;;  %1102 = vmatprep.subr.bf16.mxu1 %v4585_v48 }
 0x27c   :  { %1062 = vmatpush1.bf16.msra.mxu0 %v4569_v45  ;;  %1103 = vmatpush1.bf16.msra.mxu1 %v4603_v51 }
 0x27d   :  { %1063 = vmatprep.subr.bf16.mxu0 %v6703_v33  ;;  %1104 = vmatprep.subr.bf16.mxu1 %v6704_v34 }
 0x280   :  { %1064 = vmatpush1.bf16.msra.mxu0 %v6705_v16  ;;  %1105 = vmatpush1.bf16.msra.mxu1 %v6706_v17 }
 0x281   :  { %1065 = vmatprep.subr.bf16.mxu0 %v6707_v18  ;;  %1106 = vmatprep.subr.bf16.mxu1 %v6708_v0 }
 0x284   :  { %1066 = vmatpush1.bf16.msra.mxu0 %v6709_v57  ;;  %1107 = vmatpush1.bf16.msra.mxu1 %v6710_v56 }
 0x285   :  { %1067 = vmatprep.subr.bf16.mxu0 %v6711_v61  ;;  %1108 = vmatprep.subr.bf16.mxu1 %v6712_v54 }
 0x288   :  { %1068 = vmatpush1.bf16.msra.mxu0 %v6713_v59  ;;  %1109 = vmatpush1.bf16.msra.mxu1 %v6714_v6 }
 0x289   :  { %1069 = vmatprep.subr.bf16.mxu0 %v6715_v49  ;;  %1110 = vmatprep.subr.bf16.mxu1 %v6716_v50 }
 0x28c   :  { %1070 = vmatpush1.bf16.msra.mxu0 %v6717_v52  ;;  %1111 = vmatpush1.bf16.msra.mxu1 %v6718_v1 }
 0x28d   :  { %1184 = vmatprep.subr.bf16.mxu0 %v6719_v55  ;;  %1225 = vmatprep.subr.bf16.mxu1 %v6720_v60 }
 0x28f   :  { %1088 = vmatmul.mubr.bf16.vlgmr.msra.gmra.mrb[12].mxu0 %v4807_v53  ;;  %1129 = vmatmul.mubr.bf16.vlgmr.msra.gmra.mrb[12].mxu1 %v4807_v53  ;;  %v6729_v53 = vld [vmem:[#allocation36_spill] sm:$0xff] }
 0x290   :  { %1185 = vmatpush1.bf16.msra.mxu0 %v6721_v2  ;;  %1226 = vmatpush1.bf16.msra.mxu1 %v6722_v4  ;;  %v6734_v4 = vld [vmem:[#allocation41_spill] sm:$0xff]  ;;  %v6735_v2 = vld [vmem:[#allocation42_spill] sm:$0xff] }
 0x291   :  { %1186 = vmatprep.subr.bf16.mxu0 %v6723_v3  ;;  %1227 = vmatprep.subr.bf16.mxu1 %v6724_v7  ;;  %v6732_v3 = vld [vmem:[#allocation39_spill] sm:$0xff]  ;;  %v6733_v7 = vld [vmem:[#allocation40_spill] sm:$0xff] }
 0x292   :  { %1216 = vmatprep.mubr.bf16.mxu0 %v6669_v58  ;;  %1257 = vmatprep.mubr.bf16.mxu1 %v6669_v58 }
 0x294   :  { %1187 = vmatpush1.bf16.msra.mxu0 %v6725_v10  ;;  %1228 = vmatpush1.bf16.msra.mxu1 %v6726_v12  ;;  %v6736_v10 = vld [vmem:[#allocation43_spill] sm:$0xff]  ;;  %v6737_v12 = vld [vmem:[#allocation44_spill] sm:$0xff] }
 0x295   :  { %1188 = vmatprep.subr.bf16.mxu0 %v6727_v11  ;;  %1229 = vmatprep.subr.bf16.mxu1 %v6728_v13  ;;  %v6738_v11 = vld [vmem:[#allocation45_spill] sm:$0xff]  ;;  %v6739_v13 = vld [vmem:[#allocation46_spill] sm:$0xff] }
 0x298   :  { %1189 = vmatpush1.bf16.msra.mxu0 %v6729_v53  ;;  %1230 = vmatpush1.bf16.msra.mxu1 %v6730_v14  ;;  %v6740_v53 = vld [vmem:[#allocation47_spill] sm:$0xff]  ;;  %v6741_v14 = vld [vmem:[#allocation48_spill] sm:$0xff] }
 0x299   :  { %1190 = vmatprep.subr.bf16.mxu0 %v6731_v15  ;;  %1231 = vmatprep.subr.bf16.mxu1 %v6732_v3  ;;  %v6742_v15 = vld [vmem:[#allocation49_spill] sm:$0xff]  ;;  %v6743_v3 = vld [vmem:[#allocation50_spill] sm:$0xff] }
 0x29c   :  { %1191 = vmatpush1.bf16.msra.mxu0 %v6733_v7  ;;  %1232 = vmatpush1.bf16.msra.mxu1 %v6734_v4  ;;  %v6744_v7 = vld [vmem:[#allocation51_spill] sm:$0xff]  ;;  %v6745_v4 = vld [vmem:[#allocation52_spill] sm:$0xff] }
 0x29d   :  { %1192 = vmatprep.subr.bf16.mxu0 %v6735_v2  ;;  %1233 = vmatprep.subr.bf16.mxu1 %v6736_v10  ;;  %v6746_v2 = vld [vmem:[#allocation53_spill] sm:$0xff]  ;;  %v6747_v10 = vld [vmem:[#allocation54_spill] sm:$0xff] }
 0x2a0   :  { %1193 = vmatpush1.bf16.msra.mxu0 %v6737_v12  ;;  %1234 = vmatpush1.bf16.msra.mxu1 %v6738_v11  ;;  %v6748_v12 = vld [vmem:[#allocation55_spill] sm:$0xff]  ;;  %v6749_v11 = vld [vmem:[#allocation56_spill] sm:$0xff] }
 0x2a1   :  { %1194 = vmatprep.subr.bf16.mxu0 %v6739_v13  ;;  %1235 = vmatprep.subr.bf16.mxu1 %v6740_v53  ;;  %v6750_v13 = vld [vmem:[#allocation57_spill] sm:$0xff]  ;;  %v6751_v53 = vld [vmem:[#allocation8_spill] sm:$0xff] }
 0x2a4   :  { %1195 = vmatpush1.bf16.msra.mxu0 %v6741_v14  ;;  %1236 = vmatpush1.bf16.msra.mxu1 %v6742_v15  ;;  %v6752_v14 = vld [vmem:[#allocation9_spill] sm:$0xff] }
 0x2a5   :  { %1196 = vmatprep.subr.bf16.mxu0 %v6743_v3  ;;  %1237 = vmatprep.subr.bf16.mxu1 %v6744_v7  ;;  %v1051_v7 = vld [vmem:[%s6371_s0] sm:$0xc] }
 0x2a8   :  { %1197 = vmatpush1.bf16.msra.mxu0 %v6745_v4  ;;  %1238 = vmatpush1.bf16.msra.mxu1 %v6746_v2 }
 0x2a9   :  { %1198 = vmatprep.subr.bf16.mxu0 %v6747_v10  ;;  %1239 = vmatprep.subr.bf16.mxu1 %v6748_v12  ;;  %v1052_v10 = vld [vmem:[%s6371_s0 + $0x8] sm:$0xc] }
 0x2ac   :  { %1199 = vmatpush1.bf16.msra.mxu0 %v6749_v11  ;;  %1240 = vmatpush1.bf16.msra.mxu1 %v6750_v13 }
 0x2ad   :  { %1295 = vmatprep.subr.bf16.mxu0 %v6751_v53  ;;  %1336 = vmatprep.subr.bf16.mxu1 %v6752_v14 }
 0x362   :  { %v1089_v3 = vpop.f32.mrb[12].mxu0  ;;  %v1130_v4 = vpop.f32.mrb[12].mxu1 }
 0x363   :  { %v1141_v15 = vrot.slane %v1089_v3, 6  ;;  %v1091_v12 = vpop.f32.mrb[13].mxu0  ;;  %v1132_v2 = vpop.f32.mrb[13].mxu1  ;;  %v1054_v3 = vld [vmem:[%s6371_s0 + $0x18] sm:$0xc]  ;;  %v1143_v59 = vrot.slane %v1130_v4, 6 }
 0x364   :  { %v1142_v11 = vrot.slane %v1091_v12, 6  ;;  %v1093_v60 = vpop.f32.mrb[14].mxu0  ;;  %v1134_v13 = vpop.f32.mrb[14].mxu1  ;;  %v1144_v49 = vrot.slane %v1132_v2, 6 }
 0x365   :  { %v1149_v55 = vadd.f32 %v1141_v15, %v1051_v7  ;;  %v1094_v53 = vpop.f32.mrb[15].mxu0  ;;  %v1135_v1 = vpop.f32.mrb[15].mxu1  ;;  %v1053_v60 = vld [vmem:[%s6371_s0 + $0x10] sm:$0xc] }
 0x366   :  { %v1150_v14 = vadd.f32 %v1142_v11, %v1052_v10  ;;  %v1152_v6 = vadd.f32 %v1144_v49, %v1054_v3  ;;  %v1151_v7 = vadd.f32 %v1143_v59, %v1053_v60  ;;  %v1167_v49 = vrot.slane %v4804_v46, 6  ;;  %v4953_v46 = vld [vmem:[#allocation4] ss:$16 sps:$4 sm:$0xff]  }
 0x367   :  { %v3461_v52 = vmul.f32 -1.442695, %v1149_v55 }
 0x368   :  { %v3462_v50 = vmul.f32 -1.442695, %v1150_v14  ;;  %v3463_v12 = vmul.f32 -1.442695, %v1152_v6 }
 0x369   :  { %3860 = vpow2.f32 %v3461_v52 }
 0x36a   :  { %3862 = vpow2.f32 %v3462_v50 }
 0x36b   :  { %3864 = vpow2.f32 %v3463_v12 }
 0x36c   :  { %3866 = vtanh.f32 %v1151_v7  ;;  %v4956_v7 = vld [vmem:[#allocation4 + $0x8] ss:$16 sps:$4 sm:$0xff]  }
 0x373   :  { %v3861_v13 = vpop.eup %3860 }
 0x374   :  { %v3863_v1 = vpop.eup %3862  ;;  %v1159_v10 = vadd.f32 1.0, %v3861_v13  ;;  %v4959_v13 = vld [vmem:[#allocation4 + $0x24] ss:$16 sps:$4 sm:$0xff]  }
 0x375   :  { %v1160_v55 = vadd.f32 1.0, %v3863_v1  ;;  %v3865_v52 = vpop.eup %3864  ;;  %v4962_v1 = vld [vmem:[#allocation4 + $0x2c] ss:$16 sps:$4 sm:$0xff]  }
 0x376   :  { %3868 = vrcp.f32 %v1159_v10  ;;  %v3867_v2 = vpop.eup %3866  ;;  %v1176_v15 = vadd.f32 1.0, %v3865_v52  ;;  %v4967_v10 = vld [vmem:[#allocation4 + $0x20] ss:$16 sps:$4 sm:$0xff]   ;;  %v4973_v52 = vld [vmem:[#allocation4 + $0x44] ss:$16 sps:$4 sm:$0xff]  }
 0x377   :  { %3870 = vrcp.f32 %v1160_v55  ;;  %v4970_v55 = vld [vmem:[#allocation4 + $0x28] ss:$16 sps:$4 sm:$0xff]  }
 0x378   :  { %3872 = vrcp.f32 %v1176_v15  ;;  %v4991_v15 = vld [vmem:[#allocation4 + $0x60] ss:$16 sps:$4 sm:$0xff]  }
 0x380   :  { %v3869_v11 = vpop.eup %3868 }
 0x381   :  { %v3871_v50 = vpop.eup %3870  ;;  %v1170_v4 = vmul.f32 %v3869_v11, %v3867_v2  ;;  %v4976_v2 = vld [vmem:[#allocation4 + $0x4c] ss:$16 sps:$4 sm:$0xff]   ;;  %v4979_v11 = vld [vmem:[#allocation4 + $0x40] ss:$16 sps:$4 sm:$0xff]  }
 0x382   :  { %v1169_v53 = vmul.f32 %v3871_v50, %v1167_v49  ;;  %v3873_v59 = vpop.eup %3872  ;;  %v4982_v49 = vld [vmem:[#allocation4 + $0x48] ss:$16 sps:$4 sm:$0xff]   ;;  %v4985_v50 = vld [vmem:[#allocation4 + $0x64] ss:$16 sps:$4 sm:$0xff]  }
 0x384   :  { %v4946_v14 = vadd.f32 %v1170_v4, %v1169_v53  ;;  %v4988_v4 = vld [vmem:[#allocation4 + $0x6c] ss:$16 sps:$4 sm:$0xff]   ;;  %v4995_v53 = vld [vmem:[#allocation4 + $0x84] ss:$16 sps:$4 sm:$0xff]  }
 0x386   :  { %3874 = vtanh.f32 %v4946_v14 }
 0x390   :  { %v3875_v6 = vpop.eup %3874 }
 0x391   :  { %v1179_v3 = vmul.f32 %v3875_v6, %v3873_v59  ;;  %v4999_v59 = vld [vmem:[#allocation4 + $0x80] ss:$16 sps:$4 sm:$0xff]   ;;  %v5003_v6 = vld [vmem:[#allocation4 + $0xa4] ss:$16 sps:$4 sm:$0xff]  }
 0x393   :  { %v1180_v60 = vpack.c.bf16 %v1179_v3, %v1179_v3 }
 0x395   :  { %v4949_v12 = vrot.slane %v1180_v60, 1 }
 0x397   :  { %1217 = vmatmul.mubr.bf16.vlgmr.msra.gmra.mrb[8].mxu0 %v4949_v12  ;;  %1258 = vmatmul.mubr.bf16.vlgmr.msra.gmra.mrb[8].mxu1 %v4949_v12 }
 0x398   :  { %1296 = vmatpush1.bf16.msra.mxu0 %v4953_v46  ;;  %1337 = vmatpush1.bf16.msra.mxu1 %v4956_v7 }
 0x399   :  { %1297 = vmatprep.subr.bf16.mxu0 %v4959_v13  ;;  %1338 = vmatprep.subr.bf16.mxu1 %v4962_v1 }
 0x39a   :  { %1327 = vmatprep.mubr.bf16.mxu0 %v6669_v58  ;;  %1368 = vmatprep.mubr.bf16.mxu1 %v6669_v58 }
 0x39c   :  { %1298 = vmatpush1.bf16.msra.mxu0 %v4967_v10  ;;  %1339 = vmatpush1.bf16.msra.mxu1 %v4970_v55 }
 0x39d   :  { %1299 = vmatprep.subr.bf16.mxu0 %v4973_v52  ;;  %1340 = vmatprep.subr.bf16.mxu1 %v4976_v2 }
 0x3a0   :  { %1300 = vmatpush1.bf16.msra.mxu0 %v4979_v11  ;;  %1341 = vmatpush1.bf16.msra.mxu1 %v4982_v49 }
 0x3a1   :  { %1301 = vmatprep.subr.bf16.mxu0 %v4985_v50  ;;  %1342 = vmatprep.subr.bf16.mxu1 %v4988_v4 }
 0x3a4   :  { %1302 = vmatpush1.bf16.msra.mxu0 %v4991_v15  ;;  %1343 = vmatpush1.bf16.msra.mxu1 %v4449_v19 }
 0x3a5   :  { %1303 = vmatprep.subr.bf16.mxu0 %v4995_v53  ;;  %1344 = vmatprep.subr.bf16.mxu1 %v4452_v20 }
 0x3a8   :  { %1304 = vmatpush1.bf16.msra.mxu0 %v4999_v59  ;;  %1345 = vmatpush1.bf16.msra.mxu1 %v4461_v23 }
 0x3a9   :  { %1305 = vmatprep.subr.bf16.mxu0 %v5003_v6  ;;  %1346 = vmatprep.subr.bf16.mxu1 %v4464_v24 }
 0x3ac   :  { %1306 = vmatpush1.bf16.msra.mxu0 %v4455_v21  ;;  %1347 = vmatpush1.bf16.msra.mxu1 %v4473_v27 }
 0x3ad   :  { %1307 = vmatprep.subr.bf16.mxu0 %v4457_v22  ;;  %1348 = vmatprep.subr.bf16.mxu1 %v4476_v28 }
 0x3b0   :  { %1308 = vmatpush1.bf16.msra.mxu0 %v4467_v25  ;;  %1349 = vmatpush1.bf16.msra.mxu1 %v4488_v31 }
 0x3b1   :  { %1309 = vmatprep.subr.bf16.mxu0 %v4470_v26  ;;  %1350 = vmatprep.subr.bf16.mxu1 %v4491_v32 }
 0x3b4   :  { %1310 = vmatpush1.bf16.msra.mxu0 %v4479_v29  ;;  %1351 = vmatpush1.bf16.msra.mxu1 %v4506_v35 }
 0x3b5   :  { %1385 = vmatprep.subr.bf16.mxu0 %v4484_v30  ;;  %1426 = vmatprep.subr.bf16.mxu1 %v4512_v36 }
 0x46a   :  { %v1218_v19 = vpop.f32.mrb[8].mxu0  ;;  %v1259_v20 = vpop.f32.mrb[8].mxu1 }
 0x46b   :  { %v3584_v21 = vadd.f32 %v1218_v19, %v4848_v8  ;;  %v1220_v22 = vpop.f32.mrb[9].mxu0  ;;  %v1261_v23 = vpop.f32.mrb[9].mxu1  ;;  %v3586_v35 = vadd.f32 %v1259_v20, %v4857_v63 }
 0x46c   :  { %v3585_v24 = vadd.f32 %v1220_v22, %v4850_v9  ;;  %v1222_v25 = vpop.f32.mrb[10].mxu0  ;;  %v1263_v26 = vpop.f32.mrb[10].mxu1  ;;  %v3587_v30 = vadd.f32 %v1261_v23, %v4854_v62 }
 0x46d   :  { %v3464_v27 = vmul.f32 -1.442695, %v3584_v21  ;;  %v1223_v28 = vpop.f32.mrb[11].mxu0  ;;  %v1264_v31 = vpop.f32.mrb[11].mxu1 }
 0x46e   :  { %v3465_v29 = vmul.f32 -1.442695, %v3585_v24  ;;  %v3466_v32 = vmul.f32 -1.442695, %v3587_v30 }
 0x46f   :  { %3876 = vpow2.f32 %v3464_v27 }
 0x470   :  { %3878 = vpow2.f32 %v3465_v29 }
 0x471   :  { %3880 = vpow2.f32 %v3466_v32  ;;  %v5030_v32 = vld [vmem:[%s6372_s1] ss:$16 sps:$4 sm:$0xff]  }
 0x472   :  { %3882 = vtanh.f32 %v3586_v35  ;;  %v6776_v35 = vld [vmem:[#allocation43_spill] sm:$0xff] }
 0x479   :  { %v3877_v36 = vpop.eup %3876 }
 0x47a   :  { %v3879_v3 = vpop.eup %3878  ;;  %v1276_v60 = vadd.f32 1.0, %v3877_v36  ;;  %v6777_v36 = vld [vmem:[#allocation44_spill] sm:$0xff] }
 0x47b   :  { %v1277_v19 = vadd.f32 1.0, %v3879_v3  ;;  %v3881_v22 = vpop.eup %3880  ;;  %v6778_v3 = vld [vmem:[#allocation45_spill] sm:$0xff] }
 0x47c   :  { %3884 = vrcp.f32 %v1276_v60  ;;  %v3883_v21 = vpop.eup %3882  ;;  %v1290_v27 = vadd.f32 1.0, %v3881_v22  ;;  %v6779_v60 = vld [vmem:[#allocation46_spill] sm:$0xff]  ;;  %v6781_v22 = vld [vmem:[#allocation48_spill] sm:$0xff] }
 0x47d   :  { %3886 = vrcp.f32 %v1277_v19  ;;  %v6780_v19 = vld [vmem:[#allocation47_spill] sm:$0xff] }
 0x47e   :  { %3888 = vrcp.f32 %v1290_v27  ;;  %v6786_v27 = vld [vmem:[#allocation53_spill] sm:$0xff] }
 0x486   :  { %v3885_v25 = vpop.eup %3884 }
 0x487   :  { %v3887_v26 = vpop.eup %3886  ;;  %v1284_v24 = vmul.f32 %v3885_v25, %v3883_v21  ;;  %v6782_v21 = vld [vmem:[#allocation49_spill] sm:$0xff]  ;;  %v6783_v25 = vld [vmem:[#allocation50_spill] sm:$0xff] }
 0x488   :  { %v1283_v28 = vmul.f32 %v3887_v26, %v4860_v5  ;;  %v3889_v20 = vpop.eup %3888  ;;  %v5037_v5 = vld [vmem:[%s6372_s1 + $0x24] ss:$16 sps:$4 sm:$0xff]   ;;  %v6784_v26 = vld [vmem:[#allocation51_spill] sm:$0xff] }
 0x48a   :  { %v5024_v23 = vadd.f32 %v1284_v24, %v1283_v28  ;;  %v6785_v24 = vld [vmem:[#allocation52_spill] sm:$0xff]  ;;  %v6787_v28 = vld [vmem:[#allocation54_spill] sm:$0xff] }
 0x48c   :  { %3890 = vtanh.f32 %v5024_v23 }
 0x496   :  { %v3891_v31 = vpop.eup %3890 }
 0x497   :  { %v1293_v29 = vmul.f32 %v3891_v31, %v3889_v20  ;;  %v6788_v20 = vld [vmem:[#allocation55_spill] sm:$0xff]  ;;  %v6789_v31 = vld [vmem:[#allocation56_spill] sm:$0xff] }
 0x499   :  { %v1294_v30 = vpack.c.bf16 %v1293_v29, %v1293_v29  ;;  %v6790_v29 = vld [vmem:[#allocation57_spill] sm:$0xff] }
 0x49b   :  { %1328 = vmatmul.mubr.bf16.vlgmr.msra.gmra.mrb[16].mxu0 %v1294_v30  ;;  %1369 = vmatmul.mubr.bf16.vlgmr.msra.gmra.mrb[16].mxu1 %v1294_v30  ;;  %v5105_v30 = vld [vmem:[#allocation4 + $0x4] ss:$16 sps:$4 sm:$0xff]  }
 0x49c   :  { %1386 = vmatpush1.bf16.msra.mxu0 %v5030_v32  ;;  %1427 = vmatpush1.bf16.msra.mxu1 %v4532_v39  ;;  %v6755_v39 = vld [vmem:[#allocation19_spill] sm:$0xff]  ;;  %6791 = vst [vmem:[#allocation10_spill] sm:$0xff] %v5105_v30 }
 0x49d   :  { %1387 = vmatprep.subr.bf16.mxu0 %v5037_v5  ;;  %1428 = vmatprep.subr.bf16.mxu1 %v4538_v40  ;;  %v6756_v40 = vld [vmem:[#allocation24_spill] sm:$0xff] }
 0x49e   :  { %1417 = vmatprep.mubr.bf16.mxu0 %v6669_v58  ;;  %1458 = vmatprep.mubr.bf16.mxu1 %v6669_v58 }
 0x4a0   :  { %1388 = vmatpush1.bf16.msra.mxu0 %v4519_v37  ;;  %1429 = vmatpush1.bf16.msra.mxu1 %v4557_v43  ;;  %v6753_v37 = vld [vmem:[#allocation18_spill] sm:$0xff] }
 0x4a1   :  { %1389 = vmatprep.subr.bf16.mxu0 %v4524_v38  ;;  %1430 = vmatprep.subr.bf16.mxu1 %v4563_v44  ;;  %v6754_v38 = vld [vmem:[#allocation23_spill] sm:$0xff]  ;;  %v6759_v43 = vld [vmem:[#allocation26_spill] sm:$0xff] }
 0x4a2   :  { %v6760_v44 = vld [vmem:[#allocation27_spill] sm:$0xff] }
 0x4a4   :  { %1390 = vmatpush1.bf16.msra.mxu0 %v4544_v41  ;;  %1431 = vmatpush1.bf16.msra.mxu1 %v4579_v47  ;;  %v6757_v41 = vld [vmem:[#allocation22_spill] sm:$0xff]  ;;  %v6762_v47 = vld [vmem:[#allocation29_spill] sm:$0xff] }
 0x4a5   :  { %1391 = vmatprep.subr.bf16.mxu0 %v4549_v42  ;;  %1432 = vmatprep.subr.bf16.mxu1 %v4585_v48  ;;  %v6758_v42 = vld [vmem:[#allocation25_spill] sm:$0xff]  ;;  %v6763_v48 = vld [vmem:[#allocation30_spill] sm:$0xff] }
 0x4a8   :  { %1392 = vmatpush1.bf16.msra.mxu0 %v4569_v45  ;;  %1433 = vmatpush1.bf16.msra.mxu1 %v4603_v51  ;;  %v6761_v45 = vld [vmem:[#allocation28_spill] sm:$0xff]  ;;  %v6764_v51 = vld [vmem:[#allocation31_spill] sm:$0xff] }
 0x4a9   :  { %1393 = vmatprep.subr.bf16.mxu0 %v6703_v33  ;;  %1434 = vmatprep.subr.bf16.mxu1 %v6704_v34  ;;  %v6765_v33 = vld [vmem:[#allocation32_spill] sm:$0xff]  ;;  %v6766_v34 = vld [vmem:[#allocation33_spill] sm:$0xff] }
 0x4ac   :  { %1394 = vmatpush1.bf16.msra.mxu0 %v6705_v16  ;;  %1435 = vmatpush1.bf16.msra.mxu1 %v6706_v17  ;;  %v6767_v16 = vld [vmem:[#allocation34_spill] sm:$0xff]  ;;  %v6768_v17 = vld [vmem:[#allocation35_spill] sm:$0xff] }
 0x4ad   :  { %1395 = vmatprep.subr.bf16.mxu0 %v6707_v18  ;;  %1436 = vmatprep.subr.bf16.mxu1 %v6708_v0  ;;  %v6769_v18 = vld [vmem:[#allocation36_spill] sm:$0xff]  ;;  %v6770_v0 = vld [vmem:[#allocation37_spill] sm:$0xff] }
 0x4b0   :  { %1396 = vmatpush1.bf16.msra.mxu0 %v6709_v57  ;;  %1437 = vmatpush1.bf16.msra.mxu1 %v6710_v56  ;;  %v6771_v57 = vld [vmem:[#allocation38_spill] sm:$0xff]  ;;  %v6772_v56 = vld [vmem:[#allocation39_spill] sm:$0xff] }
 0x4b1   :  { %1397 = vmatprep.subr.bf16.mxu0 %v6711_v61  ;;  %1438 = vmatprep.subr.bf16.mxu1 %v6712_v54  ;;  %v6773_v61 = vld [vmem:[#allocation40_spill] sm:$0xff]  ;;  %v6774_v54 = vld [vmem:[#allocation41_spill] sm:$0xff] }
 0x4b4   :  { %1398 = vmatpush1.bf16.msra.mxu0 %v6753_v37  ;;  %1439 = vmatpush1.bf16.msra.mxu1 %v6754_v38  ;;  %v5108_v37 = vld [vmem:[#allocation4 + $0xc] ss:$16 sps:$4 sm:$0xff]   ;;  %v1381_v38 = vld [vmem:[%s6371_s0] sm:$0x30] }
 0x4b5   :  { %1399 = vmatprep.subr.bf16.mxu0 %v6755_v39  ;;  %1440 = vmatprep.subr.bf16.mxu1 %v6756_v40  ;;  %6792 = vst [vmem:[#allocation13_spill] sm:$0xff] %v5108_v37 }
 0x4b8   :  { %1400 = vmatpush1.bf16.msra.mxu0 %v6757_v41  ;;  %1441 = vmatpush1.bf16.msra.mxu1 %v6758_v42  ;;  %v1382_v42 = vld [vmem:[%s6371_s0 + $0x8] sm:$0x30] }
 0x4b9   :  { %1514 = vmatprep.subr.bf16.mxu0 %v6759_v43  ;;  %1555 = vmatprep.subr.bf16.mxu1 %v6760_v44 }
 0x4bb   :  { %1418 = vmatmul.mubr.bf16.vlgmr.msra.gmra.mrb[20].mxu0 %v4949_v12  ;;  %1459 = vmatmul.mubr.bf16.vlgmr.msra.gmra.mrb[20].mxu1 %v4949_v12  ;;  %v6775_v12 = vld [vmem:[#allocation42_spill] sm:$0xff] }
 0x4bc   :  { %1515 = vmatpush1.bf16.msra.mxu0 %v6761_v45  ;;  %1556 = vmatpush1.bf16.msra.mxu1 %v6762_v47 }
 0x4bd   :  { %1516 = vmatprep.subr.bf16.mxu0 %v6763_v48  ;;  %1557 = vmatprep.subr.bf16.mxu1 %v6764_v51 }
 0x4be   :  { %1546 = vmatprep.mubr.bf16.mxu0 %v6669_v58  ;;  %1587 = vmatprep.mubr.bf16.mxu1 %v6669_v58 }
 0x4c0   :  { %1517 = vmatpush1.bf16.msra.mxu0 %v6765_v33  ;;  %1558 = vmatpush1.bf16.msra.mxu1 %v6766_v34 }
 0x4c1   :  { %1518 = vmatprep.subr.bf16.mxu0 %v6767_v16  ;;  %1559 = vmatprep.subr.bf16.mxu1 %v6768_v17 }
 0x4c4   :  { %1519 = vmatpush1.bf16.msra.mxu0 %v6769_v18  ;;  %1560 = vmatpush1.bf16.msra.mxu1 %v6770_v0 }
 0x4c5   :  { %1520 = vmatprep.subr.bf16.mxu0 %v6771_v57  ;;  %1561 = vmatprep.subr.bf16.mxu1 %v6772_v56  ;;  %v1384_v57 = vld [vmem:[%s6371_s0 + $0x18] sm:$0x30] }
 0x4c8   :  { %1521 = vmatpush1.bf16.msra.mxu0 %v6773_v61  ;;  %1562 = vmatpush1.bf16.msra.mxu1 %v6774_v54  ;;  %v1383_v54 = vld [vmem:[%s6371_s0 + $0x10] sm:$0x30] }
 0x4c9   :  { %1522 = vmatprep.subr.bf16.mxu0 %v6775_v12  ;;  %1563 = vmatprep.subr.bf16.mxu1 %v6776_v35 }
 0x4cc   :  { %1523 = vmatpush1.bf16.msra.mxu0 %v6777_v36  ;;  %1564 = vmatpush1.bf16.msra.mxu1 %v6778_v3 }
 0x4cd   :  { %1524 = vmatprep.subr.bf16.mxu0 %v6779_v60  ;;  %1565 = vmatprep.subr.bf16.mxu1 %v6780_v19 }
 0x4d0   :  { %1525 = vmatpush1.bf16.msra.mxu0 %v6781_v22  ;;  %1566 = vmatpush1.bf16.msra.mxu1 %v6782_v21 }
 0x4d1   :  { %1526 = vmatprep.subr.bf16.mxu0 %v6783_v25  ;;  %1567 = vmatprep.subr.bf16.mxu1 %v6784_v26  ;;  %v1497_v26 = vrot.slane %v4946_v14, 6  ;;  %v5146_v14 = vld [vmem:[#allocation4 + $0x68] ss:$16 sps:$4 sm:$0xff]  }
 0x4d4   :  { %1527 = vmatpush1.bf16.msra.mxu0 %v6785_v24  ;;  %1568 = vmatpush1.bf16.msra.mxu1 %v6786_v27 }
 0x4d5   :  { %1528 = vmatprep.subr.bf16.mxu0 %v6787_v28  ;;  %1569 = vmatprep.subr.bf16.mxu1 %v6788_v20 }
 0x4d8   :  { %1529 = vmatpush1.bf16.msra.mxu0 %v6789_v31  ;;  %1570 = vmatpush1.bf16.msra.mxu1 %v6790_v29 }
 0x4d9   :  { %1625 = vmatprep.subr.bf16.mxu0 %v5105_v30  ;;  %1666 = vmatprep.subr.bf16.mxu1 %v5108_v37 }
 0x58e   :  { %v1419_v39 = vpop.f32.mrb[20].mxu0  ;;  %v1460_v40 = vpop.f32.mrb[20].mxu1 }
 0x58f   :  { %v1471_v41 = vrot.slane %v1419_v39, 4  ;;  %v1421_v43 = vpop.f32.mrb[21].mxu0  ;;  %v1462_v44 = vpop.f32.mrb[21].mxu1  ;;  %v1473_v61 = vrot.slane %v1460_v40, 4 }
 0x590   :  { %v1472_v45 = vrot.slane %v1421_v43, 4  ;;  %v1423_v47 = vpop.f32.mrb[22].mxu0  ;;  %v1464_v48 = vpop.f32.mrb[22].mxu1  ;;  %v1474_v0 = vrot.slane %v1462_v44, 4  ;;  %v5154_v43 = vld [vmem:[#allocation4 + $0x88] ss:$16 sps:$4 sm:$0xff]  }
 0x591   :  { %v1479_v51 = vadd.f32 %v1471_v41, %v1381_v38  ;;  %v1424_v33 = vpop.f32.mrb[23].mxu0  ;;  %v1465_v34 = vpop.f32.mrb[23].mxu1  ;;  %v1481_v35 = vadd.f32 %v1473_v61, %v1383_v54  ;;  %v5158_v44 = vld [vmem:[#allocation4 + $0xac] ss:$16 sps:$4 sm:$0xff]   ;;  %v5164_v47 = vld [vmem:[#allocation4 + $0xa8] ss:$16 sps:$4 sm:$0xff]  }
 0x592   :  { %v1480_v16 = vadd.f32 %v1472_v45, %v1382_v42  ;;  %v1482_v56 = vadd.f32 %v1474_v0, %v1384_v57  ;;  %v5150_v42 = vld [vmem:[#allocation4 + $0x8c] ss:$16 sps:$4 sm:$0xff]   ;;  %v5161_v45 = vld [vmem:[#allocation4 + $0xa0] ss:$16 sps:$4 sm:$0xff]   ;;  %v5167_v48 = vld [vmem:[#allocation4 + $0xc4] ss:$16 sps:$4 sm:$0xff]  }
 0x593   :  { %v3467_v17 = vmul.f32 -1.442695, %v1479_v51  ;;  %v5170_v51 = vld [vmem:[#allocation4 + $0xcc] ss:$16 sps:$4 sm:$0xff]   ;;  %v5173_v33 = vld [vmem:[#allocation4 + $0xc0] ss:$16 sps:$4 sm:$0xff]  }
 0x594   :  { %v3468_v18 = vmul.f32 -1.442695, %v1480_v16  ;;  %v3469_v12 = vmul.f32 -1.442695, %v1482_v56  ;;  %v5176_v34 = vld [vmem:[#allocation4 + $0xc8] ss:$16 sps:$4 sm:$0xff]  }
 0x595   :  { %3892 = vpow2.f32 %v3467_v17  ;;  %v5179_v16 = vld [vmem:[#allocation4 + $0xe4] ss:$16 sps:$4 sm:$0xff]   ;;  %v5182_v17 = vld [vmem:[#allocation4 + $0xec] ss:$16 sps:$4 sm:$0xff]   ;;  %v5188_v0 = vld [vmem:[#allocation4 + $0xe8] ss:$16 sps:$4 sm:$0xff]  }
 0x596   :  { %3894 = vpow2.f32 %v3468_v18  ;;  %v5185_v18 = vld [vmem:[#allocation4 + $0xe0] ss:$16 sps:$4 sm:$0xff]   ;;  %v5194_v57 = vld [vmem:[%s6372_s1 + $0x4] ss:$16 sps:$4 sm:$0xff]   ;;  %v5200_v56 = vld [vmem:[%s6372_s1 + $0xc] ss:$16 sps:$4 sm:$0xff]  }
 0x597   :  { %3896 = vpow2.f32 %v3469_v12 }
 0x598   :  { %3898 = vtanh.f32 %v1481_v35 }
 0x59f   :  { %v3893_v36 = vpop.eup %3892 }
 0x5a0   :  { %v3895_v3 = vpop.eup %3894  ;;  %v1489_v60 = vadd.f32 1.0, %v3893_v36 }
 0x5a1   :  { %v1490_v19 = vadd.f32 1.0, %v3895_v3  ;;  %v3897_v22 = vpop.eup %3896 }
 0x5a2   :  { %3900 = vrcp.f32 %v1489_v60  ;;  %v3899_v21 = vpop.eup %3898  ;;  %v1506_v28 = vadd.f32 1.0, %v3897_v22 }
 0x5a3   :  { %3902 = vrcp.f32 %v1490_v19 }
 0x5a4   :  { %3904 = vrcp.f32 %v1506_v28 }
 0x5ac   :  { %v3901_v25 = vpop.eup %3900 }
 0x5ad   :  { %v3903_v24 = vpop.eup %3902  ;;  %v1500_v27 = vmul.f32 %v3901_v25, %v3899_v21 }
 0x5ae   :  { %v1499_v20 = vmul.f32 %v3903_v24, %v1497_v26  ;;  %v3905_v29 = vpop.eup %3904 }
 0x5b0   :  { %v5124_v31 = vadd.f32 %v1500_v27, %v1499_v20 }
 0x5b2   :  { %3906 = vtanh.f32 %v5124_v31 }
 0x5bc   :  { %v3907_v38 = vpop.eup %3906 }
 0x5bd   :  { %v1509_v39 = vmul.f32 %v3907_v38, %v3905_v29 }
 0x5bf   :  { %v1510_v40 = vpack.c.bf16 %v1509_v39, %v1509_v39 }
 0x5c1   :  { %v5127_v41 = vrot.slane %v1510_v40, 2 }
 0x5c3   :  { %1547 = vmatmul.mubr.bf16.vlgmr.msra.gmra.mrb[16].mxu0 %v5127_v41  ;;  %1588 = vmatmul.mubr.bf16.vlgmr.msra.gmra.mrb[16].mxu1 %v5127_v41 }
 0x5c4   :  { %1626 = vmatpush1.bf16.msra.mxu0 %v4953_v46  ;;  %1667 = vmatpush1.bf16.msra.mxu1 %v4956_v7 }
 0x5c5   :  { %1627 = vmatprep.subr.bf16.mxu0 %v4959_v13  ;;  %1668 = vmatprep.subr.bf16.mxu1 %v4962_v1 }
 0x5c6   :  { %1657 = vmatprep.mubr.bf16.mxu0 %v6669_v58  ;;  %1698 = vmatprep.mubr.bf16.mxu1 %v6669_v58 }
 0x5c8   :  { %1628 = vmatpush1.bf16.msra.mxu0 %v4967_v10  ;;  %1669 = vmatpush1.bf16.msra.mxu1 %v4970_v55 }
 0x5c9   :  { %1629 = vmatprep.subr.bf16.mxu0 %v4973_v52  ;;  %1670 = vmatprep.subr.bf16.mxu1 %v4976_v2 }
 0x5cc   :  { %1630 = vmatpush1.bf16.msra.mxu0 %v4979_v11  ;;  %1671 = vmatpush1.bf16.msra.mxu1 %v4982_v49 }
 0x5cd   :  { %1631 = vmatprep.subr.bf16.mxu0 %v4985_v50  ;;  %1672 = vmatprep.subr.bf16.mxu1 %v4988_v4 }
 0x5d0   :  { %1632 = vmatpush1.bf16.msra.mxu0 %v4991_v15  ;;  %1673 = vmatpush1.bf16.msra.mxu1 %v5146_v14 }
 0x5d1   :  { %1633 = vmatprep.subr.bf16.mxu0 %v4995_v53  ;;  %1674 = vmatprep.subr.bf16.mxu1 %v5150_v42 }
 0x5d4   :  { %1634 = vmatpush1.bf16.msra.mxu0 %v4999_v59  ;;  %1675 = vmatpush1.bf16.msra.mxu1 %v5154_v43 }
 0x5d5   :  { %1635 = vmatprep.subr.bf16.mxu0 %v5003_v6  ;;  %1676 = vmatprep.subr.bf16.mxu1 %v5158_v44 }
 0x5d8   :  { %1636 = vmatpush1.bf16.msra.mxu0 %v5161_v45  ;;  %1677 = vmatpush1.bf16.msra.mxu1 %v5164_v47 }
 0x5d9   :  { %1637 = vmatprep.subr.bf16.mxu0 %v5167_v48  ;;  %1678 = vmatprep.subr.bf16.mxu1 %v5170_v51 }
 0x5dc   :  { %1638 = vmatpush1.bf16.msra.mxu0 %v5173_v33  ;;  %1679 = vmatpush1.bf16.msra.mxu1 %v5176_v34 }
 0x5dd   :  { %1639 = vmatprep.subr.bf16.mxu0 %v5179_v16  ;;  %1680 = vmatprep.subr.bf16.mxu1 %v5182_v17 }
 0x5e0   :  { %1640 = vmatpush1.bf16.msra.mxu0 %v5185_v18  ;;  %1681 = vmatpush1.bf16.msra.mxu1 %v5188_v0 }
 0x5e1   :  { %1715 = vmatprep.subr.bf16.mxu0 %v5194_v57  ;;  %1756 = vmatprep.subr.bf16.mxu1 %v5200_v56 }
 0x696   :  { %v1548_v61 = vpop.f32.mrb[16].mxu0  ;;  %v1589_v54 = vpop.f32.mrb[16].mxu1 }
 0x697   :  { %v3588_v12 = vadd.f32 %v1548_v61, %v4848_v8  ;;  %v1550_v35 = vpop.f32.mrb[17].mxu0  ;;  %v1591_v36 = vpop.f32.mrb[17].mxu1  ;;  %v3590_v28 = vadd.f32 %v1589_v54, %v4857_v63 }
 0x698   :  { %v3589_v3 = vadd.f32 %v1550_v35, %v4850_v9  ;;  %v1552_v60 = vpop.f32.mrb[18].mxu0  ;;  %v1593_v19 = vpop.f32.mrb[18].mxu1  ;;  %v3591_v24 = vadd.f32 %v1591_v36, %v4854_v62 }
 0x699   :  { %v3470_v22 = vmul.f32 -1.442695, %v3588_v12  ;;  %v1553_v21 = vpop.f32.mrb[19].mxu0  ;;  %v1594_v25 = vpop.f32.mrb[19].mxu1 }
 0x69a   :  { %v3471_v26 = vmul.f32 -1.442695, %v3589_v3  ;;  %v3472_v27 = vmul.f32 -1.442695, %v3591_v24  ;;  %v5230_v24 = vld [vmem:[%s6372_s1 + $0x20] ss:$16 sps:$4 sm:$0xff]  }
 0x69b   :  { %3908 = vpow2.f32 %v3470_v22 }
 0x69c   :  { %3910 = vpow2.f32 %v3471_v26  ;;  %v5215_v26 = vld [vmem:[%s6372_s1 + $0x8] ss:$16 sps:$4 sm:$0xff]  }
 0x69d   :  { %3912 = vpow2.f32 %v3472_v27  ;;  %v5236_v27 = vld [vmem:[%s6372_s1 + $0x28] ss:$16 sps:$4 sm:$0xff]  }
 0x69e   :  { %3914 = vtanh.f32 %v3590_v28  ;;  %v5242_v28 = vld [vmem:[%s6372_s1 + $0x44] ss:$16 sps:$4 sm:$0xff]  }
 0x69f   :  { %6793 = vst [vmem:[#allocation11_spill] sm:$0xff] %v5242_v28 }
 0x6a5   :  { %v3909_v20 = vpop.eup %3908 }
 0x6a6   :  { %v3911_v29 = vpop.eup %3910  ;;  %v1606_v38 = vadd.f32 1.0, %v3909_v20  ;;  %v5248_v20 = vld [vmem:[%s6372_s1 + $0x4c] ss:$16 sps:$4 sm:$0xff]  }
 0x6a7   :  { %v1607_v39 = vadd.f32 1.0, %v3911_v29  ;;  %v3913_v40 = vpop.eup %3912  ;;  %6794 = vst [vmem:[#allocation16_spill] sm:$0xff] %v5248_v20  ;;  %v5254_v29 = vld [vmem:[%s6372_s1 + $0x40] ss:$16 sps:$4 sm:$0xff]  }
 0x6a8   :  { %3916 = vrcp.f32 %v1606_v38  ;;  %v3915_v61 = vpop.eup %3914  ;;  %v1620_v60 = vadd.f32 1.0, %v3913_v40  ;;  %6795 = vst [vmem:[#allocation12_spill] sm:$0xff] %v5254_v29  ;;  %v5260_v38 = vld [vmem:[%s6372_s1 + $0x48] ss:$16 sps:$4 sm:$0xff]   ;;  %v5272_v40 = vld [vmem:[%s6372_s1 + $0x6c] ss:$16 sps:$4 sm:$0xff]  }
 0x6a9   :  { %3918 = vrcp.f32 %v1607_v39  ;;  %6796 = vst [vmem:[#allocation17_spill] sm:$0xff] %v5260_v38  ;;  %v5266_v39 = vld [vmem:[%s6372_s1 + $0x64] ss:$16 sps:$4 sm:$0xff]   ;;  %6798 = vst [vmem:[#allocation20_spill] sm:$0xff] %v5272_v40 }
 0x6aa   :  { %3920 = vrcp.f32 %v1620_v60  ;;  %6797 = vst [vmem:[#allocation14_spill] sm:$0xff] %v5266_v39  ;;  %v5302_v60 = vld [vmem:[%s6372_s1 + $0x80] ss:$16 sps:$4 sm:$0xff]  }
 0x6ab   :  { %6803 = vst [vmem:[#allocation18_spill] sm:$0xff] %v5302_v60 }
 0x6b2   :  { %v3917_v12 = vpop.eup %3916 }
 0x6b3   :  { %v3919_v35 = vpop.eup %3918  ;;  %v1614_v3 = vmul.f32 %v3917_v12, %v3915_v61  ;;  %v5278_v61 = vld [vmem:[%s6372_s1 + $0x60] ss:$16 sps:$4 sm:$0xff]   ;;  %v5284_v12 = vld [vmem:[%s6372_s1 + $0x68] ss:$16 sps:$4 sm:$0xff]  }
 0x6b4   :  { %v1613_v19 = vmul.f32 %v3919_v35, %v5024_v23  ;;  %v3921_v54 = vpop.eup %3920  ;;  %v5222_v23 = vld [vmem:[%s6372_s1 + $0x2c] ss:$16 sps:$4 sm:$0xff]   ;;  %6799 = vst [vmem:[#allocation15_spill] sm:$0xff] %v5278_v61  ;;  %6800 = vst [vmem:[#allocation21_spill] sm:$0xff] %v5284_v12  ;;  %v5290_v35 = vld [vmem:[%s6372_s1 + $0x84] ss:$16 sps:$4 sm:$0xff]  }
 0x6b5   :  { %6801 = vst [vmem:[#allocation8_spill] sm:$0xff] %v5290_v35 }
 0x6b6   :  { %v5208_v36 = vadd.f32 %v1614_v3, %v1613_v19  ;;  %v5296_v3 = vld [vmem:[%s6372_s1 + $0x8c] ss:$16 sps:$4 sm:$0xff]   ;;  %v5308_v19 = vld [vmem:[%s6372_s1 + $0x88] ss:$16 sps:$4 sm:$0xff]  }
 0x6b7   :  { %6802 = vst [vmem:[#allocation9_spill] sm:$0xff] %v5296_v3  ;;  %6804 = vst [vmem:[#allocation23_spill] sm:$0xff] %v5308_v19 }
 0x6b8   :  { %3922 = vtanh.f32 %v5208_v36 }
 0x6c2   :  { %v3923_v22 = vpop.eup %3922 }
 0x6c3   :  { %v1623_v21 = vmul.f32 %v3923_v22, %v3921_v54  ;;  %v5314_v54 = vld [vmem:[%s6372_s1 + $0xa4] ss:$16 sps:$4 sm:$0xff]   ;;  %v5320_v22 = vld [vmem:[%s6372_s1 + $0xac] ss:$16 sps:$4 sm:$0xff]  }
 0x6c4   :  { %6805 = vst [vmem:[#allocation19_spill] sm:$0xff] %v5314_v54  ;;  %6806 = vst [vmem:[#allocation24_spill] sm:$0xff] %v5320_v22 }
 0x6c5   :  { %v1624_v25 = vpack.c.bf16 %v1623_v21, %v1623_v21  ;;  %v5326_v21 = vld [vmem:[%s6372_s1 + $0xa0] ss:$16 sps:$4 sm:$0xff]  }
 0x6c6   :  { %6807 = vst [vmem:[#allocation22_spill] sm:$0xff] %v5326_v21 }
 0x6c7   :  { %1658 = vmatmul.mubr.bf16.vlgmr.msra.gmra.mrb[24].mxu0 %v1624_v25  ;;  %1699 = vmatmul.mubr.bf16.vlgmr.msra.gmra.mrb[24].mxu1 %v1624_v25  ;;  %v5332_v25 = vld [vmem:[%s6372_s1 + $0xa8] ss:$16 sps:$4 sm:$0xff]  }
 0x6c8   :  { %1716 = vmatpush1.bf16.msra.mxu0 %v5030_v32  ;;  %1757 = vmatpush1.bf16.msra.mxu1 %v5215_v26  ;;  %6808 = vst [vmem:[#allocation25_spill] sm:$0xff] %v5332_v25 }
 0x6c9   :  { %1717 = vmatprep.subr.bf16.mxu0 %v5037_v5  ;;  %1758 = vmatprep.subr.bf16.mxu1 %v5222_v23 }
 0x6ca   :  { %1747 = vmatprep.mubr.bf16.mxu0 %v6669_v58  ;;  %1788 = vmatprep.mubr.bf16.mxu1 %v6669_v58 }
 0x6cc   :  { %1718 = vmatpush1.bf16.msra.mxu0 %v5230_v24  ;;  %1759 = vmatpush1.bf16.msra.mxu1 %v5236_v27 }
 0x6cd   :  { %1719 = vmatprep.subr.bf16.mxu0 %v5242_v28  ;;  %1760 = vmatprep.subr.bf16.mxu1 %v5248_v20 }
 0x6d0   :  { %1720 = vmatpush1.bf16.msra.mxu0 %v5254_v29  ;;  %1761 = vmatpush1.bf16.msra.mxu1 %v5260_v38 }
 0x6d1   :  { %1721 = vmatprep.subr.bf16.mxu0 %v5266_v39  ;;  %1762 = vmatprep.subr.bf16.mxu1 %v5272_v40 }
 0x6d4   :  { %1722 = vmatpush1.bf16.msra.mxu0 %v5278_v61  ;;  %1763 = vmatpush1.bf16.msra.mxu1 %v5284_v12 }
 0x6d5   :  { %1723 = vmatprep.subr.bf16.mxu0 %v5290_v35  ;;  %1764 = vmatprep.subr.bf16.mxu1 %v5296_v3 }
 0x6d8   :  { %1724 = vmatpush1.bf16.msra.mxu0 %v5302_v60  ;;  %1765 = vmatpush1.bf16.msra.mxu1 %v5308_v19  ;;  %v5386_v19 = vld [vmem:[#allocation2 + $0xc] ss:$16 sps:$4 sm:$0xff]  }
 0x6d9   :  { %1725 = vmatprep.subr.bf16.mxu0 %v5314_v54  ;;  %1766 = vmatprep.subr.bf16.mxu1 %v5320_v22  ;;  %v5338_v54 = vld [vmem:[%s6372_s1 + $0xc4] ss:$16 sps:$4 sm:$0xff]   ;;  %v5344_v22 = vld [vmem:[%s6372_s1 + $0xcc] ss:$16 sps:$4 sm:$0xff]   ;;  %6818 = vst [vmem:[#allocation35_spill] sm:$0xff] %v5386_v19 }
 0x6da   :  { %6809 = vst [vmem:[#allocation26_spill] sm:$0xff] %v5338_v54  ;;  %6810 = vst [vmem:[#allocation27_spill] sm:$0xff] %v5344_v22 }
 0x6dc   :  { %1726 = vmatpush1.bf16.msra.mxu0 %v5326_v21  ;;  %1767 = vmatpush1.bf16.msra.mxu1 %v5332_v25  ;;  %v5350_v21 = vld [vmem:[%s6372_s1 + $0xc0] ss:$16 sps:$4 sm:$0xff]   ;;  %v5356_v25 = vld [vmem:[%s6372_s1 + $0xc8] ss:$16 sps:$4 sm:$0xff]  }
 0x6dd   :  { %1727 = vmatprep.subr.bf16.mxu0 %v5338_v54  ;;  %1768 = vmatprep.subr.bf16.mxu1 %v5344_v22  ;;  %6811 = vst [vmem:[#allocation28_spill] sm:$0xff] %v5350_v21  ;;  %6812 = vst [vmem:[#allocation29_spill] sm:$0xff] %v5356_v25  ;;  %v5362_v54 = vld [vmem:[%s6372_s1 + $0xe4] ss:$16 sps:$4 sm:$0xff]   ;;  %v5368_v22 = vld [vmem:[%s6372_s1 + $0xec] ss:$16 sps:$4 sm:$0xff]  }
 0x6de   :  { %6813 = vst [vmem:[#allocation30_spill] sm:$0xff] %v5362_v54  ;;  %6814 = vst [vmem:[#allocation31_spill] sm:$0xff] %v5368_v22 }
 0x6e0   :  { %1728 = vmatpush1.bf16.msra.mxu0 %v5350_v21  ;;  %1769 = vmatpush1.bf16.msra.mxu1 %v5356_v25  ;;  %v5374_v21 = vld [vmem:[%s6372_s1 + $0xe0] ss:$16 sps:$4 sm:$0xff]   ;;  %v5380_v25 = vld [vmem:[%s6372_s1 + $0xe8] ss:$16 sps:$4 sm:$0xff]  }
 0x6e1   :  { %1729 = vmatprep.subr.bf16.mxu0 %v5362_v54  ;;  %1770 = vmatprep.subr.bf16.mxu1 %v5368_v22  ;;  %6815 = vst [vmem:[#allocation32_spill] sm:$0xff] %v5374_v21  ;;  %6816 = vst [vmem:[#allocation33_spill] sm:$0xff] %v5380_v25  ;;  %v5383_v54 = vld [vmem:[#allocation2 + $0x4] ss:$16 sps:$4 sm:$0xff]   ;;  %v5394_v22 = vld [vmem:[#allocation2 + $0x8] ss:$16 sps:$4 sm:$0xff]  }
 0x6e2   :  { %6817 = vst [vmem:[#allocation34_spill] sm:$0xff] %v5383_v54  ;;  %6820 = vst [vmem:[#allocation37_spill] sm:$0xff] %v5394_v22 }
 0x6e4   :  { %1730 = vmatpush1.bf16.msra.mxu0 %v5374_v21  ;;  %1771 = vmatpush1.bf16.msra.mxu1 %v5380_v25  ;;  %v5391_v21 = vld [vmem:[#allocation2] ss:$16 sps:$4 sm:$0xff]   ;;  %v5397_v25 = vld [vmem:[#allocation2 + $0x24] ss:$16 sps:$4 sm:$0xff]  }
 0x6e5   :  { %1844 = vmatprep.subr.bf16.mxu0 %v5383_v54  ;;  %1885 = vmatprep.subr.bf16.mxu1 %v5386_v19  ;;  %6819 = vst [vmem:[#allocation36_spill] sm:$0xff] %v5391_v21  ;;  %6821 = vst [vmem:[#allocation38_spill] sm:$0xff] %v5397_v25  ;;  %v5400_v54 = vld [vmem:[#allocation2 + $0x2c] ss:$16 sps:$4 sm:$0xff]   ;;  %v5420_v19 = vld [vmem:[#allocation2 + $0x48] ss:$16 sps:$4 sm:$0xff]  }
 0x6e6   :  { %6822 = vst [vmem:[#allocation39_spill] sm:$0xff] %v5400_v54  ;;  %6828 = vst [vmem:[#allocation45_spill] sm:$0xff] %v5420_v19 }
 0x6e7   :  { %1748 = vmatmul.mubr.bf16.vlgmr.msra.gmra.mrb[28].mxu0 %v5127_v41  ;;  %1789 = vmatmul.mubr.bf16.vlgmr.msra.gmra.mrb[28].mxu1 %v5127_v41  ;;  %v5405_v41 = vld [vmem:[#allocation2 + $0x20] ss:$16 sps:$4 sm:$0xff]  }
 0x6e8   :  { %1845 = vmatpush1.bf16.msra.mxu0 %v5391_v21  ;;  %1886 = vmatpush1.bf16.msra.mxu1 %v5394_v22  ;;  %6823 = vst [vmem:[#allocation40_spill] sm:$0xff] %v5405_v41  ;;  %v5408_v21 = vld [vmem:[#allocation2 + $0x28] ss:$16 sps:$4 sm:$0xff]   ;;  %v5411_v22 = vld [vmem:[#allocation2 + $0x44] ss:$16 sps:$4 sm:$0xff]  }
 0x6e9   :  { %1846 = vmatprep.subr.bf16.mxu0 %v5397_v25  ;;  %1887 = vmatprep.subr.bf16.mxu1 %v5400_v54  ;;  %6824 = vst [vmem:[#allocation41_spill] sm:$0xff] %v5408_v21  ;;  %6825 = vst [vmem:[#allocation42_spill] sm:$0xff] %v5411_v22  ;;  %v5414_v25 = vld [vmem:[#allocation2 + $0x4c] ss:$16 sps:$4 sm:$0xff]   ;;  %v5417_v54 = vld [vmem:[#allocation2 + $0x40] ss:$16 sps:$4 sm:$0xff]  }
 0x6ea   :  { %1876 = vmatprep.mubr.bf16.mxu0 %v6669_v58  ;;  %1917 = vmatprep.mubr.bf16.mxu1 %v6669_v58  ;;  %6826 = vst [vmem:[#allocation43_spill] sm:$0xff] %v5414_v25  ;;  %6827 = vst [vmem:[#allocation44_spill] sm:$0xff] %v5417_v54 }
 0x6ec   :  { %1847 = vmatpush1.bf16.msra.mxu0 %v5405_v41  ;;  %1888 = vmatpush1.bf16.msra.mxu1 %v5408_v21  ;;  %v5423_v41 = vld [vmem:[#allocation2 + $0x64] ss:$16 sps:$4 sm:$0xff]   ;;  %v5426_v21 = vld [vmem:[#allocation2 + $0x6c] ss:$16 sps:$4 sm:$0xff]  }
 0x6ed   :  { %1848 = vmatprep.subr.bf16.mxu0 %v5411_v22  ;;  %1889 = vmatprep.subr.bf16.mxu1 %v5414_v25  ;;  %6829 = vst [vmem:[#allocation46_spill] sm:$0xff] %v5423_v41  ;;  %6830 = vst [vmem:[#allocation47_spill] sm:$0xff] %v5426_v21  ;;  %v5429_v22 = vld [vmem:[#allocation2 + $0x60] ss:$16 sps:$4 sm:$0xff]   ;;  %v5432_v25 = vld [vmem:[#allocation2 + $0x68] ss:$16 sps:$4 sm:$0xff]  }
 0x6ee   :  { %6831 = vst [vmem:[#allocation48_spill] sm:$0xff] %v5429_v22  ;;  %6832 = vst [vmem:[#allocation49_spill] sm:$0xff] %v5432_v25 }
 0x6f0   :  { %1849 = vmatpush1.bf16.msra.mxu0 %v5417_v54  ;;  %1890 = vmatpush1.bf16.msra.mxu1 %v5420_v19  ;;  %v5435_v54 = vld [vmem:[#allocation2 + $0x84] ss:$16 sps:$4 sm:$0xff]   ;;  %v5438_v19 = vld [vmem:[#allocation2 + $0x8c] ss:$16 sps:$4 sm:$0xff]  }
 0x6f1   :  { %1850 = vmatprep.subr.bf16.mxu0 %v5423_v41  ;;  %1891 = vmatprep.subr.bf16.mxu1 %v5426_v21  ;;  %6833 = vst [vmem:[#allocation50_spill] sm:$0xff] %v5435_v54  ;;  %6834 = vst [vmem:[#allocation51_spill] sm:$0xff] %v5438_v19  ;;  %v5441_v41 = vld [vmem:[#allocation2 + $0x80] ss:$16 sps:$4 sm:$0xff]   ;;  %v5444_v21 = vld [vmem:[#allocation2 + $0x88] ss:$16 sps:$4 sm:$0xff]  }
 0x6f2   :  { %6835 = vst [vmem:[#allocation52_spill] sm:$0xff] %v5441_v41  ;;  %6836 = vst [vmem:[#allocation53_spill] sm:$0xff] %v5444_v21 }
 0x6f4   :  { %1851 = vmatpush1.bf16.msra.mxu0 %v5429_v22  ;;  %1892 = vmatpush1.bf16.msra.mxu1 %v5432_v25  ;;  %v5447_v22 = vld [vmem:[#allocation2 + $0xa4] ss:$16 sps:$4 sm:$0xff]   ;;  %v5450_v25 = vld [vmem:[#allocation2 + $0xac] ss:$16 sps:$4 sm:$0xff]  }
 0x6f5   :  { %1852 = vmatprep.subr.bf16.mxu0 %v5435_v54  ;;  %1893 = vmatprep.subr.bf16.mxu1 %v5438_v19  ;;  %6837 = vst [vmem:[#allocation54_spill] sm:$0xff] %v5447_v22  ;;  %6838 = vst [vmem:[#allocation55_spill] sm:$0xff] %v5450_v25  ;;  %v5453_v54 = vld [vmem:[#allocation2 + $0xa0] ss:$16 sps:$4 sm:$0xff]   ;;  %v5456_v19 = vld [vmem:[#allocation2 + $0xa8] ss:$16 sps:$4 sm:$0xff]  }
 0x6f6   :  { %6839 = vst [vmem:[#allocation56_spill] sm:$0xff] %v5453_v54  ;;  %6840 = vst [vmem:[#allocation57_spill] sm:$0xff] %v5456_v19 }
 0x6f8   :  { %1853 = vmatpush1.bf16.msra.mxu0 %v5441_v41  ;;  %1894 = vmatpush1.bf16.msra.mxu1 %v5444_v21  ;;  %v5459_v41 = vld [vmem:[#allocation2 + $0xc4] ss:$16 sps:$4 sm:$0xff]   ;;  %v5462_v21 = vld [vmem:[#allocation2 + $0xcc] ss:$16 sps:$4 sm:$0xff]  }
 0x6f9   :  { %1854 = vmatprep.subr.bf16.mxu0 %v5447_v22  ;;  %1895 = vmatprep.subr.bf16.mxu1 %v5450_v25  ;;  %6841 = vst [vmem:[#allocation59_spill] sm:$0xff] %v5459_v41  ;;  %6842 = vst [vmem:[#allocation60_spill] sm:$0xff] %v5462_v21  ;;  %v5465_v22 = vld [vmem:[#allocation2 + $0xc0] ss:$16 sps:$4 sm:$0xff]   ;;  %v5468_v25 = vld [vmem:[#allocation2 + $0xc8] ss:$16 sps:$4 sm:$0xff]  }
 0x6fa   :  { %6843 = vst [vmem:[#allocation61_spill] sm:$0xff] %v5465_v22  ;;  %6844 = vst [vmem:[#allocation62_spill] sm:$0xff] %v5468_v25 }
 0x6fc   :  { %1855 = vmatpush1.bf16.msra.mxu0 %v5453_v54  ;;  %1896 = vmatpush1.bf16.msra.mxu1 %v5456_v19  ;;  %v5471_v54 = vld [vmem:[#allocation2 + $0xe4] ss:$16 sps:$4 sm:$0xff]   ;;  %v5474_v19 = vld [vmem:[#allocation2 + $0xec] ss:$16 sps:$4 sm:$0xff]  }
 0x6fd   :  { %1856 = vmatprep.subr.bf16.mxu0 %v5459_v41  ;;  %1897 = vmatprep.subr.bf16.mxu1 %v5462_v21  ;;  %6845 = vst [vmem:[#allocation63_spill] sm:$0xff] %v5471_v54  ;;  %6846 = vst [vmem:[#allocation64_spill] sm:$0xff] %v5474_v19  ;;  %v5477_v41 = vld [vmem:[#allocation2 + $0xe0] ss:$16 sps:$4 sm:$0xff]   ;;  %v5480_v21 = vld [vmem:[#allocation2 + $0xe8] ss:$16 sps:$4 sm:$0xff]  }
 0x6fe   :  { %6847 = vst [vmem:[#allocation65_spill] sm:$0xff] %v5477_v41  ;;  %6848 = vst [vmem:[#allocation66_spill] sm:$0xff] %v5480_v21 }
 0x700   :  { %1857 = vmatpush1.bf16.msra.mxu0 %v5465_v22  ;;  %1898 = vmatpush1.bf16.msra.mxu1 %v5468_v25 }
 0x701   :  { %1858 = vmatprep.subr.bf16.mxu0 %v5471_v54  ;;  %1899 = vmatprep.subr.bf16.mxu1 %v5474_v19  ;;  %v1711_v54 = vld [vmem:[%s6371_s0] sm:$0xc0]  ;;  %v1712_v19 = vld [vmem:[%s6371_s0 + $0x8] sm:$0xc0] }
 0x704   :  { %1859 = vmatpush1.bf16.msra.mxu0 %v5477_v41  ;;  %1900 = vmatpush1.bf16.msra.mxu1 %v5480_v21 }
 0x705   :  { %1955 = vmatprep.subr.bf16.mxu0 %v5105_v30  ;;  %1996 = vmatprep.subr.bf16.mxu1 %v5108_v37 }
 0x7ba   :  { %v1749_v25 = vpop.f32.mrb[28].mxu0  ;;  %v1790_v22 = vpop.f32.mrb[28].mxu1 }
 0x7bb   :  { %v1801_v60 = vrot.slane %v1749_v25, 2  ;;  %v1751_v41 = vpop.f32.mrb[29].mxu0  ;;  %v1792_v3 = vpop.f32.mrb[29].mxu1  ;;  %v1714_v25 = vld [vmem:[%s6371_s0 + $0x18] sm:$0xc0]  ;;  %v1803_v28 = vrot.slane %v1790_v22, 2 }
 0x7bc   :  { %v1802_v35 = vrot.slane %v1751_v41, 2  ;;  %v1753_v12 = vpop.f32.mrb[30].mxu0  ;;  %v1794_v21 = vpop.f32.mrb[30].mxu1  ;;  %v1804_v29 = vrot.slane %v1792_v3, 2 }
 0x7bd   :  { %v1809_v61 = vadd.f32 %v1801_v60, %v1711_v54  ;;  %v1754_v30 = vpop.f32.mrb[31].mxu0  ;;  %v1795_v40 = vpop.f32.mrb[31].mxu1  ;;  %v1713_v12 = vld [vmem:[%s6371_s0 + $0x10] sm:$0xc0] }
 0x7be   :  { %v1810_v37 = vadd.f32 %v1802_v35, %v1712_v19  ;;  %v1812_v20 = vadd.f32 %v1804_v29, %v1714_v25  ;;  %v1811_v60 = vadd.f32 %v1803_v28, %v1713_v12  ;;  %v1827_v29 = vrot.slane %v5124_v31, 6 }
 0x7bf   :  { %v3473_v39 = vmul.f32 -1.442695, %v1809_v61 }
 0x7c0   :  { %v3474_v38 = vmul.f32 -1.442695, %v1810_v37  ;;  %v3475_v21 = vmul.f32 -1.442695, %v1812_v20 }
 0x7c1   :  { %3924 = vpow2.f32 %v3473_v39 }
 0x7c2   :  { %3926 = vpow2.f32 %v3474_v38 }
 0x7c3   :  { %3928 = vpow2.f32 %v3475_v21 }
 0x7c4   :  { %3930 = vtanh.f32 %v1811_v60 }
 0x7cb   :  { %v3925_v30 = vpop.eup %3924 }
 0x7cc   :  { %v3927_v40 = vpop.eup %3926  ;;  %v1819_v35 = vadd.f32 1.0, %v3925_v30 }
 0x7cd   :  { %v1820_v37 = vadd.f32 1.0, %v3927_v40  ;;  %v3929_v39 = vpop.eup %3928 }
 0x7ce   :  { %3932 = vrcp.f32 %v1819_v35  ;;  %v3931_v61 = vpop.eup %3930  ;;  %v1836_v54 = vadd.f32 1.0, %v3929_v39 }
 0x7cf   :  { %3934 = vrcp.f32 %v1820_v37 }
 0x7d0   :  { %3936 = vrcp.f32 %v1836_v54 }
 0x7d8   :  { %v3933_v3 = vpop.eup %3932 }
 0x7d9   :  { %v3935_v38 = vpop.eup %3934  ;;  %v1830_v19 = vmul.f32 %v3933_v3, %v3931_v61 }
 0x7da   :  { %v1829_v22 = vmul.f32 %v3935_v38, %v1827_v29  ;;  %v3937_v28 = vpop.eup %3936 }
 0x7dc   :  { %v5498_v41 = vadd.f32 %v1830_v19, %v1829_v22 }
 0x7de   :  { %3938 = vtanh.f32 %v5498_v41 }
 0x7e8   :  { %v3939_v20 = vpop.eup %3938 }
 0x7e9   :  { %v1839_v25 = vmul.f32 %v3939_v20, %v3937_v28  ;;  %v6850_v20 = vld [vmem:[#allocation16_spill] sm:$0xff] }
 0x7eb   :  { %v1840_v12 = vpack.c.bf16 %v1839_v25, %v1839_v25  ;;  %v6851_v25 = vld [vmem:[#allocation12_spill] sm:$0xff] }
 0x7ed   :  { %v5501_v21 = vrot.slane %v1840_v12, 3  ;;  %v6853_v12 = vld [vmem:[#allocation14_spill] sm:$0xff] }
 0x7ef   :  { %1877 = vmatmul.mubr.bf16.vlgmr.msra.gmra.mrb[24].mxu0 %v5501_v21  ;;  %1918 = vmatmul.mubr.bf16.vlgmr.msra.gmra.mrb[24].mxu1 %v5501_v21 }
 0x7f0   :  { %1956 = vmatpush1.bf16.msra.mxu0 %v4953_v46  ;;  %1997 = vmatpush1.bf16.msra.mxu1 %v4956_v7 }
 0x7f1   :  { %1957 = vmatprep.subr.bf16.mxu0 %v4959_v13  ;;  %1998 = vmatprep.subr.bf16.mxu1 %v4962_v1 }
 0x7f2   :  { %1987 = vmatprep.mubr.bf16.mxu0 %v6669_v58  ;;  %2028 = vmatprep.mubr.bf16.mxu1 %v6669_v58 }
 0x7f4   :  { %1958 = vmatpush1.bf16.msra.mxu0 %v4967_v10  ;;  %1999 = vmatpush1.bf16.msra.mxu1 %v4970_v55 }
 0x7f5   :  { %1959 = vmatprep.subr.bf16.mxu0 %v4973_v52  ;;  %2000 = vmatprep.subr.bf16.mxu1 %v4976_v2 }
 0x7f8   :  { %1960 = vmatpush1.bf16.msra.mxu0 %v4979_v11  ;;  %2001 = vmatpush1.bf16.msra.mxu1 %v4982_v49 }
 0x7f9   :  { %1961 = vmatprep.subr.bf16.mxu0 %v4985_v50  ;;  %2002 = vmatprep.subr.bf16.mxu1 %v4988_v4 }
 0x7fc   :  { %1962 = vmatpush1.bf16.msra.mxu0 %v4991_v15  ;;  %2003 = vmatpush1.bf16.msra.mxu1 %v5146_v14 }
 0x7fd   :  { %1963 = vmatprep.subr.bf16.mxu0 %v4995_v53  ;;  %2004 = vmatprep.subr.bf16.mxu1 %v5150_v42 }
 0x800   :  { %1964 = vmatpush1.bf16.msra.mxu0 %v4999_v59  ;;  %2005 = vmatpush1.bf16.msra.mxu1 %v5154_v43 }
 0x801   :  { %1965 = vmatprep.subr.bf16.mxu0 %v5003_v6  ;;  %2006 = vmatprep.subr.bf16.mxu1 %v5158_v44 }
 0x804   :  { %1966 = vmatpush1.bf16.msra.mxu0 %v5161_v45  ;;  %2007 = vmatpush1.bf16.msra.mxu1 %v5164_v47 }
 0x805   :  { %1967 = vmatprep.subr.bf16.mxu0 %v5167_v48  ;;  %2008 = vmatprep.subr.bf16.mxu1 %v5170_v51 }
 0x808   :  { %1968 = vmatpush1.bf16.msra.mxu0 %v5173_v33  ;;  %2009 = vmatpush1.bf16.msra.mxu1 %v5176_v34 }
 0x809   :  { %1969 = vmatprep.subr.bf16.mxu0 %v5179_v16  ;;  %2010 = vmatprep.subr.bf16.mxu1 %v5182_v17 }
 0x80c   :  { %1970 = vmatpush1.bf16.msra.mxu0 %v5185_v18  ;;  %2011 = vmatpush1.bf16.msra.mxu1 %v5188_v0 }
 0x80d   :  { %2045 = vmatprep.subr.bf16.mxu0 %v5194_v57  ;;  %2086 = vmatprep.subr.bf16.mxu1 %v5200_v56 }
 0x8c2   :  { %v1878_v46 = vpop.f32.mrb[24].mxu0  ;;  %v1919_v7 = vpop.f32.mrb[24].mxu1 }
 0x8c3   :  { %v3592_v13 = vadd.f32 %v1878_v46, %v4848_v8  ;;  %v1880_v1 = vpop.f32.mrb[25].mxu0  ;;  %v1921_v10 = vpop.f32.mrb[25].mxu1  ;;  %v3594_v59 = vadd.f32 %v1919_v7, %v4857_v63  ;;  %v6855_v46 = vld [vmem:[#allocation15_spill] sm:$0xff]  ;;  %v6856_v7 = vld [vmem:[#allocation21_spill] sm:$0xff] }
 0x8c4   :  { %v3593_v55 = vadd.f32 %v1880_v1, %v4850_v9  ;;  %v1882_v52 = vpop.f32.mrb[26].mxu0  ;;  %v1923_v2 = vpop.f32.mrb[26].mxu1  ;;  %v3595_v15 = vadd.f32 %v1921_v10, %v4854_v62  ;;  %v6858_v1 = vld [vmem:[#allocation9_spill] sm:$0xff]  ;;  %v6859_v10 = vld [vmem:[#allocation18_spill] sm:$0xff] }
 0x8c5   :  { %v3476_v11 = vmul.f32 -1.442695, %v3592_v13  ;;  %v1883_v49 = vpop.f32.mrb[27].mxu0  ;;  %v1924_v50 = vpop.f32.mrb[27].mxu1  ;;  %v6857_v13 = vld [vmem:[#allocation8_spill] sm:$0xff]  ;;  %v6861_v52 = vld [vmem:[#allocation19_spill] sm:$0xff] }
 0x8c6   :  { %v3477_v4 = vmul.f32 -1.442695, %v3593_v55  ;;  %v3478_v53 = vmul.f32 -1.442695, %v3595_v15  ;;  %v6860_v55 = vld [vmem:[#allocation23_spill] sm:$0xff]  ;;  %v6862_v2 = vld [vmem:[#allocation24_spill] sm:$0xff] }
 0x8c7   :  { %3940 = vpow2.f32 %v3476_v11  ;;  %v6863_v11 = vld [vmem:[#allocation22_spill] sm:$0xff]  ;;  %v6864_v49 = vld [vmem:[#allocation25_spill] sm:$0xff]  ;;  %v6867_v15 = vld [vmem:[#allocation28_spill] sm:$0xff] }
 0x8c8   :  { %3942 = vpow2.f32 %v3477_v4  ;;  %v6865_v50 = vld [vmem:[#allocation26_spill] sm:$0xff]  ;;  %v6866_v4 = vld [vmem:[#allocation27_spill] sm:$0xff] }
 0x8c9   :  { %3944 = vpow2.f32 %v3478_v53  ;;  %v6868_v53 = vld [vmem:[#allocation29_spill] sm:$0xff] }
 0x8ca   :  { %3946 = vtanh.f32 %v3594_v59  ;;  %v6869_v59 = vld [vmem:[#allocation30_spill] sm:$0xff] }
 0x8d1   :  { %v3941_v6 = vpop.eup %3940 }
 0x8d2   :  { %v3943_v31 = vpop.eup %3942  ;;  %v1936_v60 = vadd.f32 1.0, %v3941_v6  ;;  %v6870_v6 = vld [vmem:[#allocation31_spill] sm:$0xff] }
 0x8d3   :  { %v1937_v30 = vadd.f32 1.0, %v3943_v31  ;;  %v3945_v40 = vpop.eup %3944  ;;  %v6871_v31 = vld [vmem:[#allocation32_spill] sm:$0xff] }
 0x8d4   :  { %3948 = vrcp.f32 %v1936_v60  ;;  %v3947_v35 = vpop.eup %3946  ;;  %v1950_v3 = vadd.f32 1.0, %v3945_v40  ;;  %v6872_v60 = vld [vmem:[#allocation33_spill] sm:$0xff]  ;;  %v6874_v40 = vld [vmem:[#allocation35_spill] sm:$0xff] }
 0x8d5   :  { %3950 = vrcp.f32 %v1937_v30  ;;  %v6873_v30 = vld [vmem:[#allocation34_spill] sm:$0xff] }
 0x8d6   :  { %3952 = vrcp.f32 %v1950_v3  ;;  %v6879_v3 = vld [vmem:[#allocation40_spill] sm:$0xff] }
 0x8de   :  { %v3949_v37 = vpop.eup %3948 }
 0x8df   :  { %v3951_v39 = vpop.eup %3950  ;;  %v1944_v61 = vmul.f32 %v3949_v37, %v3947_v35  ;;  %v6875_v35 = vld [vmem:[#allocation36_spill] sm:$0xff]  ;;  %v6876_v37 = vld [vmem:[#allocation37_spill] sm:$0xff] }
 0x8e0   :  { %v1943_v29 = vmul.f32 %v3951_v39, %v5208_v36  ;;  %v3953_v19 = vpop.eup %3952  ;;  %v6849_v36 = vld [vmem:[#allocation11_spill] sm:$0xff]  ;;  %v6877_v39 = vld [vmem:[#allocation38_spill] sm:$0xff] }
 0x8e2   :  { %v5544_v38 = vadd.f32 %v1944_v61, %v1943_v29  ;;  %v6878_v61 = vld [vmem:[#allocation39_spill] sm:$0xff]  ;;  %v6880_v29 = vld [vmem:[#allocation41_spill] sm:$0xff] }
 0x8e4   :  { %3954 = vtanh.f32 %v5544_v38 }
 0x8ee   :  { %v3955_v54 = vpop.eup %3954 }
 0x8ef   :  { %v1953_v22 = vmul.f32 %v3955_v54, %v3953_v19  ;;  %v6881_v19 = vld [vmem:[#allocation42_spill] sm:$0xff]  ;;  %v6882_v54 = vld [vmem:[#allocation43_spill] sm:$0xff] }
 0x8f1   :  { %v1954_v28 = vpack.c.bf16 %v1953_v22, %v1953_v22  ;;  %v6884_v22 = vld [vmem:[#allocation45_spill] sm:$0xff] }
 0x8f3   :  { %1988 = vmatmul.mubr.bf16.vlgmr.msra.gmra.mrb[32].mxu0 %v1954_v28  ;;  %2029 = vmatmul.mubr.bf16.vlgmr.msra.gmra.mrb[32].mxu1 %v1954_v28  ;;  %v6885_v28 = vld [vmem:[#allocation46_spill] sm:$0xff] }
 0x8f4   :  { %2046 = vmatpush1.bf16.msra.mxu0 %v5030_v32  ;;  %2087 = vmatpush1.bf16.msra.mxu1 %v5215_v26  ;;  %v6852_v32 = vld [vmem:[#allocation17_spill] sm:$0xff] }
 0x8f5   :  { %2047 = vmatprep.subr.bf16.mxu0 %v5037_v5  ;;  %2088 = vmatprep.subr.bf16.mxu1 %v5222_v23  ;;  %v6854_v5 = vld [vmem:[#allocation20_spill] sm:$0xff] }
 0x8f6   :  { %2077 = vmatprep.mubr.bf16.mxu0 %v6669_v58  ;;  %2118 = vmatprep.mubr.bf16.mxu1 %v6669_v58 }
 0x8f8   :  { %2048 = vmatpush1.bf16.msra.mxu0 %v5230_v24  ;;  %2089 = vmatpush1.bf16.msra.mxu1 %v5236_v27 }
 0x8f9   :  { %2049 = vmatprep.subr.bf16.mxu0 %v6849_v36  ;;  %2090 = vmatprep.subr.bf16.mxu1 %v6850_v20 }
 0x8fc   :  { %2050 = vmatpush1.bf16.msra.mxu0 %v6851_v25  ;;  %2091 = vmatpush1.bf16.msra.mxu1 %v6852_v32 }
 0x8fd   :  { %2051 = vmatprep.subr.bf16.mxu0 %v6853_v12  ;;  %2092 = vmatprep.subr.bf16.mxu1 %v6854_v5 }
 0x900   :  { %2052 = vmatpush1.bf16.msra.mxu0 %v6855_v46  ;;  %2093 = vmatpush1.bf16.msra.mxu1 %v6856_v7 }
 0x901   :  { %2053 = vmatprep.subr.bf16.mxu0 %v6857_v13  ;;  %2094 = vmatprep.subr.bf16.mxu1 %v6858_v1 }
 0x904   :  { %2054 = vmatpush1.bf16.msra.mxu0 %v6859_v10  ;;  %2095 = vmatpush1.bf16.msra.mxu1 %v6860_v55 }
 0x905   :  { %2055 = vmatprep.subr.bf16.mxu0 %v6861_v52  ;;  %2096 = vmatprep.subr.bf16.mxu1 %v6862_v2 }
 0x908   :  { %2056 = vmatpush1.bf16.msra.mxu0 %v6863_v11  ;;  %2097 = vmatpush1.bf16.msra.mxu1 %v6864_v49 }
 0x909   :  { %2057 = vmatprep.subr.bf16.mxu0 %v6865_v50  ;;  %2098 = vmatprep.subr.bf16.mxu1 %v6866_v4 }
 0x90c   :  { %2058 = vmatpush1.bf16.msra.mxu0 %v6867_v15  ;;  %2099 = vmatpush1.bf16.msra.mxu1 %v6868_v53 }
 0x90d   :  { %2059 = vmatprep.subr.bf16.mxu0 %v6869_v59  ;;  %2100 = vmatprep.subr.bf16.mxu1 %v6870_v6 }
 0x910   :  { %2060 = vmatpush1.bf16.msra.mxu0 %v6871_v31  ;;  %2101 = vmatpush1.bf16.msra.mxu1 %v6872_v60  ;;  %v2044_v31 = vld [vmem:[%s6371_s0 + $0x38] sm:$0x3] }
 0x911   :  { %2159 = vmatprep.subr.bf16.mxu0 %v6873_v30  ;;  %2200 = vmatprep.subr.bf16.mxu1 %v6874_v40 }
 0x913   :  { %2078 = vmatmul.mubr.bf16.vlgmr.msra.gmra.mrb[36].mxu0 %v5501_v21  ;;  %2119 = vmatmul.mubr.bf16.vlgmr.msra.gmra.mrb[36].mxu1 %v5501_v21  ;;  %v6883_v21 = vld [vmem:[#allocation44_spill] sm:$0xff] }
 0x914   :  { %2160 = vmatpush1.bf16.msra.mxu0 %v6875_v35  ;;  %2201 = vmatpush1.bf16.msra.mxu1 %v6876_v37  ;;  %v6888_v37 = vld [vmem:[#allocation49_spill] sm:$0xff]  ;;  %v6889_v35 = vld [vmem:[#allocation50_spill] sm:$0xff] }
 0x915   :  { %2161 = vmatprep.subr.bf16.mxu0 %v6877_v39  ;;  %2202 = vmatprep.subr.bf16.mxu1 %v6878_v61  ;;  %v6886_v39 = vld [vmem:[#allocation47_spill] sm:$0xff]  ;;  %v6887_v61 = vld [vmem:[#allocation48_spill] sm:$0xff] }
 0x916   :  { %2191 = vmatprep.mubr.bf16.mxu0 %v6669_v58  ;;  %2232 = vmatprep.mubr.bf16.mxu1 %v6669_v58 }
 0x918   :  { %2162 = vmatpush1.bf16.msra.mxu0 %v6879_v3  ;;  %2203 = vmatpush1.bf16.msra.mxu1 %v6880_v29  ;;  %v6890_v3 = vld [vmem:[#allocation51_spill] sm:$0xff]  ;;  %v6891_v29 = vld [vmem:[#allocation52_spill] sm:$0xff] }
 0x919   :  { %2163 = vmatprep.subr.bf16.mxu0 %v6881_v19  ;;  %2204 = vmatprep.subr.bf16.mxu1 %v6882_v54  ;;  %v6892_v19 = vld [vmem:[#allocation53_spill] sm:$0xff]  ;;  %v6893_v54 = vld [vmem:[#allocation54_spill] sm:$0xff] }
 0x91c   :  { %2164 = vmatpush1.bf16.msra.mxu0 %v6883_v21  ;;  %2205 = vmatpush1.bf16.msra.mxu1 %v6884_v22  ;;  %v6894_v21 = vld [vmem:[#allocation55_spill] sm:$0xff]  ;;  %v6895_v22 = vld [vmem:[#allocation56_spill] sm:$0xff] }
 0x91d   :  { %2165 = vmatprep.subr.bf16.mxu0 %v6885_v28  ;;  %2206 = vmatprep.subr.bf16.mxu1 %v6886_v39  ;;  %v6896_v28 = vld [vmem:[#allocation57_spill] sm:$0xff]  ;;  %v6897_v39 = vld [vmem:[#allocation59_spill] sm:$0xff] }
 0x920   :  { %2166 = vmatpush1.bf16.msra.mxu0 %v6887_v61  ;;  %2207 = vmatpush1.bf16.msra.mxu1 %v6888_v37  ;;  %v6898_v61 = vld [vmem:[#allocation60_spill] sm:$0xff]  ;;  %v6899_v37 = vld [vmem:[#allocation61_spill] sm:$0xff] }
 0x921   :  { %2167 = vmatprep.subr.bf16.mxu0 %v6889_v35  ;;  %2208 = vmatprep.subr.bf16.mxu1 %v6890_v3  ;;  %v6900_v35 = vld [vmem:[#allocation62_spill] sm:$0xff]  ;;  %v6901_v3 = vld [vmem:[#allocation63_spill] sm:$0xff] }
 0x924   :  { %2168 = vmatpush1.bf16.msra.mxu0 %v6891_v29  ;;  %2209 = vmatpush1.bf16.msra.mxu1 %v6892_v19  ;;  %v6902_v29 = vld [vmem:[#allocation64_spill] sm:$0xff]  ;;  %v6903_v19 = vld [vmem:[#allocation65_spill] sm:$0xff] }
 0x925   :  { %2169 = vmatprep.subr.bf16.mxu0 %v6893_v54  ;;  %2210 = vmatprep.subr.bf16.mxu1 %v6894_v21  ;;  %v6904_v54 = vld [vmem:[#allocation66_spill] sm:$0xff] }
 0x926   :  { %v6905_v21 = vld [vmem:[#allocation10_spill] sm:$0xff] }
 0x928   :  { %2170 = vmatpush1.bf16.msra.mxu0 %v6895_v22  ;;  %2211 = vmatpush1.bf16.msra.mxu1 %v6896_v28  ;;  %v6906_v22 = vld [vmem:[#allocation13_spill] sm:$0xff] }
 0x929   :  { %2171 = vmatprep.subr.bf16.mxu0 %v6897_v39  ;;  %2212 = vmatprep.subr.bf16.mxu1 %v6898_v61  ;;  %v2041_v61 = vld [vmem:[%s6371_s0 + $0x20] sm:$0x3] }
 0x92c   :  { %2172 = vmatpush1.bf16.msra.mxu0 %v6899_v37  ;;  %2213 = vmatpush1.bf16.msra.mxu1 %v6900_v35  ;;  %v2042_v35 = vld [vmem:[%s6371_s0 + $0x28] sm:$0x3] }
 0x92d   :  { %2173 = vmatprep.subr.bf16.mxu0 %v6901_v3  ;;  %2214 = vmatprep.subr.bf16.mxu1 %v6902_v29 }
 0x930   :  { %2174 = vmatpush1.bf16.msra.mxu0 %v6903_v19  ;;  %2215 = vmatpush1.bf16.msra.mxu1 %v6904_v54 }
 0x931   :  { %2270 = vmatprep.subr.bf16.mxu0 %v6905_v21  ;;  %2311 = vmatprep.subr.bf16.mxu1 %v6906_v22 }
 0x9e6   :  { %v2079_v37 = vpop.f32.mrb[36].mxu0  ;;  %v2120_v3 = vpop.f32.mrb[36].mxu1 }
 0x9e7   :  { %v2127_v39 = vadd.f32 %v2079_v37, %v2041_v61  ;;  %v2081_v29 = vpop.f32.mrb[37].mxu0  ;;  %v2122_v28 = vpop.f32.mrb[37].mxu1  ;;  %v2043_v37 = vld [vmem:[%s6371_s0 + $0x30] sm:$0x3] }
 0x9e8   :  { %v2128_v19 = vadd.f32 %v2081_v29, %v2042_v35  ;;  %v2083_v40 = vpop.f32.mrb[38].mxu0  ;;  %v2124_v54 = vpop.f32.mrb[38].mxu1  ;;  %v2130_v6 = vadd.f32 %v2122_v28, %v2044_v31  ;;  %v2129_v59 = vadd.f32 %v2120_v3, %v2043_v37 }
 0x9e9   :  { %v3479_v30 = vmul.f32 -1.442695, %v2127_v39  ;;  %v2084_v21 = vpop.f32.mrb[39].mxu0  ;;  %v2125_v60 = vpop.f32.mrb[39].mxu1  ;;  %v2145_v54 = vrot.slane %v5498_v41, 6 }
 0x9ea   :  { %v3480_v22 = vmul.f32 -1.442695, %v2128_v19  ;;  %v3481_v61 = vmul.f32 -1.442695, %v2130_v6  ;;  %v5640_v41 = vld [vmem:[#allocation4 + $0x8] ss:$16 sps:$4 sm:$0xff]  }
 0x9eb   :  { %3956 = vpow2.f32 %v3479_v30 }
 0x9ec   :  { %3958 = vpow2.f32 %v3480_v22 }
 0x9ed   :  { %3960 = vpow2.f32 %v3481_v61  ;;  %v5637_v61 = vld [vmem:[#allocation4] ss:$16 sps:$4 sm:$0xff]  }
 0x9ee   :  { %3962 = vtanh.f32 %v2129_v59 }
 0x9f5   :  { %v3957_v35 = vpop.eup %3956 }
 0x9f6   :  { %v3959_v40 = vpop.eup %3958  ;;  %v2137_v29 = vadd.f32 1.0, %v3957_v35  ;;  %v5643_v35 = vld [vmem:[#allocation4 + $0x24] ss:$16 sps:$4 sm:$0xff]  }
 0x9f7   :  { %v2138_v60 = vadd.f32 1.0, %v3959_v40  ;;  %v3961_v30 = vpop.eup %3960  ;;  %v5646_v40 = vld [vmem:[#allocation4 + $0x2c] ss:$16 sps:$4 sm:$0xff]  }
 0x9f8   :  { %3964 = vrcp.f32 %v2137_v29  ;;  %v3963_v39 = vpop.eup %3962  ;;  %v2154_v21 = vadd.f32 1.0, %v3961_v30  ;;  %v5651_v29 = vld [vmem:[#allocation4 + $0x20] ss:$16 sps:$4 sm:$0xff]   ;;  %v5657_v30 = vld [vmem:[#allocation4 + $0x44] ss:$16 sps:$4 sm:$0xff]  }
 0x9f9   :  { %3966 = vrcp.f32 %v2138_v60  ;;  %v5654_v60 = vld [vmem:[#allocation4 + $0x28] ss:$16 sps:$4 sm:$0xff]  }
 0x9fa   :  { %3968 = vrcp.f32 %v2154_v21  ;;  %v5675_v21 = vld [vmem:[#allocation4 + $0x60] ss:$16 sps:$4 sm:$0xff]  }
 0xa02   :  { %v3965_v19 = vpop.eup %3964 }
 0xa03   :  { %v3967_v31 = vpop.eup %3966  ;;  %v2148_v28 = vmul.f32 %v3965_v19, %v3963_v39  ;;  %v5660_v39 = vld [vmem:[#allocation4 + $0x4c] ss:$16 sps:$4 sm:$0xff]   ;;  %v5663_v19 = vld [vmem:[#allocation4 + $0x40] ss:$16 sps:$4 sm:$0xff]  }
 0xa04   :  { %v2147_v22 = vmul.f32 %v3967_v31, %v2145_v54  ;;  %v3969_v6 = vpop.eup %3968  ;;  %v5666_v54 = vld [vmem:[#allocation4 + $0x48] ss:$16 sps:$4 sm:$0xff]   ;;  %v5669_v31 = vld [vmem:[#allocation4 + $0x64] ss:$16 sps:$4 sm:$0xff]  }
 0xa06   :  { %v5630_v53 = vadd.f32 %v2148_v28, %v2147_v22  ;;  %v5672_v28 = vld [vmem:[#allocation4 + $0x6c] ss:$16 sps:$4 sm:$0xff]   ;;  %v5679_v22 = vld [vmem:[#allocation4 + $0x84] ss:$16 sps:$4 sm:$0xff]  }
 0xa08   :  { %3970 = vtanh.f32 %v5630_v53 }
 0xa12   :  { %v3971_v3 = vpop.eup %3970 }
 0xa13   :  { %v2157_v59 = vmul.f32 %v3971_v3, %v3969_v6  ;;  %v5683_v6 = vld [vmem:[#allocation4 + $0x80] ss:$16 sps:$4 sm:$0xff]   ;;  %v5687_v3 = vld [vmem:[#allocation4 + $0xa4] ss:$16 sps:$4 sm:$0xff]  }
 0xa15   :  { %v5633_v37 = vpack.c.bf16 %v2157_v59, %v2157_v59 }
 0xa17   :  { %2192 = vmatmul.mubr.bf16.vlgmr.msra.gmra.mrb[32].mxu0 %v5633_v37  ;;  %2233 = vmatmul.mubr.bf16.vlgmr.msra.gmra.mrb[32].mxu1 %v5633_v37 }
 0xa18   :  { %2271 = vmatpush1.bf16.msra.mxu0 %v5637_v61  ;;  %2312 = vmatpush1.bf16.msra.mxu1 %v5640_v41 }
 0xa19   :  { %2272 = vmatprep.subr.bf16.mxu0 %v5643_v35  ;;  %2313 = vmatprep.subr.bf16.mxu1 %v5646_v40 }
 0xa1a   :  { %2302 = vmatprep.mubr.bf16.mxu0 %v6669_v58  ;;  %2343 = vmatprep.mubr.bf16.mxu1 %v6669_v58 }
 0xa1c   :  { %2273 = vmatpush1.bf16.msra.mxu0 %v5651_v29  ;;  %2314 = vmatpush1.bf16.msra.mxu1 %v5654_v60 }
 0xa1d   :  { %2274 = vmatprep.subr.bf16.mxu0 %v5657_v30  ;;  %2315 = vmatprep.subr.bf16.mxu1 %v5660_v39 }
 0xa20   :  { %2275 = vmatpush1.bf16.msra.mxu0 %v5663_v19  ;;  %2316 = vmatpush1.bf16.msra.mxu1 %v5666_v54 }
 0xa21   :  { %2276 = vmatprep.subr.bf16.mxu0 %v5669_v31  ;;  %2317 = vmatprep.subr.bf16.mxu1 %v5672_v28 }
 0xa24   :  { %2277 = vmatpush1.bf16.msra.mxu0 %v5675_v21  ;;  %2318 = vmatpush1.bf16.msra.mxu1 %v5146_v14 }
 0xa25   :  { %2278 = vmatprep.subr.bf16.mxu0 %v5679_v22  ;;  %2319 = vmatprep.subr.bf16.mxu1 %v5150_v42 }
 0xa28   :  { %2279 = vmatpush1.bf16.msra.mxu0 %v5683_v6  ;;  %2320 = vmatpush1.bf16.msra.mxu1 %v5154_v43 }
 0xa29   :  { %2280 = vmatprep.subr.bf16.mxu0 %v5687_v3  ;;  %2321 = vmatprep.subr.bf16.mxu1 %v5158_v44 }
 0xa2c   :  { %2281 = vmatpush1.bf16.msra.mxu0 %v5161_v45  ;;  %2322 = vmatpush1.bf16.msra.mxu1 %v5164_v47 }
 0xa2d   :  { %2282 = vmatprep.subr.bf16.mxu0 %v5167_v48  ;;  %2323 = vmatprep.subr.bf16.mxu1 %v5170_v51 }
 0xa30   :  { %2283 = vmatpush1.bf16.msra.mxu0 %v5173_v33  ;;  %2324 = vmatpush1.bf16.msra.mxu1 %v5176_v34 }
 0xa31   :  { %2284 = vmatprep.subr.bf16.mxu0 %v5179_v16  ;;  %2325 = vmatprep.subr.bf16.mxu1 %v5182_v17 }
 0xa34   :  { %2285 = vmatpush1.bf16.msra.mxu0 %v5185_v18  ;;  %2326 = vmatpush1.bf16.msra.mxu1 %v5188_v0 }
 0xa35   :  { %2360 = vmatprep.subr.bf16.mxu0 %v5194_v57  ;;  %2401 = vmatprep.subr.bf16.mxu1 %v5200_v56 }
 0xaea   :  { %v2193_v14 = vpop.f32.mrb[32].mxu0  ;;  %v2234_v42 = vpop.f32.mrb[32].mxu1 }
 0xaeb   :  { %v3596_v43 = vadd.f32 %v2193_v14, %v4848_v8  ;;  %v2195_v44 = vpop.f32.mrb[33].mxu0  ;;  %v2236_v45 = vpop.f32.mrb[33].mxu1  ;;  %v3598_v57 = vadd.f32 %v2234_v42, %v4857_v63 }
 0xaec   :  { %v3597_v47 = vadd.f32 %v2195_v44, %v4850_v9  ;;  %v2197_v48 = vpop.f32.mrb[34].mxu0  ;;  %v2238_v51 = vpop.f32.mrb[34].mxu1  ;;  %v3599_v18 = vadd.f32 %v2236_v45, %v4854_v62 }
 0xaed   :  { %v3482_v33 = vmul.f32 -1.442695, %v3596_v43  ;;  %v2198_v34 = vpop.f32.mrb[35].mxu0  ;;  %v2239_v16 = vpop.f32.mrb[35].mxu1 }
 0xaee   :  { %v3483_v17 = vmul.f32 -1.442695, %v3597_v47  ;;  %v3484_v0 = vmul.f32 -1.442695, %v3599_v18 }
 0xaef   :  { %3972 = vpow2.f32 %v3482_v33 }
 0xaf0   :  { %3974 = vpow2.f32 %v3483_v17 }
 0xaf1   :  { %3976 = vpow2.f32 %v3484_v0  ;;  %v6931_v0 = vld [vmem:[#allocation53_spill] sm:$0xff] }
 0xaf2   :  { %3978 = vtanh.f32 %v3598_v57  ;;  %v6932_v57 = vld [vmem:[#allocation54_spill] sm:$0xff] }
 0xaf9   :  { %v3973_v56 = vpop.eup %3972 }
 0xafa   :  { %v3975_v59 = vpop.eup %3974  ;;  %v2251_v14 = vadd.f32 1.0, %v3973_v56  ;;  %v6933_v56 = vld [vmem:[#allocation55_spill] sm:$0xff] }
 0xafb   :  { %v2252_v8 = vadd.f32 1.0, %v3975_v59  ;;  %v3977_v44 = vpop.eup %3976  ;;  %v6934_v59 = vld [vmem:[#allocation56_spill] sm:$0xff] }
 0xafc   :  { %3980 = vrcp.f32 %v2251_v14  ;;  %v3979_v43 = vpop.eup %3978  ;;  %v2265_v33 = vadd.f32 1.0, %v3977_v44  ;;  %v6935_v14 = vld [vmem:[#allocation57_spill] sm:$0xff]  ;;  %v6936_v44 = vld [vmem:[#allocation59_spill] sm:$0xff] }
 0xafd   :  { %3982 = vrcp.f32 %v2252_v8  ;;  %v5714_v8 = vld [vmem:[%s6372_s1] ss:$16 sps:$4 sm:$0xff]  }
 0xafe   :  { %3984 = vrcp.f32 %v2265_v33  ;;  %v6941_v33 = vld [vmem:[#allocation64_spill] sm:$0xff] }
 0xb06   :  { %v3981_v48 = vpop.eup %3980 }
 0xb07   :  { %v3983_v51 = vpop.eup %3982  ;;  %v2259_v47 = vmul.f32 %v3981_v48, %v3979_v43  ;;  %v6937_v43 = vld [vmem:[#allocation60_spill] sm:$0xff]  ;;  %v6938_v48 = vld [vmem:[#allocation61_spill] sm:$0xff] }
 0xb08   :  { %v2258_v34 = vmul.f32 %v3983_v51, %v5544_v38  ;;  %v3985_v42 = vpop.eup %3984  ;;  %v5721_v38 = vld [vmem:[%s6372_s1 + $0x24] ss:$16 sps:$4 sm:$0xff]  }
 0xb09   :  { %v6939_v51 = vld [vmem:[#allocation62_spill] sm:$0xff] }
 0xb0a   :  { %v5708_v45 = vadd.f32 %v2259_v47, %v2258_v34  ;;  %v6940_v47 = vld [vmem:[#allocation63_spill] sm:$0xff]  ;;  %v6942_v34 = vld [vmem:[#allocation65_spill] sm:$0xff] }
 0xb0c   :  { %3986 = vtanh.f32 %v5708_v45 }
 0xb16   :  { %v3987_v16 = vpop.eup %3986 }
 0xb17   :  { %v2268_v17 = vmul.f32 %v3987_v16, %v3985_v42  ;;  %v6943_v42 = vld [vmem:[#allocation66_spill] sm:$0xff] }
 0xb18   :  { %v5789_v16 = vld [vmem:[#allocation4 + $0x4] ss:$16 sps:$4 sm:$0xff]  }
 0xb19   :  { %v2269_v18 = vpack.c.bf16 %v2268_v17, %v2268_v17  ;;  %v5792_v17 = vld [vmem:[#allocation4 + $0xc] ss:$16 sps:$4 sm:$0xff]  }
 0xb1b   :  { %2303 = vmatmul.mubr.bf16.vlgmr.msra.gmra.mrb[40].mxu0 %v2269_v18  ;;  %2344 = vmatmul.mubr.bf16.vlgmr.msra.gmra.mrb[40].mxu1 %v2269_v18  ;;  %v2356_v18 = vld [vmem:[%s6371_s0 + $0x20] sm:$0xc] }
 0xb1c   :  { %2361 = vmatpush1.bf16.msra.mxu0 %v5714_v8  ;;  %2402 = vmatpush1.bf16.msra.mxu1 %v5215_v26  ;;  %v6907_v26 = vld [vmem:[#allocation29_spill] sm:$0xff] }
 0xb1d   :  { %2362 = vmatprep.subr.bf16.mxu0 %v5721_v38  ;;  %2403 = vmatprep.subr.bf16.mxu1 %v5222_v23  ;;  %v6908_v23 = vld [vmem:[#allocation30_spill] sm:$0xff] }
 0xb1e   :  { %2392 = vmatprep.mubr.bf16.mxu0 %v6669_v58  ;;  %2433 = vmatprep.mubr.bf16.mxu1 %v6669_v58 }
 0xb20   :  { %2363 = vmatpush1.bf16.msra.mxu0 %v5230_v24  ;;  %2404 = vmatpush1.bf16.msra.mxu1 %v5236_v27  ;;  %v6909_v24 = vld [vmem:[#allocation31_spill] sm:$0xff]  ;;  %v6910_v27 = vld [vmem:[#allocation32_spill] sm:$0xff] }
 0xb21   :  { %2364 = vmatprep.subr.bf16.mxu0 %v6849_v36  ;;  %2405 = vmatprep.subr.bf16.mxu1 %v6850_v20  ;;  %v6911_v36 = vld [vmem:[#allocation33_spill] sm:$0xff]  ;;  %v6912_v20 = vld [vmem:[#allocation34_spill] sm:$0xff] }
 0xb24   :  { %2365 = vmatpush1.bf16.msra.mxu0 %v6851_v25  ;;  %2406 = vmatpush1.bf16.msra.mxu1 %v6852_v32  ;;  %v6913_v25 = vld [vmem:[#allocation35_spill] sm:$0xff]  ;;  %v6914_v32 = vld [vmem:[#allocation36_spill] sm:$0xff] }
 0xb25   :  { %2366 = vmatprep.subr.bf16.mxu0 %v6853_v12  ;;  %2407 = vmatprep.subr.bf16.mxu1 %v6854_v5  ;;  %v6915_v12 = vld [vmem:[#allocation37_spill] sm:$0xff]  ;;  %v6916_v5 = vld [vmem:[#allocation38_spill] sm:$0xff] }
 0xb28   :  { %2367 = vmatpush1.bf16.msra.mxu0 %v6855_v46  ;;  %2408 = vmatpush1.bf16.msra.mxu1 %v6856_v7  ;;  %v6917_v46 = vld [vmem:[#allocation39_spill] sm:$0xff]  ;;  %v6918_v7 = vld [vmem:[#allocation40_spill] sm:$0xff] }
 0xb29   :  { %2368 = vmatprep.subr.bf16.mxu0 %v6857_v13  ;;  %2409 = vmatprep.subr.bf16.mxu1 %v6858_v1  ;;  %v6919_v13 = vld [vmem:[#allocation41_spill] sm:$0xff]  ;;  %v6920_v1 = vld [vmem:[#allocation42_spill] sm:$0xff] }
 0xb2c   :  { %2369 = vmatpush1.bf16.msra.mxu0 %v6859_v10  ;;  %2410 = vmatpush1.bf16.msra.mxu1 %v6860_v55  ;;  %v6921_v10 = vld [vmem:[#allocation43_spill] sm:$0xff]  ;;  %v6922_v55 = vld [vmem:[#allocation44_spill] sm:$0xff] }
 0xb2d   :  { %2370 = vmatprep.subr.bf16.mxu0 %v6861_v52  ;;  %2411 = vmatprep.subr.bf16.mxu1 %v6862_v2  ;;  %v6923_v52 = vld [vmem:[#allocation45_spill] sm:$0xff]  ;;  %v6924_v2 = vld [vmem:[#allocation46_spill] sm:$0xff] }
 0xb30   :  { %2371 = vmatpush1.bf16.msra.mxu0 %v6863_v11  ;;  %2412 = vmatpush1.bf16.msra.mxu1 %v6864_v49  ;;  %v6925_v11 = vld [vmem:[#allocation47_spill] sm:$0xff]  ;;  %v6926_v49 = vld [vmem:[#allocation48_spill] sm:$0xff] }
 0xb31   :  { %2372 = vmatprep.subr.bf16.mxu0 %v6865_v50  ;;  %2413 = vmatprep.subr.bf16.mxu1 %v6866_v4  ;;  %v6927_v50 = vld [vmem:[#allocation49_spill] sm:$0xff]  ;;  %v6928_v4 = vld [vmem:[#allocation50_spill] sm:$0xff] }
 0xb34   :  { %2373 = vmatpush1.bf16.msra.mxu0 %v6867_v15  ;;  %2414 = vmatpush1.bf16.msra.mxu1 %v6907_v26  ;;  %v6929_v15 = vld [vmem:[#allocation51_spill] sm:$0xff] }
 0xb35   :  { %2374 = vmatprep.subr.bf16.mxu0 %v6908_v23  ;;  %2415 = vmatprep.subr.bf16.mxu1 %v6909_v24 }
 0xb38   :  { %2375 = vmatpush1.bf16.msra.mxu0 %v6910_v27  ;;  %2416 = vmatpush1.bf16.msra.mxu1 %v6911_v36  ;;  %v2357_v27 = vld [vmem:[%s6371_s0 + $0x28] sm:$0xc] }
 0xb39   :  { %2489 = vmatprep.subr.bf16.mxu0 %v6912_v20  ;;  %2530 = vmatprep.subr.bf16.mxu1 %v6913_v25 }
 0xb3b   :  { %2393 = vmatmul.mubr.bf16.vlgmr.msra.gmra.mrb[44].mxu0 %v5633_v37  ;;  %2434 = vmatmul.mubr.bf16.vlgmr.msra.gmra.mrb[44].mxu1 %v5633_v37  ;;  %v6930_v37 = vld [vmem:[#allocation52_spill] sm:$0xff] }
 0xb3c   :  { %2490 = vmatpush1.bf16.msra.mxu0 %v6914_v32  ;;  %2531 = vmatpush1.bf16.msra.mxu1 %v6915_v12 }
 0xb3d   :  { %2491 = vmatprep.subr.bf16.mxu0 %v6916_v5  ;;  %2532 = vmatprep.subr.bf16.mxu1 %v6917_v46 }
 0xb3e   :  { %2521 = vmatprep.mubr.bf16.mxu0 %v6669_v58  ;;  %2562 = vmatprep.mubr.bf16.mxu1 %v6669_v58 }
 0xb40   :  { %2492 = vmatpush1.bf16.msra.mxu0 %v6918_v7  ;;  %2533 = vmatpush1.bf16.msra.mxu1 %v6919_v13 }
 0xb41   :  { %2493 = vmatprep.subr.bf16.mxu0 %v6920_v1  ;;  %2534 = vmatprep.subr.bf16.mxu1 %v6921_v10 }
 0xb44   :  { %2494 = vmatpush1.bf16.msra.mxu0 %v6922_v55  ;;  %2535 = vmatpush1.bf16.msra.mxu1 %v6923_v52  ;;  %v2359_v52 = vld [vmem:[%s6371_s0 + $0x38] sm:$0xc] }
 0xb45   :  { %2495 = vmatprep.subr.bf16.mxu0 %v6924_v2  ;;  %2536 = vmatprep.subr.bf16.mxu1 %v6925_v11 }
 0xb48   :  { %2496 = vmatpush1.bf16.msra.mxu0 %v6926_v49  ;;  %2537 = vmatpush1.bf16.msra.mxu1 %v6927_v50  ;;  %v2358_v49 = vld [vmem:[%s6371_s0 + $0x30] sm:$0xc] }
 0xb49   :  { %2497 = vmatprep.subr.bf16.mxu0 %v6928_v4  ;;  %2538 = vmatprep.subr.bf16.mxu1 %v6929_v15 }
 0xb4c   :  { %2498 = vmatpush1.bf16.msra.mxu0 %v6930_v37  ;;  %2539 = vmatpush1.bf16.msra.mxu1 %v6931_v0 }
 0xb4d   :  { %2499 = vmatprep.subr.bf16.mxu0 %v6932_v57  ;;  %2540 = vmatprep.subr.bf16.mxu1 %v6933_v56 }
 0xb50   :  { %2500 = vmatpush1.bf16.msra.mxu0 %v6934_v59  ;;  %2541 = vmatpush1.bf16.msra.mxu1 %v6935_v14 }
 0xb51   :  { %2501 = vmatprep.subr.bf16.mxu0 %v6936_v44  ;;  %2542 = vmatprep.subr.bf16.mxu1 %v6937_v43  ;;  %v2472_v44 = vrot.slane %v5630_v53, 6  ;;  %v5830_v53 = vld [vmem:[#allocation4 + $0x68] ss:$16 sps:$4 sm:$0xff]  }
 0xb54   :  { %2502 = vmatpush1.bf16.msra.mxu0 %v6938_v48  ;;  %2543 = vmatpush1.bf16.msra.mxu1 %v6939_v51 }
 0xb55   :  { %2503 = vmatprep.subr.bf16.mxu0 %v6940_v47  ;;  %2544 = vmatprep.subr.bf16.mxu1 %v6941_v33 }
 0xb58   :  { %2504 = vmatpush1.bf16.msra.mxu0 %v6942_v34  ;;  %2545 = vmatpush1.bf16.msra.mxu1 %v6943_v42 }
 0xb59   :  { %2600 = vmatprep.subr.bf16.mxu0 %v5789_v16  ;;  %2641 = vmatprep.subr.bf16.mxu1 %v5792_v17 }
 0xc0e   :  { %v2394_v26 = vpop.f32.mrb[44].mxu0  ;;  %v2435_v23 = vpop.f32.mrb[44].mxu1 }
 0xc0f   :  { %v2446_v24 = vrot.slane %v2394_v26, 6  ;;  %v2396_v36 = vpop.f32.mrb[45].mxu0  ;;  %v2437_v20 = vpop.f32.mrb[45].mxu1  ;;  %v2448_v11 = vrot.slane %v2435_v23, 6 }
 0xc10   :  { %v2447_v25 = vrot.slane %v2396_v36, 6  ;;  %v2398_v32 = vpop.f32.mrb[46].mxu0  ;;  %v2439_v12 = vpop.f32.mrb[46].mxu1  ;;  %v2449_v55 = vrot.slane %v2437_v20, 6  ;;  %v5842_v36 = vld [vmem:[#allocation4 + $0xac] ss:$16 sps:$4 sm:$0xff]  }
 0xc11   :  { %v2454_v5 = vadd.f32 %v2446_v24, %v2356_v18  ;;  %v2399_v46 = vpop.f32.mrb[47].mxu0  ;;  %v2440_v7 = vpop.f32.mrb[47].mxu1  ;;  %v2456_v4 = vadd.f32 %v2448_v11, %v2358_v49  ;;  %v5834_v24 = vld [vmem:[#allocation4 + $0x8c] ss:$16 sps:$4 sm:$0xff]   ;;  %v5845_v20 = vld [vmem:[#allocation4 + $0xa0] ss:$16 sps:$4 sm:$0xff]  }
 0xc12   :  { %v2455_v13 = vadd.f32 %v2447_v25, %v2357_v27  ;;  %v2457_v2 = vadd.f32 %v2449_v55, %v2359_v52  ;;  %v5838_v27 = vld [vmem:[#allocation4 + $0x88] ss:$16 sps:$4 sm:$0xff]   ;;  %v5851_v32 = vld [vmem:[#allocation4 + $0xc4] ss:$16 sps:$4 sm:$0xff]   ;;  %v5854_v12 = vld [vmem:[#allocation4 + $0xcc] ss:$16 sps:$4 sm:$0xff]  }
 0xc13   :  { %v3485_v1 = vmul.f32 -1.442695, %v2454_v5  ;;  %v5848_v25 = vld [vmem:[#allocation4 + $0xa8] ss:$16 sps:$4 sm:$0xff]   ;;  %v5857_v5 = vld [vmem:[#allocation4 + $0xc0] ss:$16 sps:$4 sm:$0xff]  }
 0xc14   :  { %v3486_v10 = vmul.f32 -1.442695, %v2455_v13  ;;  %v3487_v50 = vmul.f32 -1.442695, %v2457_v2  ;;  %v5860_v46 = vld [vmem:[#allocation4 + $0xc8] ss:$16 sps:$4 sm:$0xff]  }
 0xc15   :  { %3988 = vpow2.f32 %v3485_v1  ;;  %v5863_v7 = vld [vmem:[#allocation4 + $0xe4] ss:$16 sps:$4 sm:$0xff]   ;;  %v5866_v13 = vld [vmem:[#allocation4 + $0xec] ss:$16 sps:$4 sm:$0xff]   ;;  %v5869_v1 = vld [vmem:[#allocation4 + $0xe0] ss:$16 sps:$4 sm:$0xff]  }
 0xc16   :  { %3990 = vpow2.f32 %v3486_v10  ;;  %v5872_v10 = vld [vmem:[#allocation4 + $0xe8] ss:$16 sps:$4 sm:$0xff]   ;;  %v5878_v55 = vld [vmem:[%s6372_s1 + $0x4] ss:$16 sps:$4 sm:$0xff]   ;;  %v5884_v52 = vld [vmem:[%s6372_s1 + $0xc] ss:$16 sps:$4 sm:$0xff]  }
 0xc17   :  { %3992 = vpow2.f32 %v3487_v50  ;;  %v6944_v49 = vld [vmem:[#allocation58_spill] sm:$0xff] }
 0xc18   :  { %3994 = vtanh.f32 %v2456_v4 }
 0xc1f   :  { %v3989_v15 = vpop.eup %3988 }
 0xc20   :  { %v3991_v37 = vpop.eup %3990  ;;  %v2464_v0 = vadd.f32 1.0, %v3989_v15 }
 0xc21   :  { %v2465_v57 = vadd.f32 1.0, %v3991_v37  ;;  %v3993_v56 = vpop.eup %3992 }
 0xc22   :  { %3996 = vrcp.f32 %v2464_v0  ;;  %v3995_v59 = vpop.eup %3994  ;;  %v2481_v51 = vadd.f32 1.0, %v3993_v56 }
 0xc23   :  { %3998 = vrcp.f32 %v2465_v57 }
 0xc24   :  { %4000 = vrcp.f32 %v2481_v51 }
 0xc2c   :  { %v3997_v14 = vpop.eup %3996 }
 0xc2d   :  { %v3999_v43 = vpop.eup %3998  ;;  %v2475_v48 = vmul.f32 %v3997_v14, %v3995_v59 }
 0xc2e   :  { %v2474_v47 = vmul.f32 %v3999_v43, %v2472_v44  ;;  %v4001_v34 = vpop.eup %4000 }
 0xc30   :  { %v5808_v33 = vadd.f32 %v2475_v48, %v2474_v47 }
 0xc32   :  { %4002 = vtanh.f32 %v5808_v33 }
 0xc3c   :  { %v4003_v42 = vpop.eup %4002 }
 0xc3d   :  { %v2484_v18 = vmul.f32 %v4003_v42, %v4001_v34 }
 0xc3f   :  { %v2485_v26 = vpack.c.bf16 %v2484_v18, %v2484_v18 }
 0xc41   :  { %v5811_v23 = vrot.slane %v2485_v26, 1 }
 0xc43   :  { %2522 = vmatmul.mubr.bf16.vlgmr.msra.gmra.mrb[40].mxu0 %v5811_v23  ;;  %2563 = vmatmul.mubr.bf16.vlgmr.msra.gmra.mrb[40].mxu1 %v5811_v23 }
 0xc44   :  { %2601 = vmatpush1.bf16.msra.mxu0 %v5637_v61  ;;  %2642 = vmatpush1.bf16.msra.mxu1 %v5640_v41 }
 0xc45   :  { %2602 = vmatprep.subr.bf16.mxu0 %v5643_v35  ;;  %2643 = vmatprep.subr.bf16.mxu1 %v5646_v40 }
 0xc46   :  { %2632 = vmatprep.mubr.bf16.mxu0 %v6669_v58  ;;  %2673 = vmatprep.mubr.bf16.mxu1 %v6669_v58 }
 0xc48   :  { %2603 = vmatpush1.bf16.msra.mxu0 %v5651_v29  ;;  %2644 = vmatpush1.bf16.msra.mxu1 %v5654_v60 }
 0xc49   :  { %2604 = vmatprep.subr.bf16.mxu0 %v5657_v30  ;;  %2645 = vmatprep.subr.bf16.mxu1 %v5660_v39 }
 0xc4c   :  { %2605 = vmatpush1.bf16.msra.mxu0 %v5663_v19  ;;  %2646 = vmatpush1.bf16.msra.mxu1 %v5666_v54 }
 0xc4d   :  { %2606 = vmatprep.subr.bf16.mxu0 %v5669_v31  ;;  %2647 = vmatprep.subr.bf16.mxu1 %v5672_v28 }
 0xc50   :  { %2607 = vmatpush1.bf16.msra.mxu0 %v5675_v21  ;;  %2648 = vmatpush1.bf16.msra.mxu1 %v5830_v53 }
 0xc51   :  { %2608 = vmatprep.subr.bf16.mxu0 %v5679_v22  ;;  %2649 = vmatprep.subr.bf16.mxu1 %v5834_v24 }
 0xc54   :  { %2609 = vmatpush1.bf16.msra.mxu0 %v5683_v6  ;;  %2650 = vmatpush1.bf16.msra.mxu1 %v5838_v27 }
 0xc55   :  { %2610 = vmatprep.subr.bf16.mxu0 %v5687_v3  ;;  %2651 = vmatprep.subr.bf16.mxu1 %v5842_v36 }
 0xc58   :  { %2611 = vmatpush1.bf16.msra.mxu0 %v5845_v20  ;;  %2652 = vmatpush1.bf16.msra.mxu1 %v5848_v25 }
 0xc59   :  { %2612 = vmatprep.subr.bf16.mxu0 %v5851_v32  ;;  %2653 = vmatprep.subr.bf16.mxu1 %v5854_v12 }
 0xc5c   :  { %2613 = vmatpush1.bf16.msra.mxu0 %v5857_v5  ;;  %2654 = vmatpush1.bf16.msra.mxu1 %v5860_v46 }
 0xc5d   :  { %2614 = vmatprep.subr.bf16.mxu0 %v5863_v7  ;;  %2655 = vmatprep.subr.bf16.mxu1 %v5866_v13 }
 0xc60   :  { %2615 = vmatpush1.bf16.msra.mxu0 %v5869_v1  ;;  %2656 = vmatpush1.bf16.msra.mxu1 %v5872_v10 }
 0xc61   :  { %2690 = vmatprep.subr.bf16.mxu0 %v5878_v55  ;;  %2731 = vmatprep.subr.bf16.mxu1 %v5884_v52 }
 0xd16   :  { %v2523_v2 = vpop.f32.mrb[40].mxu0  ;;  %v2564_v11 = vpop.f32.mrb[40].mxu1 }
 0xd17   :  { %v3600_v50 = vadd.f32 %v2523_v2, %v6944_v49  ;;  %v2525_v4 = vpop.f32.mrb[41].mxu0  ;;  %v2566_v15 = vpop.f32.mrb[41].mxu1  ;;  %v3602_v51 = vadd.f32 %v2564_v11, %v4857_v63 }
 0xd18   :  { %v3601_v37 = vadd.f32 %v2525_v4, %v4850_v9  ;;  %v2527_v0 = vpop.f32.mrb[42].mxu0  ;;  %v2568_v57 = vpop.f32.mrb[42].mxu1  ;;  %v3603_v43 = vadd.f32 %v2566_v15, %v4854_v62 }
 0xd19   :  { %v3488_v56 = vmul.f32 -1.442695, %v3600_v50  ;;  %v2528_v59 = vpop.f32.mrb[43].mxu0  ;;  %v2569_v14 = vpop.f32.mrb[43].mxu1 }
 0xd1a   :  { %v3489_v44 = vmul.f32 -1.442695, %v3601_v37  ;;  %v3490_v48 = vmul.f32 -1.442695, %v3603_v43  ;;  %v5914_v43 = vld [vmem:[%s6372_s1 + $0x20] ss:$16 sps:$4 sm:$0xff]  }
 0xd1b   :  { %4004 = vpow2.f32 %v3488_v56 }
 0xd1c   :  { %4006 = vpow2.f32 %v3489_v44  ;;  %v5899_v44 = vld [vmem:[%s6372_s1 + $0x8] ss:$16 sps:$4 sm:$0xff]  }
 0xd1d   :  { %4008 = vpow2.f32 %v3490_v48  ;;  %v5920_v48 = vld [vmem:[%s6372_s1 + $0x28] ss:$16 sps:$4 sm:$0xff]  }
 0xd1e   :  { %4010 = vtanh.f32 %v3602_v51  ;;  %v5926_v51 = vld [vmem:[%s6372_s1 + $0x44] ss:$16 sps:$4 sm:$0xff]  }
 0xd1f   :  { %6945 = vst [vmem:[#allocation11_spill] sm:$0xff] %v5926_v51 }
 0xd25   :  { %v4005_v47 = vpop.eup %4004 }
 0xd26   :  { %v4007_v34 = vpop.eup %4006  ;;  %v2581_v42 = vadd.f32 1.0, %v4005_v47  ;;  %v5932_v47 = vld [vmem:[%s6372_s1 + $0x4c] ss:$16 sps:$4 sm:$0xff]  }
 0xd27   :  { %v2582_v18 = vadd.f32 1.0, %v4007_v34  ;;  %v4009_v26 = vpop.eup %4008  ;;  %6946 = vst [vmem:[#allocation16_spill] sm:$0xff] %v5932_v47  ;;  %v5938_v34 = vld [vmem:[%s6372_s1 + $0x40] ss:$16 sps:$4 sm:$0xff]  }
 0xd28   :  { %4012 = vrcp.f32 %v2581_v42  ;;  %v4011_v2 = vpop.eup %4010  ;;  %v2595_v0 = vadd.f32 1.0, %v4009_v26  ;;  %6947 = vst [vmem:[#allocation12_spill] sm:$0xff] %v5938_v34  ;;  %v5944_v42 = vld [vmem:[%s6372_s1 + $0x48] ss:$16 sps:$4 sm:$0xff]   ;;  %v5956_v26 = vld [vmem:[%s6372_s1 + $0x6c] ss:$16 sps:$4 sm:$0xff]  }
 0xd29   :  { %4014 = vrcp.f32 %v2582_v18  ;;  %6948 = vst [vmem:[#allocation17_spill] sm:$0xff] %v5944_v42  ;;  %v5950_v18 = vld [vmem:[%s6372_s1 + $0x64] ss:$16 sps:$4 sm:$0xff]   ;;  %6950 = vst [vmem:[#allocation20_spill] sm:$0xff] %v5956_v26 }
 0xd2a   :  { %4016 = vrcp.f32 %v2595_v0  ;;  %6949 = vst [vmem:[#allocation14_spill] sm:$0xff] %v5950_v18  ;;  %v5986_v0 = vld [vmem:[%s6372_s1 + $0x80] ss:$16 sps:$4 sm:$0xff]  }
 0xd2b   :  { %6955 = vst [vmem:[#allocation18_spill] sm:$0xff] %v5986_v0 }
 0xd32   :  { %v4013_v50 = vpop.eup %4012 }
 0xd33   :  { %v4015_v4 = vpop.eup %4014  ;;  %v2589_v37 = vmul.f32 %v4013_v50, %v4011_v2  ;;  %v5962_v2 = vld [vmem:[%s6372_s1 + $0x60] ss:$16 sps:$4 sm:$0xff]   ;;  %v5968_v50 = vld [vmem:[%s6372_s1 + $0x68] ss:$16 sps:$4 sm:$0xff]  }
 0xd34   :  { %v2588_v57 = vmul.f32 %v4015_v4, %v5708_v45  ;;  %v4017_v11 = vpop.eup %4016  ;;  %v5906_v45 = vld [vmem:[%s6372_s1 + $0x2c] ss:$16 sps:$4 sm:$0xff]   ;;  %6951 = vst [vmem:[#allocation15_spill] sm:$0xff] %v5962_v2  ;;  %6952 = vst [vmem:[#allocation21_spill] sm:$0xff] %v5968_v50  ;;  %v5974_v4 = vld [vmem:[%s6372_s1 + $0x84] ss:$16 sps:$4 sm:$0xff]  }
 0xd35   :  { %6953 = vst [vmem:[#allocation8_spill] sm:$0xff] %v5974_v4 }
 0xd36   :  { %v5892_v15 = vadd.f32 %v2589_v37, %v2588_v57  ;;  %v5980_v37 = vld [vmem:[%s6372_s1 + $0x8c] ss:$16 sps:$4 sm:$0xff]   ;;  %v5992_v57 = vld [vmem:[%s6372_s1 + $0x88] ss:$16 sps:$4 sm:$0xff]  }
 0xd37   :  { %6954 = vst [vmem:[#allocation9_spill] sm:$0xff] %v5980_v37  ;;  %6956 = vst [vmem:[#allocation23_spill] sm:$0xff] %v5992_v57 }
 0xd38   :  { %4018 = vtanh.f32 %v5892_v15 }
 0xd42   :  { %v4019_v56 = vpop.eup %4018 }
 0xd43   :  { %v2598_v59 = vmul.f32 %v4019_v56, %v4017_v11  ;;  %v5998_v11 = vld [vmem:[%s6372_s1 + $0xa4] ss:$16 sps:$4 sm:$0xff]   ;;  %v6004_v56 = vld [vmem:[%s6372_s1 + $0xac] ss:$16 sps:$4 sm:$0xff]  }
 0xd44   :  { %6957 = vst [vmem:[#allocation19_spill] sm:$0xff] %v5998_v11  ;;  %6958 = vst [vmem:[#allocation24_spill] sm:$0xff] %v6004_v56 }
 0xd45   :  { %v2599_v14 = vpack.c.bf16 %v2598_v59, %v2598_v59  ;;  %v6010_v59 = vld [vmem:[%s6372_s1 + $0xa0] ss:$16 sps:$4 sm:$0xff]  }
 0xd46   :  { %6959 = vst [vmem:[#allocation22_spill] sm:$0xff] %v6010_v59 }
 0xd47   :  { %2633 = vmatmul.mubr.bf16.vlgmr.msra.gmra.mrb[48].mxu0 %v2599_v14  ;;  %2674 = vmatmul.mubr.bf16.vlgmr.msra.gmra.mrb[48].mxu1 %v2599_v14  ;;  %v6016_v14 = vld [vmem:[%s6372_s1 + $0xa8] ss:$16 sps:$4 sm:$0xff]  }
 0xd48   :  { %2691 = vmatpush1.bf16.msra.mxu0 %v5714_v8  ;;  %2732 = vmatpush1.bf16.msra.mxu1 %v5899_v44  ;;  %6960 = vst [vmem:[#allocation25_spill] sm:$0xff] %v6016_v14 }
 0xd49   :  { %2692 = vmatprep.subr.bf16.mxu0 %v5721_v38  ;;  %2733 = vmatprep.subr.bf16.mxu1 %v5906_v45 }
 0xd4a   :  { %2722 = vmatprep.mubr.bf16.mxu0 %v6669_v58  ;;  %2763 = vmatprep.mubr.bf16.mxu1 %v6669_v58 }
 0xd4c   :  { %2693 = vmatpush1.bf16.msra.mxu0 %v5914_v43  ;;  %2734 = vmatpush1.bf16.msra.mxu1 %v5920_v48 }
 0xd4d   :  { %2694 = vmatprep.subr.bf16.mxu0 %v5926_v51  ;;  %2735 = vmatprep.subr.bf16.mxu1 %v5932_v47 }
 0xd50   :  { %2695 = vmatpush1.bf16.msra.mxu0 %v5938_v34  ;;  %2736 = vmatpush1.bf16.msra.mxu1 %v5944_v42 }
 0xd51   :  { %2696 = vmatprep.subr.bf16.mxu0 %v5950_v18  ;;  %2737 = vmatprep.subr.bf16.mxu1 %v5956_v26 }
 0xd54   :  { %2697 = vmatpush1.bf16.msra.mxu0 %v5962_v2  ;;  %2738 = vmatpush1.bf16.msra.mxu1 %v5968_v50 }
 0xd55   :  { %2698 = vmatprep.subr.bf16.mxu0 %v5974_v4  ;;  %2739 = vmatprep.subr.bf16.mxu1 %v5980_v37 }
 0xd58   :  { %2699 = vmatpush1.bf16.msra.mxu0 %v5986_v0  ;;  %2740 = vmatpush1.bf16.msra.mxu1 %v5992_v57  ;;  %v6070_v57 = vld [vmem:[#allocation2 + $0xc] ss:$16 sps:$4 sm:$0xff]  }
 0xd59   :  { %2700 = vmatprep.subr.bf16.mxu0 %v5998_v11  ;;  %2741 = vmatprep.subr.bf16.mxu1 %v6004_v56  ;;  %v6022_v11 = vld [vmem:[%s6372_s1 + $0xc4] ss:$16 sps:$4 sm:$0xff]   ;;  %v6028_v56 = vld [vmem:[%s6372_s1 + $0xcc] ss:$16 sps:$4 sm:$0xff]   ;;  %6970 = vst [vmem:[#allocation33_spill] sm:$0xff] %v6070_v57 }
 0xd5a   :  { %6961 = vst [vmem:[#allocation26_spill] sm:$0xff] %v6022_v11  ;;  %6962 = vst [vmem:[#allocation27_spill] sm:$0xff] %v6028_v56 }
 0xd5c   :  { %2701 = vmatpush1.bf16.msra.mxu0 %v6010_v59  ;;  %2742 = vmatpush1.bf16.msra.mxu1 %v6016_v14  ;;  %v6034_v59 = vld [vmem:[%s6372_s1 + $0xc0] ss:$16 sps:$4 sm:$0xff]   ;;  %v6040_v14 = vld [vmem:[%s6372_s1 + $0xc8] ss:$16 sps:$4 sm:$0xff]  }
 0xd5d   :  { %2702 = vmatprep.subr.bf16.mxu0 %v6022_v11  ;;  %2743 = vmatprep.subr.bf16.mxu1 %v6028_v56  ;;  %6963 = vst [vmem:[#allocation28_spill] sm:$0xff] %v6034_v59  ;;  %6964 = vst [vmem:[#allocation10_spill] sm:$0xff] %v6040_v14  ;;  %v6046_v11 = vld [vmem:[%s6372_s1 + $0xe4] ss:$16 sps:$4 sm:$0xff]   ;;  %v6052_v56 = vld [vmem:[%s6372_s1 + $0xec] ss:$16 sps:$4 sm:$0xff]  }
 0xd5e   :  { %6965 = vst [vmem:[#allocation13_spill] sm:$0xff] %v6046_v11  ;;  %6966 = vst [vmem:[#allocation29_spill] sm:$0xff] %v6052_v56 }
 0xd60   :  { %2703 = vmatpush1.bf16.msra.mxu0 %v6034_v59  ;;  %2744 = vmatpush1.bf16.msra.mxu1 %v6040_v14  ;;  %v6058_v59 = vld [vmem:[%s6372_s1 + $0xe0] ss:$16 sps:$4 sm:$0xff]   ;;  %v6064_v14 = vld [vmem:[%s6372_s1 + $0xe8] ss:$16 sps:$4 sm:$0xff]  }
 0xd61   :  { %2704 = vmatprep.subr.bf16.mxu0 %v6046_v11  ;;  %2745 = vmatprep.subr.bf16.mxu1 %v6052_v56  ;;  %6967 = vst [vmem:[#allocation30_spill] sm:$0xff] %v6058_v59  ;;  %6968 = vst [vmem:[#allocation31_spill] sm:$0xff] %v6064_v14  ;;  %v6067_v11 = vld [vmem:[#allocation2 + $0x4] ss:$16 sps:$4 sm:$0xff]   ;;  %v6078_v56 = vld [vmem:[#allocation2 + $0x8] ss:$16 sps:$4 sm:$0xff]  }
 0xd62   :  { %6969 = vst [vmem:[#allocation32_spill] sm:$0xff] %v6067_v11  ;;  %6972 = vst [vmem:[#allocation35_spill] sm:$0xff] %v6078_v56 }
 0xd64   :  { %2705 = vmatpush1.bf16.msra.mxu0 %v6058_v59  ;;  %2746 = vmatpush1.bf16.msra.mxu1 %v6064_v14  ;;  %v6075_v59 = vld [vmem:[#allocation2] ss:$16 sps:$4 sm:$0xff]   ;;  %v6081_v14 = vld [vmem:[#allocation2 + $0x24] ss:$16 sps:$4 sm:$0xff]  }
 0xd65   :  { %2819 = vmatprep.subr.bf16.mxu0 %v6067_v11  ;;  %2860 = vmatprep.subr.bf16.mxu1 %v6070_v57  ;;  %6971 = vst [vmem:[#allocation34_spill] sm:$0xff] %v6075_v59  ;;  %6973 = vst [vmem:[#allocation36_spill] sm:$0xff] %v6081_v14  ;;  %v6084_v11 = vld [vmem:[#allocation2 + $0x2c] ss:$16 sps:$4 sm:$0xff]   ;;  %v6104_v57 = vld [vmem:[#allocation2 + $0x48] ss:$16 sps:$4 sm:$0xff]  }
 0xd66   :  { %6974 = vst [vmem:[#allocation37_spill] sm:$0xff] %v6084_v11  ;;  %6980 = vst [vmem:[#allocation43_spill] sm:$0xff] %v6104_v57 }
 0xd67   :  { %2723 = vmatmul.mubr.bf16.vlgmr.msra.gmra.mrb[52].mxu0 %v5811_v23  ;;  %2764 = vmatmul.mubr.bf16.vlgmr.msra.gmra.mrb[52].mxu1 %v5811_v23  ;;  %v6089_v23 = vld [vmem:[#allocation2 + $0x20] ss:$16 sps:$4 sm:$0xff]  }
 0xd68   :  { %2820 = vmatpush1.bf16.msra.mxu0 %v6075_v59  ;;  %2861 = vmatpush1.bf16.msra.mxu1 %v6078_v56  ;;  %6975 = vst [vmem:[#allocation38_spill] sm:$0xff] %v6089_v23  ;;  %v6092_v59 = vld [vmem:[#allocation2 + $0x28] ss:$16 sps:$4 sm:$0xff]   ;;  %v6095_v56 = vld [vmem:[#allocation2 + $0x44] ss:$16 sps:$4 sm:$0xff]  }
 0xd69   :  { %2821 = vmatprep.subr.bf16.mxu0 %v6081_v14  ;;  %2862 = vmatprep.subr.bf16.mxu1 %v6084_v11  ;;  %6976 = vst [vmem:[#allocation39_spill] sm:$0xff] %v6092_v59  ;;  %6977 = vst [vmem:[#allocation40_spill] sm:$0xff] %v6095_v56  ;;  %v6098_v14 = vld [vmem:[#allocation2 + $0x4c] ss:$16 sps:$4 sm:$0xff]   ;;  %v6101_v11 = vld [vmem:[#allocation2 + $0x40] ss:$16 sps:$4 sm:$0xff]  }
 0xd6a   :  { %2851 = vmatprep.mubr.bf16.mxu0 %v6669_v58  ;;  %2892 = vmatprep.mubr.bf16.mxu1 %v6669_v58  ;;  %6978 = vst [vmem:[#allocation41_spill] sm:$0xff] %v6098_v14  ;;  %6979 = vst [vmem:[#allocation42_spill] sm:$0xff] %v6101_v11 }
 0xd6c   :  { %2822 = vmatpush1.bf16.msra.mxu0 %v6089_v23  ;;  %2863 = vmatpush1.bf16.msra.mxu1 %v6092_v59  ;;  %v6107_v23 = vld [vmem:[#allocation2 + $0x64] ss:$16 sps:$4 sm:$0xff]   ;;  %v6110_v59 = vld [vmem:[#allocation2 + $0x6c] ss:$16 sps:$4 sm:$0xff]  }
 0xd6d   :  { %2823 = vmatprep.subr.bf16.mxu0 %v6095_v56  ;;  %2864 = vmatprep.subr.bf16.mxu1 %v6098_v14  ;;  %6981 = vst [vmem:[#allocation44_spill] sm:$0xff] %v6107_v23  ;;  %6982 = vst [vmem:[#allocation45_spill] sm:$0xff] %v6110_v59  ;;  %v6113_v56 = vld [vmem:[#allocation2 + $0x60] ss:$16 sps:$4 sm:$0xff]   ;;  %v6116_v14 = vld [vmem:[#allocation2 + $0x68] ss:$16 sps:$4 sm:$0xff]  }
 0xd6e   :  { %6983 = vst [vmem:[#allocation46_spill] sm:$0xff] %v6113_v56  ;;  %6984 = vst [vmem:[#allocation47_spill] sm:$0xff] %v6116_v14 }
 0xd70   :  { %2824 = vmatpush1.bf16.msra.mxu0 %v6101_v11  ;;  %2865 = vmatpush1.bf16.msra.mxu1 %v6104_v57  ;;  %v6119_v11 = vld [vmem:[#allocation2 + $0x84] ss:$16 sps:$4 sm:$0xff]   ;;  %v6122_v57 = vld [vmem:[#allocation2 + $0x8c] ss:$16 sps:$4 sm:$0xff]  }
 0xd71   :  { %2825 = vmatprep.subr.bf16.mxu0 %v6107_v23  ;;  %2866 = vmatprep.subr.bf16.mxu1 %v6110_v59  ;;  %6985 = vst [vmem:[#allocation48_spill] sm:$0xff] %v6119_v11  ;;  %6986 = vst [vmem:[#allocation49_spill] sm:$0xff] %v6122_v57  ;;  %v6125_v23 = vld [vmem:[#allocation2 + $0x80] ss:$16 sps:$4 sm:$0xff]   ;;  %v6128_v59 = vld [vmem:[#allocation2 + $0x88] ss:$16 sps:$4 sm:$0xff]  }
 0xd72   :  { %6987 = vst [vmem:[#allocation50_spill] sm:$0xff] %v6125_v23  ;;  %6988 = vst [vmem:[#allocation51_spill] sm:$0xff] %v6128_v59 }
 0xd74   :  { %2826 = vmatpush1.bf16.msra.mxu0 %v6113_v56  ;;  %2867 = vmatpush1.bf16.msra.mxu1 %v6116_v14  ;;  %v6131_v56 = vld [vmem:[#allocation2 + $0xa4] ss:$16 sps:$4 sm:$0xff]   ;;  %v6134_v14 = vld [vmem:[#allocation2 + $0xac] ss:$16 sps:$4 sm:$0xff]  }
 0xd75   :  { %2827 = vmatprep.subr.bf16.mxu0 %v6119_v11  ;;  %2868 = vmatprep.subr.bf16.mxu1 %v6122_v57  ;;  %6989 = vst [vmem:[#allocation52_spill] sm:$0xff] %v6131_v56  ;;  %6990 = vst [vmem:[#allocation53_spill] sm:$0xff] %v6134_v14  ;;  %v6137_v11 = vld [vmem:[#allocation2 + $0xa0] ss:$16 sps:$4 sm:$0xff]   ;;  %v6140_v57 = vld [vmem:[#allocation2 + $0xa8] ss:$16 sps:$4 sm:$0xff]  }
 0xd76   :  { %6991 = vst [vmem:[#allocation54_spill] sm:$0xff] %v6137_v11  ;;  %6992 = vst [vmem:[#allocation55_spill] sm:$0xff] %v6140_v57 }
 0xd78   :  { %2828 = vmatpush1.bf16.msra.mxu0 %v6125_v23  ;;  %2869 = vmatpush1.bf16.msra.mxu1 %v6128_v59  ;;  %v6143_v23 = vld [vmem:[#allocation2 + $0xc4] ss:$16 sps:$4 sm:$0xff]   ;;  %v6146_v59 = vld [vmem:[#allocation2 + $0xcc] ss:$16 sps:$4 sm:$0xff]  }
 0xd79   :  { %2829 = vmatprep.subr.bf16.mxu0 %v6131_v56  ;;  %2870 = vmatprep.subr.bf16.mxu1 %v6134_v14  ;;  %6993 = vst [vmem:[#allocation56_spill] sm:$0xff] %v6143_v23  ;;  %6994 = vst [vmem:[#allocation57_spill] sm:$0xff] %v6146_v59  ;;  %v6149_v56 = vld [vmem:[#allocation2 + $0xc0] ss:$16 sps:$4 sm:$0xff]   ;;  %v6152_v14 = vld [vmem:[#allocation2 + $0xc8] ss:$16 sps:$4 sm:$0xff]  }
 0xd7a   :  { %6995 = vst [vmem:[#allocation59_spill] sm:$0xff] %v6149_v56  ;;  %6996 = vst [vmem:[#allocation60_spill] sm:$0xff] %v6152_v14 }
 0xd7c   :  { %2830 = vmatpush1.bf16.msra.mxu0 %v6137_v11  ;;  %2871 = vmatpush1.bf16.msra.mxu1 %v6140_v57  ;;  %v6155_v11 = vld [vmem:[#allocation2 + $0xe4] ss:$16 sps:$4 sm:$0xff]   ;;  %v6158_v57 = vld [vmem:[#allocation2 + $0xec] ss:$16 sps:$4 sm:$0xff]  }
 0xd7d   :  { %2831 = vmatprep.subr.bf16.mxu0 %v6143_v23  ;;  %2872 = vmatprep.subr.bf16.mxu1 %v6146_v59  ;;  %6997 = vst [vmem:[#allocation61_spill] sm:$0xff] %v6155_v11  ;;  %6998 = vst [vmem:[#allocation62_spill] sm:$0xff] %v6158_v57  ;;  %v6161_v23 = vld [vmem:[#allocation2 + $0xe0] ss:$16 sps:$4 sm:$0xff]   ;;  %v6164_v59 = vld [vmem:[#allocation2 + $0xe8] ss:$16 sps:$4 sm:$0xff]  }
 0xd7e   :  { %6999 = vst [vmem:[#allocation63_spill] sm:$0xff] %v6161_v23  ;;  %7000 = vst [vmem:[#allocation64_spill] sm:$0xff] %v6164_v59 }
 0xd80   :  { %2832 = vmatpush1.bf16.msra.mxu0 %v6149_v56  ;;  %2873 = vmatpush1.bf16.msra.mxu1 %v6152_v14 }
 0xd81   :  { %2833 = vmatprep.subr.bf16.mxu0 %v6155_v11  ;;  %2874 = vmatprep.subr.bf16.mxu1 %v6158_v57  ;;  %v2686_v11 = vld [vmem:[%s6371_s0 + $0x20] sm:$0x30]  ;;  %v2687_v57 = vld [vmem:[%s6371_s0 + $0x28] sm:$0x30] }
 0xd84   :  { %2834 = vmatpush1.bf16.msra.mxu0 %v6161_v23  ;;  %2875 = vmatpush1.bf16.msra.mxu1 %v6164_v59 }
 0xd85   :  { %2930 = vmatprep.subr.bf16.mxu0 %v5789_v16  ;;  %2971 = vmatprep.subr.bf16.mxu1 %v5792_v17 }
 0xe3a   :  { %v2724_v14 = vpop.f32.mrb[52].mxu0  ;;  %v2765_v56 = vpop.f32.mrb[52].mxu1 }
 0xe3b   :  { %v2776_v0 = vrot.slane %v2724_v14, 4  ;;  %v2726_v23 = vpop.f32.mrb[53].mxu0  ;;  %v2767_v37 = vpop.f32.mrb[53].mxu1  ;;  %v2689_v14 = vld [vmem:[%s6371_s0 + $0x38] sm:$0x30]  ;;  %v2778_v51 = vrot.slane %v2765_v56, 4 }
 0xe3c   :  { %v2777_v4 = vrot.slane %v2726_v23, 4  ;;  %v2728_v50 = vpop.f32.mrb[54].mxu0  ;;  %v2769_v59 = vpop.f32.mrb[54].mxu1  ;;  %v2779_v34 = vrot.slane %v2767_v37, 4 }
 0xe3d   :  { %v2784_v2 = vadd.f32 %v2776_v0, %v2686_v11  ;;  %v2729_v16 = vpop.f32.mrb[55].mxu0  ;;  %v2770_v26 = vpop.f32.mrb[55].mxu1  ;;  %v2688_v50 = vld [vmem:[%s6371_s0 + $0x30] sm:$0x30] }
 0xe3e   :  { %v2785_v17 = vadd.f32 %v2777_v4, %v2687_v57  ;;  %v2787_v47 = vadd.f32 %v2779_v34, %v2689_v14  ;;  %v2786_v0 = vadd.f32 %v2778_v51, %v2688_v50  ;;  %v2802_v34 = vrot.slane %v5808_v33, 6 }
 0xe3f   :  { %v3491_v18 = vmul.f32 -1.442695, %v2784_v2 }
 0xe40   :  { %v3492_v42 = vmul.f32 -1.442695, %v2785_v17  ;;  %v3493_v59 = vmul.f32 -1.442695, %v2787_v47 }
 0xe41   :  { %4020 = vpow2.f32 %v3491_v18 }
 0xe42   :  { %4022 = vpow2.f32 %v3492_v42 }
 0xe43   :  { %4024 = vpow2.f32 %v3493_v59 }
 0xe44   :  { %4026 = vtanh.f32 %v2786_v0  ;;  %v7008_v0 = vld [vmem:[#allocation21_spill] sm:$0xff] }
 0xe4b   :  { %v4021_v11 = vpop.eup %4020 }
 0xe4c   :  { %v4023_v26 = vpop.eup %4022  ;;  %v2794_v4 = vadd.f32 1.0, %v4021_v11  ;;  %v7009_v11 = vld [vmem:[#allocation8_spill] sm:$0xff] }
 0xe4d   :  { %v2795_v2 = vadd.f32 1.0, %v4023_v26  ;;  %v4025_v18 = vpop.eup %4024  ;;  %v7012_v26 = vld [vmem:[#allocation23_spill] sm:$0xff] }
 0xe4e   :  { %4028 = vrcp.f32 %v2794_v4  ;;  %v4027_v37 = vpop.eup %4026  ;;  %v2811_v23 = vadd.f32 1.0, %v4025_v18  ;;  %v7013_v4 = vld [vmem:[#allocation19_spill] sm:$0xff]  ;;  %v7015_v18 = vld [vmem:[#allocation22_spill] sm:$0xff] }
 0xe4f   :  { %4030 = vrcp.f32 %v2795_v2  ;;  %v7014_v2 = vld [vmem:[#allocation24_spill] sm:$0xff] }
 0xe50   :  { %4032 = vrcp.f32 %v2811_v23  ;;  %v7021_v23 = vld [vmem:[#allocation13_spill] sm:$0xff] }
 0xe58   :  { %v4029_v57 = vpop.eup %4028 }
 0xe59   :  { %v4031_v42 = vpop.eup %4030  ;;  %v2805_v56 = vmul.f32 %v4029_v57, %v4027_v37  ;;  %v7016_v37 = vld [vmem:[#allocation25_spill] sm:$0xff]  ;;  %v7017_v57 = vld [vmem:[#allocation26_spill] sm:$0xff] }
 0xe5a   :  { %v2804_v16 = vmul.f32 %v4031_v42, %v2802_v34  ;;  %v4033_v51 = vpop.eup %4032  ;;  %v7018_v34 = vld [vmem:[#allocation27_spill] sm:$0xff]  ;;  %v7019_v42 = vld [vmem:[#allocation28_spill] sm:$0xff] }
 0xe5c   :  { %v6182_v17 = vadd.f32 %v2805_v56, %v2804_v16  ;;  %v7020_v56 = vld [vmem:[#allocation10_spill] sm:$0xff]  ;;  %v7022_v16 = vld [vmem:[#allocation29_spill] sm:$0xff] }
 0xe5e   :  { %4034 = vtanh.f32 %v6182_v17 }
 0xe68   :  { %v4035_v47 = vpop.eup %4034 }
 0xe69   :  { %v2814_v14 = vmul.f32 %v4035_v47, %v4033_v51  ;;  %v7023_v51 = vld [vmem:[#allocation30_spill] sm:$0xff]  ;;  %v7024_v47 = vld [vmem:[#allocation31_spill] sm:$0xff] }
 0xe6b   :  { %v2815_v50 = vpack.c.bf16 %v2814_v14, %v2814_v14  ;;  %v7025_v14 = vld [vmem:[#allocation32_spill] sm:$0xff] }
 0xe6d   :  { %v6185_v59 = vrot.slane %v2815_v50, 2  ;;  %v7026_v50 = vld [vmem:[#allocation33_spill] sm:$0xff] }
 0xe6f   :  { %2852 = vmatmul.mubr.bf16.vlgmr.msra.gmra.mrb[48].mxu0 %v6185_v59  ;;  %2893 = vmatmul.mubr.bf16.vlgmr.msra.gmra.mrb[48].mxu1 %v6185_v59 }
 0xe70   :  { %2931 = vmatpush1.bf16.msra.mxu0 %v5637_v61  ;;  %2972 = vmatpush1.bf16.msra.mxu1 %v5640_v41 }
 0xe71   :  { %2932 = vmatprep.subr.bf16.mxu0 %v5643_v35  ;;  %2973 = vmatprep.subr.bf16.mxu1 %v5646_v40 }
 0xe72   :  { %2962 = vmatprep.mubr.bf16.mxu0 %v6669_v58  ;;  %3003 = vmatprep.mubr.bf16.mxu1 %v6669_v58 }
 0xe74   :  { %2933 = vmatpush1.bf16.msra.mxu0 %v5651_v29  ;;  %2974 = vmatpush1.bf16.msra.mxu1 %v5654_v60 }
 0xe75   :  { %2934 = vmatprep.subr.bf16.mxu0 %v5657_v30  ;;  %2975 = vmatprep.subr.bf16.mxu1 %v5660_v39 }
 0xe78   :  { %2935 = vmatpush1.bf16.msra.mxu0 %v5663_v19  ;;  %2976 = vmatpush1.bf16.msra.mxu1 %v5666_v54 }
 0xe79   :  { %2936 = vmatprep.subr.bf16.mxu0 %v5669_v31  ;;  %2977 = vmatprep.subr.bf16.mxu1 %v5672_v28 }
 0xe7c   :  { %2937 = vmatpush1.bf16.msra.mxu0 %v5675_v21  ;;  %2978 = vmatpush1.bf16.msra.mxu1 %v5830_v53 }
 0xe7d   :  { %2938 = vmatprep.subr.bf16.mxu0 %v5679_v22  ;;  %2979 = vmatprep.subr.bf16.mxu1 %v5834_v24 }
 0xe80   :  { %2939 = vmatpush1.bf16.msra.mxu0 %v5683_v6  ;;  %2980 = vmatpush1.bf16.msra.mxu1 %v5838_v27 }
 0xe81   :  { %2940 = vmatprep.subr.bf16.mxu0 %v5687_v3  ;;  %2981 = vmatprep.subr.bf16.mxu1 %v5842_v36 }
 0xe84   :  { %2941 = vmatpush1.bf16.msra.mxu0 %v5845_v20  ;;  %2982 = vmatpush1.bf16.msra.mxu1 %v5848_v25 }
 0xe85   :  { %2942 = vmatprep.subr.bf16.mxu0 %v5851_v32  ;;  %2983 = vmatprep.subr.bf16.mxu1 %v5854_v12 }
 0xe88   :  { %2943 = vmatpush1.bf16.msra.mxu0 %v5857_v5  ;;  %2984 = vmatpush1.bf16.msra.mxu1 %v5860_v46 }
 0xe89   :  { %2944 = vmatprep.subr.bf16.mxu0 %v5863_v7  ;;  %2985 = vmatprep.subr.bf16.mxu1 %v5866_v13 }
 0xe8c   :  { %2945 = vmatpush1.bf16.msra.mxu0 %v5869_v1  ;;  %2986 = vmatpush1.bf16.msra.mxu1 %v5872_v10 }
 0xe8d   :  { %3020 = vmatprep.subr.bf16.mxu0 %v5878_v55  ;;  %3061 = vmatprep.subr.bf16.mxu1 %v5884_v52  ;;  %v7001_v55 = vld [vmem:[#allocation11_spill] sm:$0xff]  ;;  %v7002_v52 = vld [vmem:[#allocation16_spill] sm:$0xff] }
 0xf42   :  { %v2853_v61 = vpop.f32.mrb[48].mxu0  ;;  %v2894_v41 = vpop.f32.mrb[48].mxu1 }
 0xf43   :  { %v3604_v35 = vadd.f32 %v2853_v61, %v6944_v49  ;;  %v2855_v40 = vpop.f32.mrb[49].mxu0  ;;  %v2896_v29 = vpop.f32.mrb[49].mxu1  ;;  %v3606_v6 = vadd.f32 %v2894_v41, %v4857_v63  ;;  %v7027_v61 = vld [vmem:[#allocation34_spill] sm:$0xff]  ;;  %v7028_v41 = vld [vmem:[#allocation35_spill] sm:$0xff] }
 0xf44   :  { %v3605_v60 = vadd.f32 %v2855_v40, %v4850_v9  ;;  %v2857_v30 = vpop.f32.mrb[50].mxu0  ;;  %v2898_v39 = vpop.f32.mrb[50].mxu1  ;;  %v3607_v21 = vadd.f32 %v2896_v29, %v4854_v62  ;;  %v7030_v40 = vld [vmem:[#allocation37_spill] sm:$0xff]  ;;  %v7031_v29 = vld [vmem:[#allocation38_spill] sm:$0xff] }
 0xf45   :  { %v3494_v19 = vmul.f32 -1.442695, %v3604_v35  ;;  %v2858_v54 = vpop.f32.mrb[51].mxu0  ;;  %v2899_v31 = vpop.f32.mrb[51].mxu1  ;;  %v7029_v35 = vld [vmem:[#allocation36_spill] sm:$0xff]  ;;  %v7034_v39 = vld [vmem:[#allocation41_spill] sm:$0xff] }
 0xf46   :  { %v3495_v28 = vmul.f32 -1.442695, %v3605_v60  ;;  %v3496_v22 = vmul.f32 -1.442695, %v3607_v21  ;;  %v7032_v60 = vld [vmem:[#allocation39_spill] sm:$0xff]  ;;  %v7033_v30 = vld [vmem:[#allocation40_spill] sm:$0xff] }
 0xf47   :  { %4036 = vpow2.f32 %v3494_v19  ;;  %v7036_v19 = vld [vmem:[#allocation43_spill] sm:$0xff]  ;;  %v7037_v54 = vld [vmem:[#allocation44_spill] sm:$0xff]  ;;  %v7038_v31 = vld [vmem:[#allocation45_spill] sm:$0xff] }
 0xf48   :  { %4038 = vpow2.f32 %v3495_v28  ;;  %v7039_v28 = vld [vmem:[#allocation46_spill] sm:$0xff]  ;;  %v7040_v21 = vld [vmem:[#allocation47_spill] sm:$0xff] }
 0xf49   :  { %4040 = vpow2.f32 %v3496_v22  ;;  %v7042_v22 = vld [vmem:[#allocation49_spill] sm:$0xff] }
 0xf4a   :  { %4042 = vtanh.f32 %v3606_v6  ;;  %v7043_v6 = vld [vmem:[#allocation50_spill] sm:$0xff] }
 0xf51   :  { %v4037_v3 = vpop.eup %4036 }
 0xf52   :  { %v4039_v33 = vpop.eup %4038  ;;  %v2911_v53 = vadd.f32 1.0, %v4037_v3  ;;  %v7044_v3 = vld [vmem:[#allocation51_spill] sm:$0xff] }
 0xf53   :  { %v2912_v24 = vadd.f32 1.0, %v4039_v33  ;;  %v4041_v27 = vpop.eup %4040  ;;  %v7045_v33 = vld [vmem:[#allocation52_spill] sm:$0xff] }
 0xf54   :  { %4044 = vrcp.f32 %v2911_v53  ;;  %v4043_v36 = vpop.eup %4042  ;;  %v2925_v12 = vadd.f32 1.0, %v4041_v27  ;;  %v7046_v53 = vld [vmem:[#allocation53_spill] sm:$0xff]  ;;  %v7048_v27 = vld [vmem:[#allocation55_spill] sm:$0xff] }
 0xf55   :  { %4046 = vrcp.f32 %v2912_v24  ;;  %v7047_v24 = vld [vmem:[#allocation54_spill] sm:$0xff] }
 0xf56   :  { %4048 = vrcp.f32 %v2925_v12  ;;  %v7053_v12 = vld [vmem:[#allocation61_spill] sm:$0xff] }
 0xf5e   :  { %v4045_v20 = vpop.eup %4044 }
 0xf5f   :  { %v4047_v25 = vpop.eup %4046  ;;  %v2919_v32 = vmul.f32 %v4045_v20, %v4043_v36  ;;  %v7049_v36 = vld [vmem:[#allocation56_spill] sm:$0xff]  ;;  %v7050_v20 = vld [vmem:[#allocation57_spill] sm:$0xff] }
 0xf60   :  { %v2918_v5 = vmul.f32 %v4047_v25, %v5892_v15  ;;  %v4049_v7 = vpop.eup %4048  ;;  %v7003_v15 = vld [vmem:[#allocation12_spill] sm:$0xff]  ;;  %v7051_v25 = vld [vmem:[#allocation59_spill] sm:$0xff] }
 0xf62   :  { %v6228_v46 = vadd.f32 %v2919_v32, %v2918_v5  ;;  %v7052_v32 = vld [vmem:[#allocation60_spill] sm:$0xff]  ;;  %v7054_v5 = vld [vmem:[#allocation62_spill] sm:$0xff] }
 0xf64   :  { %4050 = vtanh.f32 %v6228_v46 }
 0xf6e   :  { %v4051_v13 = vpop.eup %4050 }
 0xf6f   :  { %v2928_v1 = vmul.f32 %v4051_v13, %v4049_v7  ;;  %v7055_v7 = vld [vmem:[#allocation63_spill] sm:$0xff]  ;;  %v7056_v13 = vld [vmem:[#allocation64_spill] sm:$0xff] }
 0xf71   :  { %v2929_v10 = vpack.c.bf16 %v2928_v1, %v2928_v1  ;;  %v3016_v1 = vld [vmem:[%s6371_s0 + $0x20] sm:$0xc0] }
 0xf73   :  { %2963 = vmatmul.mubr.bf16.vlgmr.msra.gmra.mrb[56].mxu0 %v2929_v10  ;;  %3004 = vmatmul.mubr.bf16.vlgmr.msra.gmra.mrb[56].mxu1 %v2929_v10 }
 0xf74   :  { %3021 = vmatpush1.bf16.msra.mxu0 %v5714_v8  ;;  %3062 = vmatpush1.bf16.msra.mxu1 %v5899_v44  ;;  %v7004_v8 = vld [vmem:[#allocation17_spill] sm:$0xff]  ;;  %v7005_v44 = vld [vmem:[#allocation14_spill] sm:$0xff] }
 0xf75   :  { %3022 = vmatprep.subr.bf16.mxu0 %v5721_v38  ;;  %3063 = vmatprep.subr.bf16.mxu1 %v5906_v45  ;;  %v7006_v38 = vld [vmem:[#allocation20_spill] sm:$0xff]  ;;  %v7007_v45 = vld [vmem:[#allocation15_spill] sm:$0xff] }
 0xf76   :  { %3052 = vmatprep.mubr.bf16.mxu0 %v6669_v58  ;;  %3093 = vmatprep.mubr.bf16.mxu1 %v6669_v58 }
 0xf78   :  { %3023 = vmatpush1.bf16.msra.mxu0 %v5914_v43  ;;  %3064 = vmatpush1.bf16.msra.mxu1 %v5920_v48  ;;  %v7010_v43 = vld [vmem:[#allocation9_spill] sm:$0xff]  ;;  %v7011_v48 = vld [vmem:[#allocation18_spill] sm:$0xff] }
 0xf79   :  { %3024 = vmatprep.subr.bf16.mxu0 %v7001_v55  ;;  %3065 = vmatprep.subr.bf16.mxu1 %v7002_v52 }
 0xf7c   :  { %3025 = vmatpush1.bf16.msra.mxu0 %v7003_v15  ;;  %3066 = vmatpush1.bf16.msra.mxu1 %v7004_v8  ;;  %v3017_v15 = vld [vmem:[%s6371_s0 + $0x28] sm:$0xc0] }
 0xf7d   :  { %3026 = vmatprep.subr.bf16.mxu0 %v7005_v44  ;;  %3067 = vmatprep.subr.bf16.mxu1 %v7006_v38 }
 0xf80   :  { %3027 = vmatpush1.bf16.msra.mxu0 %v7007_v45  ;;  %3068 = vmatpush1.bf16.msra.mxu1 %v7008_v0 }
 0xf81   :  { %3028 = vmatprep.subr.bf16.mxu0 %v7009_v11  ;;  %3069 = vmatprep.subr.bf16.mxu1 %v7010_v43 }
 0xf84   :  { %3029 = vmatpush1.bf16.msra.mxu0 %v7011_v48  ;;  %3070 = vmatpush1.bf16.msra.mxu1 %v7012_v26 }
 0xf85   :  { %3030 = vmatprep.subr.bf16.mxu0 %v7013_v4  ;;  %3071 = vmatprep.subr.bf16.mxu1 %v7014_v2 }
 0xf88   :  { %3031 = vmatpush1.bf16.msra.mxu0 %v7015_v18  ;;  %3072 = vmatpush1.bf16.msra.mxu1 %v7016_v37  ;;  %v3019_v37 = vld [vmem:[%s6371_s0 + $0x38] sm:$0xc0] }
 0xf89   :  { %3032 = vmatprep.subr.bf16.mxu0 %v7017_v57  ;;  %3073 = vmatprep.subr.bf16.mxu1 %v7018_v34 }
 0xf8c   :  { %3033 = vmatpush1.bf16.msra.mxu0 %v7019_v42  ;;  %3074 = vmatpush1.bf16.msra.mxu1 %v7020_v56  ;;  %v3018_v42 = vld [vmem:[%s6371_s0 + $0x30] sm:$0xc0] }
 0xf8d   :  { %3034 = vmatprep.subr.bf16.mxu0 %v7021_v23  ;;  %3075 = vmatprep.subr.bf16.mxu1 %v7022_v16 }
 0xf90   :  { %3035 = vmatpush1.bf16.msra.mxu0 %v7023_v51  ;;  %3076 = vmatpush1.bf16.msra.mxu1 %v7024_v47 }
 0xf91   :  { %3149 = vmatprep.subr.bf16.mxu0 %v7025_v14  ;;  %3190 = vmatprep.subr.bf16.mxu1 %v7026_v50 }
 0xf93   :  { %3053 = vmatmul.mubr.bf16.vlgmr.msra.gmra.mrb[60].mxu0 %v6185_v59  ;;  %3094 = vmatmul.mubr.bf16.vlgmr.msra.gmra.mrb[60].mxu1 %v6185_v59  ;;  %v7035_v59 = vld [vmem:[#allocation42_spill] sm:$0xff] }
 0xf94   :  { %3150 = vmatpush1.bf16.msra.mxu0 %v7027_v61  ;;  %3191 = vmatpush1.bf16.msra.mxu1 %v7028_v41 }
 0xf95   :  { %3151 = vmatprep.subr.bf16.mxu0 %v7029_v35  ;;  %3192 = vmatprep.subr.bf16.mxu1 %v7030_v40  ;;  %v3132_v35 = vrot.slane %v6182_v17, 6  ;;  %v3260_v17 = vld [vmem:[%s6376_s5 + $0x8] sm:$0xff] }
 0xf96   :  { %3181 = vmatprep.mubr.bf16.mxu0 %v6669_v58  ;;  %3222 = vmatprep.mubr.bf16.mxu1 %v6669_v58  ;;  %v7041_v58 = vld [vmem:[#allocation48_spill] sm:$0xff] }
 0xf98   :  { %3152 = vmatpush1.bf16.msra.mxu0 %v7031_v29  ;;  %3193 = vmatpush1.bf16.msra.mxu1 %v7032_v60 }
 0xf99   :  { %3153 = vmatprep.subr.bf16.mxu0 %v7033_v30  ;;  %3194 = vmatprep.subr.bf16.mxu1 %v7034_v39 }
 0xf9c   :  { %3154 = vmatpush1.bf16.msra.mxu0 %v7035_v59  ;;  %3195 = vmatpush1.bf16.msra.mxu1 %v7036_v19 }
 0xf9d   :  { %3155 = vmatprep.subr.bf16.mxu0 %v7037_v54  ;;  %3196 = vmatprep.subr.bf16.mxu1 %v7038_v31 }
 0xfa0   :  { %3156 = vmatpush1.bf16.msra.mxu0 %v7039_v28  ;;  %3197 = vmatpush1.bf16.msra.mxu1 %v7040_v21  ;;  %v3259_v21 = vld [vmem:[%s6376_s5] sm:$0xff] }
 0xfa1   :  { %3157 = vmatprep.subr.bf16.mxu0 %v7041_v58  ;;  %3198 = vmatprep.subr.bf16.mxu1 %v7042_v22  ;;  %v3557_v58 = vpack.c.bf16 %v3260_v17, %v3259_v21  ;;  %v4329_v22 = vmov 0.0|0.0  }
 0xfa4   :  { %3158 = vmatpush1.bf16.msra.mxu0 %v7043_v6  ;;  %3199 = vmatpush1.bf16.msra.mxu1 %v7044_v3  ;;  %v3261_v6 = vld [vmem:[%s6376_s5 + $0x10] sm:$0xff]  ;;  %v3262_v3 = vld [vmem:[%s6376_s5 + $0x18] sm:$0xff] }
 0xfa5   :  { %3159 = vmatprep.subr.bf16.mxu0 %v7045_v33  ;;  %3200 = vmatprep.subr.bf16.mxu1 %v7046_v53  ;;  %v3560_v33 = vpack.c.bf16 %v3262_v3, %v3261_v6  ;;  %v3263_v53 = vld [vmem:[%s6376_s5 + $0x20] sm:$0xff] }
 0xfa8   :  { %3160 = vmatpush1.bf16.msra.mxu0 %v7047_v24  ;;  %3201 = vmatpush1.bf16.msra.mxu1 %v7048_v27  ;;  %v3264_v24 = vld [vmem:[%s6376_s5 + $0x28] sm:$0xff] }
 0xfa9   :  { %3161 = vmatprep.subr.bf16.mxu0 %v7049_v36  ;;  %3202 = vmatprep.subr.bf16.mxu1 %v7050_v20  ;;  %v3563_v27 = vpack.c.bf16 %v3264_v24, %v3263_v53  ;;  %v3265_v36 = vld [vmem:[%s6376_s5 + $0x30] sm:$0xff]  ;;  %v3266_v20 = vld [vmem:[%s6376_s5 + $0x38] sm:$0xff] }
 0xfac   :  { %3162 = vmatpush1.bf16.msra.mxu0 %v7051_v25  ;;  %3203 = vmatpush1.bf16.msra.mxu1 %v7052_v32  ;;  %v3566_v25 = vpack.c.bf16 %v3266_v20, %v3265_v36  ;;  %v3267_v32 = vld [vmem:[%s6376_s5 + $0x40] sm:$0xff] }
 0xfad   :  { %3163 = vmatprep.subr.bf16.mxu0 %v7053_v12  ;;  %3204 = vmatprep.subr.bf16.mxu1 %v7054_v5  ;;  %v3268_v12 = vld [vmem:[%s6376_s5 + $0x48] sm:$0xff] }
 0xfae   :  { %v3569_v5 = vpack.c.bf16 %v3268_v12, %v3267_v32 }
 0xfb0   :  { %3164 = vmatpush1.bf16.msra.mxu0 %v7055_v7  ;;  %3205 = vmatpush1.bf16.msra.mxu1 %v7056_v13  ;;  %v3269_v7 = vld [vmem:[%s6376_s5 + $0x50] sm:$0xff]  ;;  %v3270_v13 = vld [vmem:[%s6376_s5 + $0x58] sm:$0xff] }
 0xfb1   :  { %3556 = vmatprep.subr.bf16.mxu0 %v4329_v22 }
0x1066   :  { %v3054_v10 = vpop.f32.mrb[60].mxu0  ;;  %v3095_v55 = vpop.f32.mrb[60].mxu1 }
0x1067   :  { %v3106_v52 = vrot.slane %v3054_v10, 2  ;;  %v3056_v8 = vpop.f32.mrb[61].mxu0  ;;  %v3097_v44 = vpop.f32.mrb[61].mxu1  ;;  %v3108_v34 = vrot.slane %v3095_v55, 2  ;;  %v3572_v10 = vpack.c.bf16 %v3270_v13, %v3269_v7  ;;  %v3272_v55 = vld [vmem:[%s6376_s5 + $0x68] sm:$0xff] }
0x1068   :  { %v3107_v38 = vrot.slane %v3056_v8, 2  ;;  %v3058_v45 = vpop.f32.mrb[62].mxu0  ;;  %v3099_v0 = vpop.f32.mrb[62].mxu1  ;;  %v3109_v18 = vrot.slane %v3097_v44, 2  ;;  %v3273_v8 = vld [vmem:[%s6376_s5 + $0x70] sm:$0xff]  ;;  %v3274_v44 = vld [vmem:[%s6376_s5 + $0x78] sm:$0xff] }
0x1069   :  { %v3114_v11 = vadd.f32 %v3106_v52, %v3016_v1  ;;  %v3059_v43 = vpop.f32.mrb[63].mxu0  ;;  %v3100_v48 = vpop.f32.mrb[63].mxu1  ;;  %v3116_v23 = vadd.f32 %v3108_v34, %v3018_v42  ;;  %v3271_v1 = vld [vmem:[%s6376_s5 + $0x60] sm:$0xff]  ;;  %v4331_v52 = vmov 0.0  }
0x106a   :  { %v3115_v26 = vadd.f32 %v3107_v38, %v3017_v15  ;;  %v3117_v57 = vadd.f32 %v3109_v18, %v3019_v37  ;;  %v3575_v15 = vpack.c.bf16 %v3272_v55, %v3271_v1  ;;  %v3578_v38 = vpack.c.bf16 %v3274_v44, %v3273_v8 }
0x106b   :  { %v3497_v4 = vmul.f32 -1.442695, %v3114_v11 }
0x106c   :  { %v3498_v2 = vmul.f32 -1.442695, %v3115_v26  ;;  %v3499_v56 = vmul.f32 -1.442695, %v3117_v57 }
0x106d   :  { %4052 = vpow2.f32 %v3497_v4 }
0x106e   :  { %4054 = vpow2.f32 %v3498_v2 }
0x106f   :  { %4056 = vpow2.f32 %v3499_v56 }
0x1070   :  { %4058 = vtanh.f32 %v3116_v23 }
0x1077   :  { %v4053_v16 = vpop.eup %4052 }
0x1078   :  { %v4055_v51 = vpop.eup %4054  ;;  %v3124_v47 = vadd.f32 1.0, %v4053_v16 }
0x1079   :  { %v3125_v14 = vadd.f32 1.0, %v4055_v51  ;;  %v4057_v50 = vpop.eup %4056 }
0x107a   :  { %4060 = vrcp.f32 %v3124_v47  ;;  %v4059_v61 = vpop.eup %4058  ;;  %v3141_v60 = vadd.f32 1.0, %v4057_v50 }
0x107b   :  { %4062 = vrcp.f32 %v3125_v14 }
0x107c   :  { %4064 = vrcp.f32 %v3141_v60 }
0x1084   :  { %v4061_v41 = vpop.eup %4060 }
0x1085   :  { %v4063_v40 = vpop.eup %4062  ;;  %v3135_v29 = vmul.f32 %v4061_v41, %v4059_v61 }
0x1086   :  { %v3134_v30 = vmul.f32 %v4063_v40, %v3132_v35  ;;  %v4065_v59 = vpop.eup %4064 }
0x1088   :  { %v3136_v39 = vadd.f32 %v3135_v29, %v3134_v30  ;;  %v3503_v30 = vld [vmem:[%s6377_s6] ss:$0 sm:$0xff] }
0x108a   :  { %4066 = vtanh.f32 %v3136_v39 }
0x1094   :  { %v4067_v19 = vpop.eup %4066 }
0x1095   :  { %v3144_v54 = vmul.f32 %v4067_v19, %v4065_v59 }
0x1097   :  { %v3145_v31 = vpack.c.bf16 %v3144_v54, %v3144_v54 }
0x1099   :  { %v3147_v28 = vrot.slane %v3145_v31, 3 }
0x109b   :  { %3182 = vmatmul.mubr.bf16.vlgmr.msra.gmra.mrb[56].mxu0 %v3147_v28  ;;  %3223 = vmatmul.mubr.bf16.vlgmr.msra.gmra.mrb[56].mxu1 %v3147_v28 }
0x109c   :  { %3558 = vmatpush3.bf16.msra.mxu0 %v3557_v58  ;;  %3553 = vmatprep.mubr.msk.f32.mxu0 %vm4330_vm0, %v4331_v52 }
0x109d   :  { %3559 = vmatprep.subr.bf16.mxu0 %v4329_v22 }
0x10a0   :  { %3561 = vmatpush3.bf16.msra.mxu0 %v3560_v33 }
0x10a1   :  { %3562 = vmatprep.subr.bf16.mxu0 %v4329_v22 }
0x10a4   :  { %3564 = vmatpush3.bf16.msra.mxu0 %v3563_v27 }
0x10a5   :  { %3565 = vmatprep.subr.bf16.mxu0 %v4329_v22 }
0x10a8   :  { %3567 = vmatpush3.bf16.msra.mxu0 %v3566_v25 }
0x10a9   :  { %3568 = vmatprep.subr.bf16.mxu0 %v4329_v22 }
0x10ac   :  { %3570 = vmatpush3.bf16.msra.mxu0 %v3569_v5 }
0x10ad   :  { %3571 = vmatprep.subr.bf16.mxu0 %v4329_v22 }
0x10b0   :  { %3573 = vmatpush3.bf16.msra.mxu0 %v3572_v10 }
0x10b1   :  { %3574 = vmatprep.subr.bf16.mxu0 %v4329_v22 }
0x10b4   :  { %3576 = vmatpush3.bf16.msra.mxu0 %v3575_v15 }
0x10b5   :  { %3577 = vmatprep.subr.bf16.mxu0 %v4329_v22 }
0x10b8   :  { %3579 = vmatpush3.bf16.msra.mxu0 %v3578_v38 }
0x116e   :  { %v3183_v45 = vpop.f32.mrb[56].mxu0  ;;  %v3224_v0 = vpop.f32.mrb[56].mxu1 }
0x116f   :  { %v3608_v11 = vadd.f32 %v3183_v45, %v6944_v49  ;;  %v3185_v43 = vpop.f32.mrb[57].mxu0  ;;  %v3226_v48 = vpop.f32.mrb[57].mxu1  ;;  %v3610_v23 = vadd.f32 %v3224_v0, %v4857_v63 }
0x1170   :  { %v3609_v26 = vadd.f32 %v3185_v43, %v4850_v9  ;;  %v3187_v4 = vpop.f32.mrb[58].mxu0  ;;  %v3228_v2 = vpop.f32.mrb[58].mxu1  ;;  %v3611_v42 = vadd.f32 %v3226_v48, %v4854_v62 }
0x1171   :  { %v3500_v18 = vmul.f32 -1.442695, %v3608_v11  ;;  %v3188_v37 = vpop.f32.mrb[59].mxu0  ;;  %v3229_v57 = vpop.f32.mrb[59].mxu1 }
0x1172   :  { %v3501_v34 = vmul.f32 -1.442695, %v3609_v26  ;;  %v3502_v56 = vmul.f32 -1.442695, %v3611_v42 }
0x1173   :  { %4068 = vpow2.f32 %v3500_v18 }
0x1174   :  { %4070 = vpow2.f32 %v3501_v34 }
0x1175   :  { %4072 = vpow2.f32 %v3502_v56 }
0x1176   :  { %4074 = vtanh.f32 %v3610_v23 }
0x117d   :  { %v4069_v16 = vpop.eup %4068 }
0x117e   :  { %v4071_v51 = vpop.eup %4070  ;;  %v3241_v49 = vadd.f32 1.0, %v4069_v16 }
0x117f   :  { %v3242_v47 = vadd.f32 1.0, %v4071_v51  ;;  %v4073_v9 = vpop.eup %4072 }
0x1180   :  { %4076 = vrcp.f32 %v3241_v49  ;;  %v4075_v14 = vpop.eup %4074  ;;  %v3255_v35 = vadd.f32 1.0, %v4073_v9 }
0x1181   :  { %4078 = vrcp.f32 %v3242_v47 }
0x1182   :  { %4080 = vrcp.f32 %v3255_v35 }
0x118a   :  { %v4077_v50 = vpop.eup %4076 }
0x118b   :  { %v4079_v61 = vpop.eup %4078  ;;  %v3249_v41 = vmul.f32 %v4077_v50, %v4075_v14 }
0x118c   :  { %v3248_v40 = vmul.f32 %v4079_v61, %v6228_v46  ;;  %v4081_v63 = vpop.eup %4080 }
0x118e   :  { %v3250_v62 = vadd.f32 %v3249_v41, %v3248_v40 }
0x1190   :  { %4082 = vtanh.f32 %v3250_v62 }
0x119a   :  { %v4083_v29 = vpop.eup %4082 }
0x119b   :  { %v3258_v60 = vmul.f32 %v4083_v29, %v4081_v63 }
0x119d   :  { %3554 = vmatmul.mubr.f32.vlgmr.msra.gmra.mrb[64].mxu0 %v3258_v60 }
0x1270   :  { %v3348_v39 = vpop.f32.mrb[64].mxu0 }
0x1271   :  { %v3349_v59 = vadd.f32 %v3503_v30, %v3348_v39  ;;  %v3555_v19 = vpop.f32.mrb[65].mxu0 }
0x1273   :  { %3352 = vst [vmem:[%s6378_s7] sm:$0x3] %v3349_v59 }
0x1274   :  { %3357 = vsyncpa [#allocation3], 1 }
0x1275   :  { %3358 = vsyncpa [#allocation5], 1 }

</bundles_post_ra>
